<compile_context>
chip_gen: v7x
topology: tpu7x:2x2x1
jax: 0.10.0
libtpu: 0.0.40
codegen_flags: <defaults>
</compile_context>

<pallas_src>
import functools

import jax
import jax.numpy as jnp
from jax.experimental import pallas as pl
from jax.experimental.pallas import tpu as pltpu


def _round_up(x, m):
    return (x + m - 1) // m * m


# ----------------------------- Pallas kernels ------------------------------ #

def _bn_stats_kernel(x_ref, stat_ref):
    """Per-image partial BN statistics: stat[0] = sum_x, stat[1] = sum_x2."""
    x = x_ref[...][0]                       # (H+2, W+2, Cp) f32; border rows/cols are 0
    cp = x.shape[-1]
    x2d = x.reshape(-1, cp)
    s = jnp.sum(x2d, axis=0, keepdims=True)
    sq = jnp.sum(x2d * x2d, axis=0, keepdims=True)
    stat_ref[...] = jnp.concatenate([s, sq], axis=0).reshape(1, 2, cp)


def _bn_relu_conv_kernel(x_ref, scale_ref, shift_ref, w_ref, b_ref,
                         o_ref, stat_ref, *, H, W, c_off, c_out):
    """Fused BN(folded) -> ReLU -> 3x3 conv (9 bf16 MXU matmuls, f32 acc) ->
    in-place concat-slot update -> partial BN stats of the updated buffer."""
    cp = x_ref.shape[-1]
    xblk = x_ref[...]                       # (1, H+2, W+2, Cp) f32
    xp = xblk[0]                            # (H+2, W+2, Cp)

    # BatchNorm (train-mode batch stats, folded into scale/shift) + ReLU.
    # Conv2d(padding=1) zero-pads AFTER BN+ReLU, so the stored zero border must
    # stay exactly zero -> mask it back out.
    y = jnp.maximum(xp * scale_ref[...] + shift_ref[...], 0.0)
    rows = jax.lax.broadcasted_iota(jnp.int32, (H + 2, W + 2, cp), 0)
    cols = jax.lax.broadcasted_iota(jnp.int32, (H + 2, W + 2, cp), 1)
    interior = (rows >= 1) & (rows <= H) & (cols >= 1) & (cols <= W)
    y = jnp.where(interior, y, 0.0).astype(jnp.bfloat16)

    # 3x3 conv as 9 shifted matmuls: bf16 operands on the MXU, f32 accumulation.
    acc = jnp.broadcast_to(b_ref[...], (H * W, cp))           # bias already slotted
    for k in range(9):
        dy, dx = k // 3, k % 3
        patch = y[dy:dy + H, dx:dx + W, :].reshape(H * W, cp)
        acc = acc + jnp.dot(patch, w_ref[k], preferred_element_type=jnp.float32)
    out3 = acc.reshape(H, W, cp)

    # Dense connectivity, in place: keep old channels, drop the conv result into
    # its channel slot [c_off, c_off + c_out) of the concatenated buffer.
    ch = jax.lax.broadcasted_iota(jnp.int32, (H, W, cp), 2)
    slot = (ch >= c_off) & (ch < c_off + c_out)
    x_int = xp[1:H + 1, 1:W + 1, :]
    new_int = jnp.where(slot, out3, x_int)

    o_ref[...] = xblk                                         # border + old channels
    o_ref[0:1, 1:H + 1, 1:W + 1, :] = new_int[None].astype(o_ref.dtype)

    # Partial BN statistics of the updated buffer (border is zero, so interior
    # sums equal full-buffer sums) -- consumed by the next layer.
    n2d = new_int.reshape(H * W, cp)
    s = jnp.sum(n2d, axis=0, keepdims=True)
    sq = jnp.sum(n2d * n2d, axis=0, keepdims=True)
    stat_ref[...] = jnp.concatenate([s, sq], axis=0).reshape(1, 2, cp)


# ----------------------------- pallas_call wrappers ------------------------ #

def bn_stats_pallas(xpad):
    N, Hp2, Wp2, Cp = xpad.shape
    return pl.pallas_call(
        _bn_stats_kernel,
        out_shape=jax.ShapeDtypeStruct((N, 2, Cp), jnp.float32),
        grid=(N,),
        in_specs=[pl.BlockSpec((1, Hp2, Wp2, Cp), lambda n: (n, 0, 0, 0))],
        out_specs=pl.BlockSpec((1, 2, Cp), lambda n: (n, 0, 0)),
        compiler_params=pltpu.CompilerParams(dimension_semantics=("parallel",)),
    )(xpad)


def bn_relu_conv_pallas(xpad, scale, shift, w_gemm, b_pad, *, H, W, c_off, c_out):
    N, Hp2, Wp2, Cp = xpad.shape
    kernel = functools.partial(_bn_relu_conv_kernel, H=H, W=W,
                               c_off=c_off, c_out=c_out)
    return pl.pallas_call(
        kernel,
        out_shape=(jax.ShapeDtypeStruct((N, Hp2, Wp2, Cp), xpad.dtype),
                   jax.ShapeDtypeStruct((N, 2, Cp), jnp.float32)),
        grid=(N,),
        in_specs=[
            pl.BlockSpec((1, Hp2, Wp2, Cp), lambda n: (n, 0, 0, 0)),  # activations
            pl.BlockSpec((1, Cp), lambda n: (0, 0)),                  # BN scale (resident)
            pl.BlockSpec((1, Cp), lambda n: (0, 0)),                  # BN shift (resident)
            pl.BlockSpec((9, Cp, Cp), lambda n: (0, 0, 0)),           # conv weights (resident)
            pl.BlockSpec((1, Cp), lambda n: (0, 0)),                  # bias (resident)
        ],
        out_specs=(
            pl.BlockSpec((1, Hp2, Wp2, Cp), lambda n: (n, 0, 0, 0)),  # updated concat buffer
            pl.BlockSpec((1, 2, Cp), lambda n: (n, 0, 0)),            # next-layer stat partials
        ),
        # In-place update of the concatenated activation buffer (P8).
        input_output_aliases={0: 0},
        compiler_params=pltpu.CompilerParams(dimension_semantics=("parallel",)),
    )(xpad, scale, shift, w_gemm, b_pad)


# ----------------------------- JAX glue ------------------------------------ #

def _bn_scale_shift(stat_partials, inv_count, gamma, beta, cp, eps=1e-5):
    """Finalize batch statistics and fold BN into per-channel scale/shift (f32)."""
    s = jnp.sum(stat_partials[:, 0, :], axis=0)
    sq = jnp.sum(stat_partials[:, 1, :], axis=0)
    mean = s * inv_count
    var = jnp.maximum(sq * inv_count - mean * mean, 0.0)      # biased variance
    inv_std = jax.lax.rsqrt(var + eps)
    gp = jnp.zeros((cp,), jnp.float32).at[:gamma.shape[0]].set(gamma)
    bp = jnp.zeros((cp,), jnp.float32).at[:beta.shape[0]].set(beta)
    scale = gp * inv_std
    shift = bp - mean * scale
    return scale.reshape(1, cp), shift.reshape(1, cp)


def _pack_conv_params(w, b, cp, c_off):
    """(Cout, Cin, 3, 3) -> (9, Cp, Cp) bf16 with output channels placed at their
    concat-slot offset, plus a (1, Cp) f32 slotted bias."""
    cout, cin, kh, kw = w.shape
    wt = jnp.transpose(w, (2, 3, 1, 0)).reshape(kh * kw, cin, cout)   # (k, ci, co)
    wg = jnp.zeros((kh * kw, cp, cp), jnp.float32)
    wg = wg.at[:, :cin, c_off:c_off + cout].set(wt)
    b_pad = jnp.zeros((1, cp), jnp.float32).at[0, c_off:c_off + cout].set(b)
    return wg.astype(jnp.bfloat16), b_pad


def init_dense_block_params(key, num_convs, input_channels, num_channels):
    params = []
    for i in range(num_convs):
        cin = input_channels + i * num_channels
        key, k1, k2, k3, k4 = jax.random.split(key, 5)
        gamma = 1.0 + 0.1 * jax.random.normal(k1, (cin,), jnp.float32)
        beta = 0.1 * jax.random.normal(k2, (cin,), jnp.float32)
        fan_in = cin * 9
        w = jax.random.normal(k3, (num_channels, cin, 3, 3), jnp.float32) / jnp.sqrt(fan_in)
        b = 0.1 * jax.random.normal(k4, (num_channels,), jnp.float32)
        params.append((gamma, beta, w, b))
    return params


@jax.jit
def dense_block_forward(x_nchw, params):
    """DenseBlock forward; input/output NCHW like the PyTorch module."""
    N, C0, H, W = x_nchw.shape
    c_total = C0 + sum(p[2].shape[0] for p in params)
    cp = _round_up(c_total, 128)

    x = jnp.transpose(x_nchw, (0, 2, 3, 1)).astype(jnp.float32)       # NCHW -> NHWC
    xpad = jnp.zeros((N, H + 2, W + 2, cp), jnp.float32)
    xpad = xpad.at[:, 1:H + 1, 1:W + 1, :C0].set(x)

    inv_count = 1.0 / float(N * H * W)
    stats = bn_stats_pallas(xpad)                                     # layer-0 stats

    c_cur = C0
    for (gamma, beta, w, b) in params:
        c_out = w.shape[0]
        scale, shift = _bn_scale_shift(stats, inv_count, gamma, beta, cp)
        wg, b_pad = _pack_conv_params(w, b, cp, c_cur)
        xpad, stats = bn_relu_conv_pallas(xpad, scale, shift, wg, b_pad,
                                          H=H, W=W, c_off=c_cur, c_out=c_out)
        c_cur += c_out

    y = xpad[:, 1:H + 1, 1:W + 1, :c_cur]
    return jnp.transpose(y, (0, 3, 1, 2))                             # NHWC -> NCHW


# ----------------------------- pure-JAX reference --------------------------- #

def dense_block_reference(x_nchw, params, emulate_bf16=False):
    X = x_nchw.astype(jnp.float32)
    for (gamma, beta, w, b) in params:
        mean = X.mean(axis=(0, 2, 3), keepdims=True)
        var = ((X - mean) ** 2).mean(axis=(0, 2, 3), keepdims=True)
        y = (X - mean) * jax.lax.rsqrt(var + 1e-5)
        y = y * gamma[None, :, None, None] + beta[None, :, None, None]
        y = jnp.maximum(y, 0.0)
        wf = w
        if emulate_bf16:  # mirror the kernel's mixed-precision GEMM inputs
            y = y.astype(jnp.bfloat16).astype(jnp.float32)
            wf = w.astype(jnp.bfloat16).astype(jnp.float32)
        out = jax.lax.conv_general_dilated(
            y, wf, window_strides=(1, 1), padding=((1, 1), (1, 1)),
            dimension_numbers=("NCHW", "OIHW", "NCHW"))
        out = out + b[None, :, None, None]
        X = jnp.concatenate([X, out], axis=1)
    return X


# ----------------------------- main ----------------------------------------- #

if __name__ == "__main__":
    key = jax.random.PRNGKey(0)
    kx, kp = jax.random.split(key)

    # DenseBlock(num_convs=2, input_channels=3, num_channels=10) on (N=4, C=3, 8, 8)
    # -- the shapes used in the d2l DenseNet chapter (output has 3 + 2*10 = 23 ch).
    num_convs, input_channels, num_channels = 2, 3, 10
    x = jax.random.normal(kx, (4, input_channels, 8, 8), jnp.float32)
    params = init_dense_block_params(kp, num_convs, input_channels, num_channels)

    out = jax.block_until_ready(dense_block_forward(x, params))
    expected_channels = input_channels + num_convs * num_channels
    assert out.shape == (4, expected_channels, 8, 8), out.shape

    # Tight check vs a reference that mirrors the kernel's mixed-precision policy
    # (bf16 GEMM inputs, everything else f32).
    ref_mixed = dense_block_reference(x, params, emulate_bf16=True)
    assert jnp.allclose(out, ref_mixed, rtol=1e-2, atol=1e-2), \
        float(jnp.max(jnp.abs(out - ref_mixed)))

    # Loose sanity bound vs the pure-f32 PyTorch-equivalent reference (bf16 drift).
    ref_f32 = dense_block_reference(x, params, emulate_bf16=False)
    assert jnp.allclose(out, ref_f32, rtol=1e-1, atol=1e-1), \
        float(jnp.max(jnp.abs(out - ref_f32)))

    print("KERNEL_OK")
</pallas_src>

<mosaic_0001>
module attributes {stable_mosaic.version = 11 : i64} {
  func.func @_bn_stats_kernel(%arg0: i32, %arg1: memref<1x10x10x128xf32, #tpu.memory_space<vmem>>, %arg2: memref<1x2x128xf32, #tpu.memory_space<vmem>>) attributes {dimension_semantics = [#tpu.dimension_semantics<parallel>], iteration_bounds = array<i64: 4>, scalar_prefetch = 0 : i64, scratch_operands = 0 : i64, tpu.core_type = #tpu.core_type<tc>, window_params = [{transform_indices = @transform_0, window_bounds = array<i64: 1, 10, 10, 128>}, {transform_indices = @transform_1, window_bounds = array<i64: 1, 2, 128>}]} {
    %c0 = arith.constant 0 : index
    %c0_0 = arith.constant 0 : index
    %c0_1 = arith.constant 0 : index
    %c0_2 = arith.constant 0 : index
    %0 = vector.load %arg1[%c0, %c0_0, %c0_1, %c0_2] : memref<1x10x10x128xf32, #tpu.memory_space<vmem>>, vector<1x10x10x128xf32>
    %1 = vector.shape_cast %0 : vector<1x10x10x128xf32> to vector<10x10x128xf32>
    %2 = vector.shape_cast %1 : vector<10x10x128xf32> to vector<100x128xf32>
    %cst = arith.constant dense<0.000000e+00> : vector<128xf32>
    %3 = vector.multi_reduction <add>, %2, %cst [0] : vector<100x128xf32> to vector<128xf32>
    %4 = vector.shape_cast %3 : vector<128xf32> to vector<1x128xf32>
    %5 = arith.mulf %2, %2 : vector<100x128xf32>
    %cst_3 = arith.constant dense<0.000000e+00> : vector<128xf32>
    %6 = vector.multi_reduction <add>, %5, %cst_3 [0] : vector<100x128xf32> to vector<128xf32>
    %7 = vector.shape_cast %6 : vector<128xf32> to vector<1x128xf32>
    %8 = tpu.concatenate %4, %7 in 0 : vector<1x128xf32>, vector<1x128xf32> -> vector<2x128xf32>
    %9 = vector.shape_cast %8 : vector<2x128xf32> to vector<1x2x128xf32>
    %c0_4 = arith.constant 0 : index
    %c0_5 = arith.constant 0 : index
    %c0_6 = arith.constant 0 : index
    %10 = vector.load %arg2[%c0_4, %c0_5, %c0_6] : memref<1x2x128xf32, #tpu.memory_space<vmem>>, vector<1x2x128xf32>
    tpu.vector_store %arg2[%c0_4, %c0_5, %c0_6], %9 {strides = array<i32>} : memref<1x2x128xf32, #tpu.memory_space<vmem>>, vector<1x2x128xf32>,
    return
  }
  func.func @transform_0(%arg0: i32) -> (i32, i32, i32, i32) {
    %c0_i32 = arith.constant 0 : i32
    %c0_i32_0 = arith.constant 0 : i32
    %c0_i32_1 = arith.constant 0 : i32
    %c0_i32_2 = arith.constant 0 : i32
    return %arg0, %c0_i32, %c0_i32_0, %c0_i32_1 : i32, i32, i32, i32
  }
  func.func @transform_1(%arg0: i32) -> (i32, i32, i32) {
    %c0_i32 = arith.constant 0 : i32
    %c0_i32_0 = arith.constant 0 : i32
    %c0_i32_1 = arith.constant 0 : i32
    return %arg0, %c0_i32, %c0_i32_0 : i32, i32, i32
  }
}

module attributes {stable_mosaic.version = 11 : i64} {
  func.func @_bn_relu_conv_kernel(%arg0: i32, %arg1: memref<1x10x10x128xf32, #tpu.memory_space<vmem>>, %arg2: memref<1x128xf32, #tpu.memory_space<vmem>>, %arg3: memref<1x128xf32, #tpu.memory_space<vmem>>, %arg4: memref<9x128x128xbf16, #tpu.memory_space<vmem>>, %arg5: memref<1x128xf32, #tpu.memory_space<vmem>>, %arg6: memref<1x10x10x128xf32, #tpu.memory_space<vmem>>, %arg7: memref<1x2x128xf32, #tpu.memory_space<vmem>>) attributes {dimension_semantics = [#tpu.dimension_semantics<parallel>], iteration_bounds = array<i64: 4>, scalar_prefetch = 0 : i64, scratch_operands = 0 : i64, tpu.core_type = #tpu.core_type<tc>, window_params = [{transform_indices = @transform_0, window_bounds = array<i64: 1, 10, 10, 128>}, {pipeline_mode = #tpu.pipeline_mode<synchronous>, transform_indices = @transform_1, window_bounds = array<i64: 1, 128>}, {pipeline_mode = #tpu.pipeline_mode<synchronous>, transform_indices = @transform_2, window_bounds = array<i64: 1, 128>}, {pipeline_mode = #tpu.pipeline_mode<synchronous>, transform_indices = @transform_3, window_bounds = array<i64: 9, 128, 128>}, {pipeline_mode = #tpu.pipeline_mode<synchronous>, transform_indices = @transform_4, window_bounds = array<i64: 1, 128>}, {transform_indices = @transform_5, window_bounds = array<i64: 1, 10, 10, 128>}, {transform_indices = @transform_6, window_bounds = array<i64: 1, 2, 128>}]} {
    %c0 = arith.constant 0 : index
    %c0_0 = arith.constant 0 : index
    %c0_1 = arith.constant 0 : index
    %c0_2 = arith.constant 0 : index
    %0 = vector.load %arg1[%c0, %c0_0, %c0_1, %c0_2] : memref<1x10x10x128xf32, #tpu.memory_space<vmem>>, vector<1x10x10x128xf32>
    %1 = vector.shape_cast %0 : vector<1x10x10x128xf32> to vector<10x10x128xf32>
    %c0_3 = arith.constant 0 : index
    %c0_4 = arith.constant 0 : index
    %2 = vector.load %arg2[%c0_3, %c0_4] : memref<1x128xf32, #tpu.memory_space<vmem>>, vector<1x128xf32>
    %3 = vector.shape_cast %2 : vector<1x128xf32> to vector<1x1x128xf32>
    %4 = vector.broadcast %3 : vector<1x1x128xf32> to vector<10x10x128xf32>
    %5 = arith.mulf %1, %4 : vector<10x10x128xf32>
    %c0_5 = arith.constant 0 : index
    %c0_6 = arith.constant 0 : index
    %6 = vector.load %arg3[%c0_5, %c0_6] : memref<1x128xf32, #tpu.memory_space<vmem>>, vector<1x128xf32>
    %7 = vector.shape_cast %6 : vector<1x128xf32> to vector<1x1x128xf32>
    %8 = vector.broadcast %7 : vector<1x1x128xf32> to vector<10x10x128xf32>
    %9 = arith.addf %5, %8 : vector<10x10x128xf32>
    %cst = arith.constant 0.000000e+00 : f32
    %10 = vector.broadcast %cst : f32 to vector<10x10x128xf32>
    %11 = arith.maximumf %9, %10 : vector<10x10x128xf32>
    %12 = tpu.iota {dimensions = array<i32: 0>} : vector<10x10x128xi32>
    %13 = tpu.iota {dimensions = array<i32: 1>} : vector<10x10x128xi32>
    %c1_i32 = arith.constant 1 : i32
    %14 = vector.broadcast %c1_i32 : i32 to vector<10x10x128xi32>
    %15 = arith.cmpi sge, %12, %14 : vector<10x10x128xi32>
    %c8_i32 = arith.constant 8 : i32
    %16 = vector.broadcast %c8_i32 : i32 to vector<10x10x128xi32>
    %17 = arith.cmpi sle, %12, %16 : vector<10x10x128xi32>
    %18 = arith.andi %15, %17 : vector<10x10x128xi1>
    %c1_i32_7 = arith.constant 1 : i32
    %19 = vector.broadcast %c1_i32_7 : i32 to vector<10x10x128xi32>
    %20 = arith.cmpi sge, %13, %19 : vector<10x10x128xi32>
    %21 = arith.andi %18, %20 : vector<10x10x128xi1>
    %c8_i32_8 = arith.constant 8 : i32
    %22 = vector.broadcast %c8_i32_8 : i32 to vector<10x10x128xi32>
    %23 = arith.cmpi sle, %13, %22 : vector<10x10x128xi32>
    %24 = arith.andi %21, %23 : vector<10x10x128xi1>
    %cst_9 = arith.constant 0.000000e+00 : f32
    %25 = vector.broadcast %cst_9 : f32 to vector<10x10x128xf32>
    %26 = arith.select %24, %11, %25 : vector<10x10x128xi1>, vector<10x10x128xf32>
    %27 = arith.truncf %26 : vector<10x10x128xf32> to vector<10x10x128xbf16>
    %c0_10 = arith.constant 0 : index
    %c0_11 = arith.constant 0 : index
    %28 = vector.load %arg5[%c0_10, %c0_11] : memref<1x128xf32, #tpu.memory_space<vmem>>, vector<1x128xf32>
    %29 = vector.shape_cast %28 : vector<1x128xf32> to vector<1x128xf32>
    %30 = vector.broadcast %29 : vector<1x128xf32> to vector<64x128xf32>
    %31 = vector.extract_strided_slice %27 {offsets = [0, 0, 0], sizes = [8, 8, 128], strides = [1, 1, 1]} : vector<10x10x128xbf16> to vector<8x8x128xbf16>
    %32 = vector.shape_cast %31 : vector<8x8x128xbf16> to vector<64x128xbf16>
    %c0_12 = arith.constant 0 : index
    %c0_13 = arith.constant 0 : index
    %c0_14 = arith.constant 0 : index
    %33 = vector.load %arg4[%c0_12, %c0_13, %c0_14] : memref<9x128x128xbf16, #tpu.memory_space<vmem>>, vector<1x128x128xbf16>
    %34 = vector.shape_cast %33 : vector<1x128x128xbf16> to vector<128x128xbf16>
    %cst_15 = arith.constant dense<0.000000e+00> : vector<64x128xf32>
    %35 = tpu.matmul %32, %34, %cst_15 {dimension_numbers = #tpu.dot_dimension_numbers<[1], [0], [0], [1], [0, 0, 1, 1], [], []>} : vector<64x128xbf16>, vector<128x128xbf16>, vector<64x128xf32> -> vector<64x128xf32>
    %36 = arith.addf %30, %35 : vector<64x128xf32>
    %37 = vector.extract_strided_slice %27 {offsets = [0, 1, 0], sizes = [8, 8, 128], strides = [1, 1, 1]} : vector<10x10x128xbf16> to vector<8x8x128xbf16>
    %38 = vector.shape_cast %37 : vector<8x8x128xbf16> to vector<64x128xbf16>
    %c1 = arith.constant 1 : index
    %c0_16 = arith.constant 0 : index
    %c0_17 = arith.constant 0 : index
    %39 = vector.load %arg4[%c1, %c0_16, %c0_17] : memref<9x128x128xbf16, #tpu.memory_space<vmem>>, vector<1x128x128xbf16>
    %40 = vector.shape_cast %39 : vector<1x128x128xbf16> to vector<128x128xbf16>
    %cst_18 = arith.constant dense<0.000000e+00> : vector<64x128xf32>
    %41 = tpu.matmul %38, %40, %cst_18 {dimension_numbers = #tpu.dot_dimension_numbers<[1], [0], [0], [1], [0, 0, 1, 1], [], []>} : vector<64x128xbf16>, vector<128x128xbf16>, vector<64x128xf32> -> vector<64x128xf32>
    %42 = arith.addf %36, %41 : vector<64x128xf32>
    %43 = vector.extract_strided_slice %27 {offsets = [0, 2, 0], sizes = [8, 8, 128], strides = [1, 1, 1]} : vector<10x10x128xbf16> to vector<8x8x128xbf16>
    %44 = vector.shape_cast %43 : vector<8x8x128xbf16> to vector<64x128xbf16>
    %c2 = arith.constant 2 : index
    %c0_19 = arith.constant 0 : index
    %c0_20 = arith.constant 0 : index
    %45 = vector.load %arg4[%c2, %c0_19, %c0_20] : memref<9x128x128xbf16, #tpu.memory_space<vmem>>, vector<1x128x128xbf16>
    %46 = vector.shape_cast %45 : vector<1x128x128xbf16> to vector<128x128xbf16>
    %cst_21 = arith.constant dense<0.000000e+00> : vector<64x128xf32>
    %47 = tpu.matmul %44, %46, %cst_21 {dimension_numbers = #tpu.dot_dimension_numbers<[1], [0], [0], [1], [0, 0, 1, 1], [], []>} : vector<64x128xbf16>, vector<128x128xbf16>, vector<64x128xf32> -> vector<64x128xf32>
    %48 = arith.addf %42, %47 : vector<64x128xf32>
    %49 = vector.extract_strided_slice %27 {offsets = [1, 0, 0], sizes = [8, 8, 128], strides = [1, 1, 1]} : vector<10x10x128xbf16> to vector<8x8x128xbf16>
    %50 = vector.shape_cast %49 : vector<8x8x128xbf16> to vector<64x128xbf16>
    %c3 = arith.constant 3 : index
    %c0_22 = arith.constant 0 : index
    %c0_23 = arith.constant 0 : index
    %51 = vector.load %arg4[%c3, %c0_22, %c0_23] : memref<9x128x128xbf16, #tpu.memory_space<vmem>>, vector<1x128x128xbf16>
    %52 = vector.shape_cast %51 : vector<1x128x128xbf16> to vector<128x128xbf16>
    %cst_24 = arith.constant dense<0.000000e+00> : vector<64x128xf32>
    %53 = tpu.matmul %50, %52, %cst_24 {dimension_numbers = #tpu.dot_dimension_numbers<[1], [0], [0], [1], [0, 0, 1, 1], [], []>} : vector<64x128xbf16>, vector<128x128xbf16>, vector<64x128xf32> -> vector<64x128xf32>
    %54 = arith.addf %48, %53 : vector<64x128xf32>
    %55 = vector.extract_strided_slice %27 {offsets = [1, 1, 0], sizes = [8, 8, 128], strides = [1, 1, 1]} : vector<10x10x128xbf16> to vector<8x8x128xbf16>
    %56 = vector.shape_cast %55 : vector<8x8x128xbf16> to vector<64x128xbf16>
    %c4 = arith.constant 4 : index
    %c0_25 = arith.constant 0 : index
    %c0_26 = arith.constant 0 : index
    %57 = vector.load %arg4[%c4, %c0_25, %c0_26] : memref<9x128x128xbf16, #tpu.memory_space<vmem>>, vector<1x128x128xbf16>
    %58 = vector.shape_cast %57 : vector<1x128x128xbf16> to vector<128x128xbf16>
    %cst_27 = arith.constant dense<0.000000e+00> : vector<64x128xf32>
    %59 = tpu.matmul %56, %58, %cst_27 {dimension_numbers = #tpu.dot_dimension_numbers<[1], [0], [0], [1], [0, 0, 1, 1], [], []>} : vector<64x128xbf16>, vector<128x128xbf16>, vector<64x128xf32> -> vector<64x128xf32>
    %60 = arith.addf %54, %59 : vector<64x128xf32>
    %61 = vector.extract_strided_slice %27 {offsets = [1, 2, 0], sizes = [8, 8, 128], strides = [1, 1, 1]} : vector<10x10x128xbf16> to vector<8x8x128xbf16>
    %62 = vector.shape_cast %61 : vector<8x8x128xbf16> to vector<64x128xbf16>
    %c5 = arith.constant 5 : index
    %c0_28 = arith.constant 0 : index
    %c0_29 = arith.constant 0 : index
    %63 = vector.load %arg4[%c5, %c0_28, %c0_29] : memref<9x128x128xbf16, #tpu.memory_space<vmem>>, vector<1x128x128xbf16>
    %64 = vector.shape_cast %63 : vector<1x128x128xbf16> to vector<128x128xbf16>
    %cst_30 = arith.constant dense<0.000000e+00> : vector<64x128xf32>
    %65 = tpu.matmul %62, %64, %cst_30 {dimension_numbers = #tpu.dot_dimension_numbers<[1], [0], [0], [1], [0, 0, 1, 1], [], []>} : vector<64x128xbf16>, vector<128x128xbf16>, vector<64x128xf32> -> vector<64x128xf32>
    %66 = arith.addf %60, %65 : vector<64x128xf32>
    %67 = vector.extract_strided_slice %27 {offsets = [2, 0, 0], sizes = [8, 8, 128], strides = [1, 1, 1]} : vector<10x10x128xbf16> to vector<8x8x128xbf16>
    %68 = vector.shape_cast %67 : vector<8x8x128xbf16> to vector<64x128xbf16>
    %c6 = arith.constant 6 : index
    %c0_31 = arith.constant 0 : index
    %c0_32 = arith.constant 0 : index
    %69 = vector.load %arg4[%c6, %c0_31, %c0_32] : memref<9x128x128xbf16, #tpu.memory_space<vmem>>, vector<1x128x128xbf16>
    %70 = vector.shape_cast %69 : vector<1x128x128xbf16> to vector<128x128xbf16>
    %cst_33 = arith.constant dense<0.000000e+00> : vector<64x128xf32>
    %71 = tpu.matmul %68, %70, %cst_33 {dimension_numbers = #tpu.dot_dimension_numbers<[1], [0], [0], [1], [0, 0, 1, 1], [], []>} : vector<64x128xbf16>, vector<128x128xbf16>, vector<64x128xf32> -> vector<64x128xf32>
    %72 = arith.addf %66, %71 : vector<64x128xf32>
    %73 = vector.extract_strided_slice %27 {offsets = [2, 1, 0], sizes = [8, 8, 128], strides = [1, 1, 1]} : vector<10x10x128xbf16> to vector<8x8x128xbf16>
    %74 = vector.shape_cast %73 : vector<8x8x128xbf16> to vector<64x128xbf16>
    %c7 = arith.constant 7 : index
    %c0_34 = arith.constant 0 : index
    %c0_35 = arith.constant 0 : index
    %75 = vector.load %arg4[%c7, %c0_34, %c0_35] : memref<9x128x128xbf16, #tpu.memory_space<vmem>>, vector<1x128x128xbf16>
    %76 = vector.shape_cast %75 : vector<1x128x128xbf16> to vector<128x128xbf16>
    %cst_36 = arith.constant dense<0.000000e+00> : vector<64x128xf32>
    %77 = tpu.matmul %74, %76, %cst_36 {dimension_numbers = #tpu.dot_dimension_numbers<[1], [0], [0], [1], [0, 0, 1, 1], [], []>} : vector<64x128xbf16>, vector<128x128xbf16>, vector<64x128xf32> -> vector<64x128xf32>
    %78 = arith.addf %72, %77 : vector<64x128xf32>
    %79 = vector.extract_strided_slice %27 {offsets = [2, 2, 0], sizes = [8, 8, 128], strides = [1, 1, 1]} : vector<10x10x128xbf16> to vector<8x8x128xbf16>
    %80 = vector.shape_cast %79 : vector<8x8x128xbf16> to vector<64x128xbf16>
    %c8 = arith.constant 8 : index
    %c0_37 = arith.constant 0 : index
    %c0_38 = arith.constant 0 : index
    %81 = vector.load %arg4[%c8, %c0_37, %c0_38] : memref<9x128x128xbf16, #tpu.memory_space<vmem>>, vector<1x128x128xbf16>
    %82 = vector.shape_cast %81 : vector<1x128x128xbf16> to vector<128x128xbf16>
    %cst_39 = arith.constant dense<0.000000e+00> : vector<64x128xf32>
    %83 = tpu.matmul %80, %82, %cst_39 {dimension_numbers = #tpu.dot_dimension_numbers<[1], [0], [0], [1], [0, 0, 1, 1], [], []>} : vector<64x128xbf16>, vector<128x128xbf16>, vector<64x128xf32> -> vector<64x128xf32>
    %84 = arith.addf %78, %83 : vector<64x128xf32>
    %85 = vector.shape_cast %84 : vector<64x128xf32> to vector<8x8x128xf32>
    %86 = tpu.iota {dimensions = array<i32: 2>} : vector<8x8x128xi32>
    %c3_i32 = arith.constant 3 : i32
    %87 = vector.broadcast %c3_i32 : i32 to vector<8x8x128xi32>
    %88 = arith.cmpi sge, %86, %87 : vector<8x8x128xi32>
    %c13_i32 = arith.constant 13 : i32
    %89 = vector.broadcast %c13_i32 : i32 to vector<8x8x128xi32>
    %90 = arith.cmpi slt, %86, %89 : vector<8x8x128xi32>
    %91 = arith.andi %88, %90 : vector<8x8x128xi1>
    %92 = vector.extract_strided_slice %1 {offsets = [1, 1, 0], sizes = [8, 8, 128], strides = [1, 1, 1]} : vector<10x10x128xf32> to vector<8x8x128xf32>
    %93 = arith.select %91, %85, %92 : vector<8x8x128xi1>, vector<8x8x128xf32>
    %c0_40 = arith.constant 0 : index
    %c0_41 = arith.constant 0 : index
    %c0_42 = arith.constant 0 : index
    %c0_43 = arith.constant 0 : index
    %94 = vector.load %arg6[%c0_40, %c0_41, %c0_42, %c0_43] : memref<1x10x10x128xf32, #tpu.memory_space<vmem>>, vector<1x10x10x128xf32>
    tpu.vector_store %arg6[%c0_40, %c0_41, %c0_42, %c0_43], %0 {strides = array<i32>} : memref<1x10x10x128xf32, #tpu.memory_space<vmem>>, vector<1x10x10x128xf32>,
    %95 = vector.shape_cast %93 : vector<8x8x128xf32> to vector<1x8x8x128xf32>
    %c0_44 = arith.constant 0 : index
    %c1_45 = arith.constant 1 : index
    %c1_46 = arith.constant 1 : index
    %c0_47 = arith.constant 0 : index
    %96 = vector.load %arg6[%c0_44, %c1_45, %c1_46, %c0_47] : memref<1x10x10x128xf32, #tpu.memory_space<vmem>>, vector<1x8x8x128xf32>
    tpu.vector_store %arg6[%c0_44, %c1_45, %c1_46, %c0_47], %95 {strides = array<i32>} : memref<1x10x10x128xf32, #tpu.memory_space<vmem>>, vector<1x8x8x128xf32>,
    %97 = vector.shape_cast %93 : vector<8x8x128xf32> to vector<64x128xf32>
    %cst_48 = arith.constant dense<0.000000e+00> : vector<128xf32>
    %98 = vector.multi_reduction <add>, %97, %cst_48 [0] : vector<64x128xf32> to vector<128xf32>
    %99 = vector.shape_cast %98 : vector<128xf32> to vector<1x128xf32>
    %100 = arith.mulf %97, %97 : vector<64x128xf32>
    %cst_49 = arith.constant dense<0.000000e+00> : vector<128xf32>
    %101 = vector.multi_reduction <add>, %100, %cst_49 [0] : vector<64x128xf32> to vector<128xf32>
    %102 = vector.shape_cast %101 : vector<128xf32> to vector<1x128xf32>
    %103 = tpu.concatenate %99, %102 in 0 : vector<1x128xf32>, vector<1x128xf32> -> vector<2x128xf32>
    %104 = vector.shape_cast %103 : vector<2x128xf32> to vector<1x2x128xf32>
    %c0_50 = arith.constant 0 : index
    %c0_51 = arith.constant 0 : index
    %c0_52 = arith.constant 0 : index
    %105 = vector.load %arg7[%c0_50, %c0_51, %c0_52] : memref<1x2x128xf32, #tpu.memory_space<vmem>>, vector<1x2x128xf32>
    tpu.vector_store %arg7[%c0_50, %c0_51, %c0_52], %104 {strides = array<i32>} : memref<1x2x128xf32, #tpu.memory_space<vmem>>, vector<1x2x128xf32>,
    return
  }
  func.func @transform_0(%arg0: i32) -> (i32, i32, i32, i32) {
    %c0_i32 = arith.constant 0 : i32
    %c0_i32_0 = arith.constant 0 : i32
    %c0_i32_1 = arith.constant 0 : i32
    %c0_i32_2 = arith.constant 0 : i32
    return %arg0, %c0_i32, %c0_i32_0, %c0_i32_1 : i32, i32, i32, i32
  }
  func.func @transform_1(%arg0: i32) -> (i32, i32) {
    %c0_i32 = arith.constant 0 : i32
    %c0_i32_0 = arith.constant 0 : i32
    %c0_i32_1 = arith.constant 0 : i32
    return %c0_i32, %c0_i32_0 : i32, i32
  }
  func.func @transform_2(%arg0: i32) -> (i32, i32) {
    %c0_i32 = arith.constant 0 : i32
    %c0_i32_0 = arith.constant 0 : i32
    %c0_i32_1 = arith.constant 0 : i32
    return %c0_i32, %c0_i32_0 : i32, i32
  }
  func.func @transform_3(%arg0: i32) -> (i32, i32, i32) {
    %c0_i32 = arith.constant 0 : i32
    %c0_i32_0 = arith.constant 0 : i32
    %c0_i32_1 = arith.constant 0 : i32
    %c0_i32_2 = arith.constant 0 : i32
    return %c0_i32, %c0_i32_0, %c0_i32_1 : i32, i32, i32
  }
  func.func @transform_4(%arg0: i32) -> (i32, i32) {
    %c0_i32 = arith.constant 0 : i32
    %c0_i32_0 = arith.constant 0 : i32
    %c0_i32_1 = arith.constant 0 : i32
    return %c0_i32, %c0_i32_0 : i32, i32
  }
  func.func @transform_5(%arg0: i32) -> (i32, i32, i32, i32) {
    %c0_i32 = arith.constant 0 : i32
    %c0_i32_0 = arith.constant 0 : i32
    %c0_i32_1 = arith.constant 0 : i32
    %c0_i32_2 = arith.constant 0 : i32
    return %arg0, %c0_i32, %c0_i32_0, %c0_i32_1 : i32, i32, i32, i32
  }
  func.func @transform_6(%arg0: i32) -> (i32, i32, i32) {
    %c0_i32 = arith.constant 0 : i32
    %c0_i32_0 = arith.constant 0 : i32
    %c0_i32_1 = arith.constant 0 : i32
    return %arg0, %c0_i32, %c0_i32_0 : i32, i32, i32
  }
}

module attributes {stable_mosaic.version = 11 : i64} {
  func.func @_bn_relu_conv_kernel(%arg0: i32, %arg1: memref<1x10x10x128xf32, #tpu.memory_space<vmem>>, %arg2: memref<1x128xf32, #tpu.memory_space<vmem>>, %arg3: memref<1x128xf32, #tpu.memory_space<vmem>>, %arg4: memref<9x128x128xbf16, #tpu.memory_space<vmem>>, %arg5: memref<1x128xf32, #tpu.memory_space<vmem>>, %arg6: memref<1x10x10x128xf32, #tpu.memory_space<vmem>>, %arg7: memref<1x2x128xf32, #tpu.memory_space<vmem>>) attributes {dimension_semantics = [#tpu.dimension_semantics<parallel>], iteration_bounds = array<i64: 4>, scalar_prefetch = 0 : i64, scratch_operands = 0 : i64, tpu.core_type = #tpu.core_type<tc>, window_params = [{transform_indices = @transform_0, window_bounds = array<i64: 1, 10, 10, 128>}, {pipeline_mode = #tpu.pipeline_mode<synchronous>, transform_indices = @transform_1, window_bounds = array<i64: 1, 128>}, {pipeline_mode = #tpu.pipeline_mode<synchronous>, transform_indices = @transform_2, window_bounds = array<i64: 1, 128>}, {pipeline_mode = #tpu.pipeline_mode<synchronous>, transform_indices = @transform_3, window_bounds = array<i64: 9, 128, 128>}, {pipeline_mode = #tpu.pipeline_mode<synchronous>, transform_indices = @transform_4, window_bounds = array<i64: 1, 128>}, {transform_indices = @transform_5, window_bounds = array<i64: 1, 10, 10, 128>}, {transform_indices = @transform_6, window_bounds = array<i64: 1, 2, 128>}]} {
    %c0 = arith.constant 0 : index
    %c0_0 = arith.constant 0 : index
    %c0_1 = arith.constant 0 : index
    %c0_2 = arith.constant 0 : index
    %0 = vector.load %arg1[%c0, %c0_0, %c0_1, %c0_2] : memref<1x10x10x128xf32, #tpu.memory_space<vmem>>, vector<1x10x10x128xf32>
    %1 = vector.shape_cast %0 : vector<1x10x10x128xf32> to vector<10x10x128xf32>
    %c0_3 = arith.constant 0 : index
    %c0_4 = arith.constant 0 : index
    %2 = vector.load %arg2[%c0_3, %c0_4] : memref<1x128xf32, #tpu.memory_space<vmem>>, vector<1x128xf32>
    %3 = vector.shape_cast %2 : vector<1x128xf32> to vector<1x1x128xf32>
    %4 = vector.broadcast %3 : vector<1x1x128xf32> to vector<10x10x128xf32>
    %5 = arith.mulf %1, %4 : vector<10x10x128xf32>
    %c0_5 = arith.constant 0 : index
    %c0_6 = arith.constant 0 : index
    %6 = vector.load %arg3[%c0_5, %c0_6] : memref<1x128xf32, #tpu.memory_space<vmem>>, vector<1x128xf32>
    %7 = vector.shape_cast %6 : vector<1x128xf32> to vector<1x1x128xf32>
    %8 = vector.broadcast %7 : vector<1x1x128xf32> to vector<10x10x128xf32>
    %9 = arith.addf %5, %8 : vector<10x10x128xf32>
    %cst = arith.constant 0.000000e+00 : f32
    %10 = vector.broadcast %cst : f32 to vector<10x10x128xf32>
    %11 = arith.maximumf %9, %10 : vector<10x10x128xf32>
    %12 = tpu.iota {dimensions = array<i32: 0>} : vector<10x10x128xi32>
    %13 = tpu.iota {dimensions = array<i32: 1>} : vector<10x10x128xi32>
    %c1_i32 = arith.constant 1 : i32
    %14 = vector.broadcast %c1_i32 : i32 to vector<10x10x128xi32>
    %15 = arith.cmpi sge, %12, %14 : vector<10x10x128xi32>
    %c8_i32 = arith.constant 8 : i32
    %16 = vector.broadcast %c8_i32 : i32 to vector<10x10x128xi32>
    %17 = arith.cmpi sle, %12, %16 : vector<10x10x128xi32>
    %18 = arith.andi %15, %17 : vector<10x10x128xi1>
    %c1_i32_7 = arith.constant 1 : i32
    %19 = vector.broadcast %c1_i32_7 : i32 to vector<10x10x128xi32>
    %20 = arith.cmpi sge, %13, %19 : vector<10x10x128xi32>
    %21 = arith.andi %18, %20 : vector<10x10x128xi1>
    %c8_i32_8 = arith.constant 8 : i32
    %22 = vector.broadcast %c8_i32_8 : i32 to vector<10x10x128xi32>
    %23 = arith.cmpi sle, %13, %22 : vector<10x10x128xi32>
    %24 = arith.andi %21, %23 : vector<10x10x128xi1>
    %cst_9 = arith.constant 0.000000e+00 : f32
    %25 = vector.broadcast %cst_9 : f32 to vector<10x10x128xf32>
    %26 = arith.select %24, %11, %25 : vector<10x10x128xi1>, vector<10x10x128xf32>
    %27 = arith.truncf %26 : vector<10x10x128xf32> to vector<10x10x128xbf16>
    %c0_10 = arith.constant 0 : index
    %c0_11 = arith.constant 0 : index
    %28 = vector.load %arg5[%c0_10, %c0_11] : memref<1x128xf32, #tpu.memory_space<vmem>>, vector<1x128xf32>
    %29 = vector.shape_cast %28 : vector<1x128xf32> to vector<1x128xf32>
    %30 = vector.broadcast %29 : vector<1x128xf32> to vector<64x128xf32>
    %31 = vector.extract_strided_slice %27 {offsets = [0, 0, 0], sizes = [8, 8, 128], strides = [1, 1, 1]} : vector<10x10x128xbf16> to vector<8x8x128xbf16>
    %32 = vector.shape_cast %31 : vector<8x8x128xbf16> to vector<64x128xbf16>
    %c0_12 = arith.constant 0 : index
    %c0_13 = arith.constant 0 : index
    %c0_14 = arith.constant 0 : index
    %33 = vector.load %arg4[%c0_12, %c0_13, %c0_14] : memref<9x128x128xbf16, #tpu.memory_space<vmem>>, vector<1x128x128xbf16>
    %34 = vector.shape_cast %33 : vector<1x128x128xbf16> to vector<128x128xbf16>
    %cst_15 = arith.constant dense<0.000000e+00> : vector<64x128xf32>
    %35 = tpu.matmul %32, %34, %cst_15 {dimension_numbers = #tpu.dot_dimension_numbers<[1], [0], [0], [1], [0, 0, 1, 1], [], []>} : vector<64x128xbf16>, vector<128x128xbf16>, vector<64x128xf32> -> vector<64x128xf32>
    %36 = arith.addf %30, %35 : vector<64x128xf32>
    %37 = vector.extract_strided_slice %27 {offsets = [0, 1, 0], sizes = [8, 8, 128], strides = [1, 1, 1]} : vector<10x10x128xbf16> to vector<8x8x128xbf16>
    %38 = vector.shape_cast %37 : vector<8x8x128xbf16> to vector<64x128xbf16>
    %c1 = arith.constant 1 : index
    %c0_16 = arith.constant 0 : index
    %c0_17 = arith.constant 0 : index
    %39 = vector.load %arg4[%c1, %c0_16, %c0_17] : memref<9x128x128xbf16, #tpu.memory_space<vmem>>, vector<1x128x128xbf16>
    %40 = vector.shape_cast %39 : vector<1x128x128xbf16> to vector<128x128xbf16>
    %cst_18 = arith.constant dense<0.000000e+00> : vector<64x128xf32>
    %41 = tpu.matmul %38, %40, %cst_18 {dimension_numbers = #tpu.dot_dimension_numbers<[1], [0], [0], [1], [0, 0, 1, 1], [], []>} : vector<64x128xbf16>, vector<128x128xbf16>, vector<64x128xf32> -> vector<64x128xf32>
    %42 = arith.addf %36, %41 : vector<64x128xf32>
    %43 = vector.extract_strided_slice %27 {offsets = [0, 2, 0], sizes = [8, 8, 128], strides = [1, 1, 1]} : vector<10x10x128xbf16> to vector<8x8x128xbf16>
    %44 = vector.shape_cast %43 : vector<8x8x128xbf16> to vector<64x128xbf16>
    %c2 = arith.constant 2 : index
    %c0_19 = arith.constant 0 : index
    %c0_20 = arith.constant 0 : index
    %45 = vector.load %arg4[%c2, %c0_19, %c0_20] : memref<9x128x128xbf16, #tpu.memory_space<vmem>>, vector<1x128x128xbf16>
    %46 = vector.shape_cast %45 : vector<1x128x128xbf16> to vector<128x128xbf16>
    %cst_21 = arith.constant dense<0.000000e+00> : vector<64x128xf32>
    %47 = tpu.matmul %44, %46, %cst_21 {dimension_numbers = #tpu.dot_dimension_numbers<[1], [0], [0], [1], [0, 0, 1, 1], [], []>} : vector<64x128xbf16>, vector<128x128xbf16>, vector<64x128xf32> -> vector<64x128xf32>
    %48 = arith.addf %42, %47 : vector<64x128xf32>
    %49 = vector.extract_strided_slice %27 {offsets = [1, 0, 0], sizes = [8, 8, 128], strides = [1, 1, 1]} : vector<10x10x128xbf16> to vector<8x8x128xbf16>
    %50 = vector.shape_cast %49 : vector<8x8x128xbf16> to vector<64x128xbf16>
    %c3 = arith.constant 3 : index
    %c0_22 = arith.constant 0 : index
    %c0_23 = arith.constant 0 : index
    %51 = vector.load %arg4[%c3, %c0_22, %c0_23] : memref<9x128x128xbf16, #tpu.memory_space<vmem>>, vector<1x128x128xbf16>
    %52 = vector.shape_cast %51 : vector<1x128x128xbf16> to vector<128x128xbf16>
    %cst_24 = arith.constant dense<0.000000e+00> : vector<64x128xf32>
    %53 = tpu.matmul %50, %52, %cst_24 {dimension_numbers = #tpu.dot_dimension_numbers<[1], [0], [0], [1], [0, 0, 1, 1], [], []>} : vector<64x128xbf16>, vector<128x128xbf16>, vector<64x128xf32> -> vector<64x128xf32>
    %54 = arith.addf %48, %53 : vector<64x128xf32>
    %55 = vector.extract_strided_slice %27 {offsets = [1, 1, 0], sizes = [8, 8, 128], strides = [1, 1, 1]} : vector<10x10x128xbf16> to vector<8x8x128xbf16>
    %56 = vector.shape_cast %55 : vector<8x8x128xbf16> to vector<64x128xbf16>
    %c4 = arith.constant 4 : index
    %c0_25 = arith.constant 0 : index
    %c0_26 = arith.constant 0 : index
    %57 = vector.load %arg4[%c4, %c0_25, %c0_26] : memref<9x128x128xbf16, #tpu.memory_space<vmem>>, vector<1x128x128xbf16>
    %58 = vector.shape_cast %57 : vector<1x128x128xbf16> to vector<128x128xbf16>
    %cst_27 = arith.constant dense<0.000000e+00> : vector<64x128xf32>
    %59 = tpu.matmul %56, %58, %cst_27 {dimension_numbers = #tpu.dot_dimension_numbers<[1], [0], [0], [1], [0, 0, 1, 1], [], []>} : vector<64x128xbf16>, vector<128x128xbf16>, vector<64x128xf32> -> vector<64x128xf32>
    %60 = arith.addf %54, %59 : vector<64x128xf32>
    %61 = vector.extract_strided_slice %27 {offsets = [1, 2, 0], sizes = [8, 8, 128], strides = [1, 1, 1]} : vector<10x10x128xbf16> to vector<8x8x128xbf16>
    %62 = vector.shape_cast %61 : vector<8x8x128xbf16> to vector<64x128xbf16>
    %c5 = arith.constant 5 : index
    %c0_28 = arith.constant 0 : index
    %c0_29 = arith.constant 0 : index
    %63 = vector.load %arg4[%c5, %c0_28, %c0_29] : memref<9x128x128xbf16, #tpu.memory_space<vmem>>, vector<1x128x128xbf16>
    %64 = vector.shape_cast %63 : vector<1x128x128xbf16> to vector<128x128xbf16>
    %cst_30 = arith.constant dense<0.000000e+00> : vector<64x128xf32>
    %65 = tpu.matmul %62, %64, %cst_30 {dimension_numbers = #tpu.dot_dimension_numbers<[1], [0], [0], [1], [0, 0, 1, 1], [], []>} : vector<64x128xbf16>, vector<128x128xbf16>, vector<64x128xf32> -> vector<64x128xf32>
    %66 = arith.addf %60, %65 : vector<64x128xf32>
    %67 = vector.extract_strided_slice %27 {offsets = [2, 0, 0], sizes = [8, 8, 128], strides = [1, 1, 1]} : vector<10x10x128xbf16> to vector<8x8x128xbf16>
    %68 = vector.shape_cast %67 : vector<8x8x128xbf16> to vector<64x128xbf16>
    %c6 = arith.constant 6 : index
    %c0_31 = arith.constant 0 : index
    %c0_32 = arith.constant 0 : index
    %69 = vector.load %arg4[%c6, %c0_31, %c0_32] : memref<9x128x128xbf16, #tpu.memory_space<vmem>>, vector<1x128x128xbf16>
    %70 = vector.shape_cast %69 : vector<1x128x128xbf16> to vector<128x128xbf16>
    %cst_33 = arith.constant dense<0.000000e+00> : vector<64x128xf32>
    %71 = tpu.matmul %68, %70, %cst_33 {dimension_numbers = #tpu.dot_dimension_numbers<[1], [0], [0], [1], [0, 0, 1, 1], [], []>} : vector<64x128xbf16>, vector<128x128xbf16>, vector<64x128xf32> -> vector<64x128xf32>
    %72 = arith.addf %66, %71 : vector<64x128xf32>
    %73 = vector.extract_strided_slice %27 {offsets = [2, 1, 0], sizes = [8, 8, 128], strides = [1, 1, 1]} : vector<10x10x128xbf16> to vector<8x8x128xbf16>
    %74 = vector.shape_cast %73 : vector<8x8x128xbf16> to vector<64x128xbf16>
    %c7 = arith.constant 7 : index
    %c0_34 = arith.constant 0 : index
    %c0_35 = arith.constant 0 : index
    %75 = vector.load %arg4[%c7, %c0_34, %c0_35] : memref<9x128x128xbf16, #tpu.memory_space<vmem>>, vector<1x128x128xbf16>
    %76 = vector.shape_cast %75 : vector<1x128x128xbf16> to vector<128x128xbf16>
    %cst_36 = arith.constant dense<0.000000e+00> : vector<64x128xf32>
    %77 = tpu.matmul %74, %76, %cst_36 {dimension_numbers = #tpu.dot_dimension_numbers<[1], [0], [0], [1], [0, 0, 1, 1], [], []>} : vector<64x128xbf16>, vector<128x128xbf16>, vector<64x128xf32> -> vector<64x128xf32>
    %78 = arith.addf %72, %77 : vector<64x128xf32>
    %79 = vector.extract_strided_slice %27 {offsets = [2, 2, 0], sizes = [8, 8, 128], strides = [1, 1, 1]} : vector<10x10x128xbf16> to vector<8x8x128xbf16>
    %80 = vector.shape_cast %79 : vector<8x8x128xbf16> to vector<64x128xbf16>
    %c8 = arith.constant 8 : index
    %c0_37 = arith.constant 0 : index
    %c0_38 = arith.constant 0 : index
    %81 = vector.load %arg4[%c8, %c0_37, %c0_38] : memref<9x128x128xbf16, #tpu.memory_space<vmem>>, vector<1x128x128xbf16>
    %82 = vector.shape_cast %81 : vector<1x128x128xbf16> to vector<128x128xbf16>
    %cst_39 = arith.constant dense<0.000000e+00> : vector<64x128xf32>
    %83 = tpu.matmul %80, %82, %cst_39 {dimension_numbers = #tpu.dot_dimension_numbers<[1], [0], [0], [1], [0, 0, 1, 1], [], []>} : vector<64x128xbf16>, vector<128x128xbf16>, vector<64x128xf32> -> vector<64x128xf32>
    %84 = arith.addf %78, %83 : vector<64x128xf32>
    %85 = vector.shape_cast %84 : vector<64x128xf32> to vector<8x8x128xf32>
    %86 = tpu.iota {dimensions = array<i32: 2>} : vector<8x8x128xi32>
    %c13_i32 = arith.constant 13 : i32
    %87 = vector.broadcast %c13_i32 : i32 to vector<8x8x128xi32>
    %88 = arith.cmpi sge, %86, %87 : vector<8x8x128xi32>
    %c23_i32 = arith.constant 23 : i32
    %89 = vector.broadcast %c23_i32 : i32 to vector<8x8x128xi32>
    %90 = arith.cmpi slt, %86, %89 : vector<8x8x128xi32>
    %91 = arith.andi %88, %90 : vector<8x8x128xi1>
    %92 = vector.extract_strided_slice %1 {offsets = [1, 1, 0], sizes = [8, 8, 128], strides = [1, 1, 1]} : vector<10x10x128xf32> to vector<8x8x128xf32>
    %93 = arith.select %91, %85, %92 : vector<8x8x128xi1>, vector<8x8x128xf32>
    %c0_40 = arith.constant 0 : index
    %c0_41 = arith.constant 0 : index
    %c0_42 = arith.constant 0 : index
    %c0_43 = arith.constant 0 : index
    %94 = vector.load %arg6[%c0_40, %c0_41, %c0_42, %c0_43] : memref<1x10x10x128xf32, #tpu.memory_space<vmem>>, vector<1x10x10x128xf32>
    tpu.vector_store %arg6[%c0_40, %c0_41, %c0_42, %c0_43], %0 {strides = array<i32>} : memref<1x10x10x128xf32, #tpu.memory_space<vmem>>, vector<1x10x10x128xf32>,
    %95 = vector.shape_cast %93 : vector<8x8x128xf32> to vector<1x8x8x128xf32>
    %c0_44 = arith.constant 0 : index
    %c1_45 = arith.constant 1 : index
    %c1_46 = arith.constant 1 : index
    %c0_47 = arith.constant 0 : index
    %96 = vector.load %arg6[%c0_44, %c1_45, %c1_46, %c0_47] : memref<1x10x10x128xf32, #tpu.memory_space<vmem>>, vector<1x8x8x128xf32>
    tpu.vector_store %arg6[%c0_44, %c1_45, %c1_46, %c0_47], %95 {strides = array<i32>} : memref<1x10x10x128xf32, #tpu.memory_space<vmem>>, vector<1x8x8x128xf32>,
    %97 = vector.shape_cast %93 : vector<8x8x128xf32> to vector<64x128xf32>
    %cst_48 = arith.constant dense<0.000000e+00> : vector<128xf32>
    %98 = vector.multi_reduction <add>, %97, %cst_48 [0] : vector<64x128xf32> to vector<128xf32>
    %99 = vector.shape_cast %98 : vector<128xf32> to vector<1x128xf32>
    %100 = arith.mulf %97, %97 : vector<64x128xf32>
    %cst_49 = arith.constant dense<0.000000e+00> : vector<128xf32>
    %101 = vector.multi_reduction <add>, %100, %cst_49 [0] : vector<64x128xf32> to vector<128xf32>
    %102 = vector.shape_cast %101 : vector<128xf32> to vector<1x128xf32>
    %103 = tpu.concatenate %99, %102 in 0 : vector<1x128xf32>, vector<1x128xf32> -> vector<2x128xf32>
    %104 = vector.shape_cast %103 : vector<2x128xf32> to vector<1x2x128xf32>
    %c0_50 = arith.constant 0 : index
    %c0_51 = arith.constant 0 : index
    %c0_52 = arith.constant 0 : index
    %105 = vector.load %arg7[%c0_50, %c0_51, %c0_52] : memref<1x2x128xf32, #tpu.memory_space<vmem>>, vector<1x2x128xf32>
    tpu.vector_store %arg7[%c0_50, %c0_51, %c0_52], %104 {strides = array<i32>} : memref<1x2x128xf32, #tpu.memory_space<vmem>>, vector<1x2x128xf32>,
    return
  }
  func.func @transform_0(%arg0: i32) -> (i32, i32, i32, i32) {
    %c0_i32 = arith.constant 0 : i32
    %c0_i32_0 = arith.constant 0 : i32
    %c0_i32_1 = arith.constant 0 : i32
    %c0_i32_2 = arith.constant 0 : i32
    return %arg0, %c0_i32, %c0_i32_0, %c0_i32_1 : i32, i32, i32, i32
  }
  func.func @transform_1(%arg0: i32) -> (i32, i32) {
    %c0_i32 = arith.constant 0 : i32
    %c0_i32_0 = arith.constant 0 : i32
    %c0_i32_1 = arith.constant 0 : i32
    return %c0_i32, %c0_i32_0 : i32, i32
  }
  func.func @transform_2(%arg0: i32) -> (i32, i32) {
    %c0_i32 = arith.constant 0 : i32
    %c0_i32_0 = arith.constant 0 : i32
    %c0_i32_1 = arith.constant 0 : i32
    return %c0_i32, %c0_i32_0 : i32, i32
  }
  func.func @transform_3(%arg0: i32) -> (i32, i32, i32) {
    %c0_i32 = arith.constant 0 : i32
    %c0_i32_0 = arith.constant 0 : i32
    %c0_i32_1 = arith.constant 0 : i32
    %c0_i32_2 = arith.constant 0 : i32
    return %c0_i32, %c0_i32_0, %c0_i32_1 : i32, i32, i32
  }
  func.func @transform_4(%arg0: i32) -> (i32, i32) {
    %c0_i32 = arith.constant 0 : i32
    %c0_i32_0 = arith.constant 0 : i32
    %c0_i32_1 = arith.constant 0 : i32
    return %c0_i32, %c0_i32_0 : i32, i32
  }
  func.func @transform_5(%arg0: i32) -> (i32, i32, i32, i32) {
    %c0_i32 = arith.constant 0 : i32
    %c0_i32_0 = arith.constant 0 : i32
    %c0_i32_1 = arith.constant 0 : i32
    %c0_i32_2 = arith.constant 0 : i32
    return %arg0, %c0_i32, %c0_i32_0, %c0_i32_1 : i32, i32, i32, i32
  }
  func.func @transform_6(%arg0: i32) -> (i32, i32, i32) {
    %c0_i32 = arith.constant 0 : i32
    %c0_i32_0 = arith.constant 0 : i32
    %c0_i32_1 = arith.constant 0 : i32
    return %arg0, %c0_i32, %c0_i32_0 : i32, i32, i32
  }
}

</mosaic_0001>

<bundles_post_ra>
// kernel: dense_block_forward.3
= control target key start
LH: loop header
LB: loop body
LE: loop exit
PB: predicated region body
PF: predicated region fallthrough
CT: control target
= control target key end

     0   :  { %s1148_s6 = smov 0   ;;  %s1588_s0 = inlined_call_operand.vmem [shape: f32[4,10,10,128], index: 0, kind: input, shape index: {}]   ;;  %s1589_s1 = inlined_call_operand.vmem [shape: f32[4,2,128], index: 1, kind: output, shape index: {}]  }
   0x1 LB: > { %s1090_s7 = sadd.s32 4294967295, %s1135_s6   ;;  %p1094_p0 = scmp.ge.s32.totalorder %s1135_s6, 1  ;;  %s1135_s6 = sphi %s1148_s6, %s11_s6  }
   0x2   : > { %p87_p1 = scmp.lt.s32.totalorder %s1135_s6, 5 }
   0x4   : > { %p88_p2 = pnand %p1094_p0, %p87_p1 }
   0x6   : > { %91 = sbr.rel (%p88_p2) target bundleno = 108 (0x6c), region = 24 }
   0xd   : > { %p106_p3 = scmp.lt.s32.totalorder %s1090_s7, 3  ;;  %v1137_v0 = vmov 1983009808   ;;  %v159_v2 = vlaneseq  ;;  %vm681_vm0 = vcmask 1043456   ;;  %vm1034_vm1 = vcmask 1040384  }
   0xe   : > { %v157_v1 = vunpack.c.l.s4 %v1137_v0 }
   0xf   : > { %s1630_s7 = smov (!%p106_p3, %s1090_s7), 3  ;;  %v160_v4 = vshrl.u32 %v159_v2, 7 }
  0x10   : > { %s1109_s8 = smul.u32 160, %s1630_s7  ;;  %v158_v3 = vunpack.c.0.s8 %v157_v1  ;;  %s1096_s12 = sshll.u32 %s1630_s7, 1 }
  0x11   : > { %s114_s15 = scalar_lea.vmem %s1589_s1, %s1096_s12 }
  0x12   : > { %s1162_s11 = scalar_lea.vmem %s1588_s0, %s1109_s8  ;;  %v1165_v6 = vsub.s32 %v158_v3, %v160_v4 }
  0x13   : > { %v115_v5 = vld [vmem:[%s1162_s11] sm:$0xff]  ;;  %v117_v7 = vld [vmem:[%s1162_s11 + $0x10] sm:$0xff]  ;;  %v1216_v30 = vld.sshfl [vmem:[%s1162_s11 + $0x8] sm:$0x3 pattern:$0x76325410] }
  0x14   : > { %v119_v8 = vld [vmem:[%s1162_s11 + $0x20] sm:$0xff]  ;;  %v155_v9 = vcombine.high %v115_v5, %v115_v5  ;;  %v121_v10 = vld [vmem:[%s1162_s11 + $0x30] sm:$0xff]  ;;  %v1171_v11 = vrot.slane %v115_v5, %v1165_v6  ;;  %v179_v12 = vcombine.high %v117_v7, %v117_v7  ;;  %v1178_v17 = vrot.slane %v117_v7, %v1165_v6  ;;  %v1241_v41 = vld.sshfl [vmem:[%s1162_s11 + $0x18] sm:$0x3 pattern:$0x76325410] }
  0x15   : > { %v203_v13 = vcombine.high %v119_v8, %v119_v8  ;;  %v227_v15 = vcombine.high %v121_v10, %v121_v10  ;;  %v123_v16 = vld [vmem:[%s1162_s11 + $0x40] sm:$0xff]  ;;  %v1181_v18 = vrot.slane %v119_v8, %v1165_v6  ;;  %v1184_v19 = vrot.slane %v121_v10, %v1165_v6  ;;  %v125_v20 = vld [vmem:[%s1162_s11 + $0x50] sm:$0xff]  ;;  %v1267_v52 = vld.sshfl [vmem:[%s1162_s11 + $0x28] sm:$0x3 pattern:$0x76325410] }
  0x16   : > { %v1174_v14 = vrot.slane %v155_v9, %v1165_v6  ;;  %v1189_v21 = vcombine.high %v1171_v11, %v1171_v11  ;;  %v1192_v22 = vrot.slane %v179_v12, %v1165_v6  ;;  %v251_v26 = vcombine.high %v123_v16, %v123_v16  ;;  %v127_v31 = vld [vmem:[%s1162_s11 + $0x60] sm:$0xff]  ;;  %v129_v36 = vld [vmem:[%s1162_s11 + $0x70] sm:$0xff]  ;;  %v1288_v1 = vld.sshfl [vmem:[%s1162_s11 + $0x38] sm:$0x3 pattern:$0x76325410] }
  0x17   : > { %v1195_v23 = vrot.slane %v203_v13, %v1165_v6  ;;  %v1202_v25 = vrot.slane %v227_v15, %v1165_v6  ;;  %v1205_v27 = vrot.slane %v123_v16, %v1165_v6  ;;  %v1209_v28 = vcombine.high %v1178_v17, %v1178_v17  ;;  %v131_v46 = vld [vmem:[%s1162_s11 + $0x80] sm:$0xff]  ;;  %v133_v47 = vld [vmem:[%s1162_s11 + $0x90] sm:$0xff] }
  0x18   : > { %v1199_v24 = vcombine.high %v1174_v14, %v1174_v14  ;;  %v1213_v29 = vcombine.high %v1181_v18, %v1181_v18  ;;  %v1221_v32 = vcombine.high %v1184_v19, %v1184_v19  ;;  %v275_v33 = vcombine.high %v125_v20, %v125_v20 }
  0x19   : > { %v445_v34 = vcombine.low %v1171_v11, %v1189_v21  ;;  %v1230_v37 = vcombine.high %v1192_v22, %v1192_v22  ;;  %v1234_v38 = vcombine.high %v1195_v23, %v1195_v23  ;;  %v462_v39 = vcombine.low %v1216_v30, %v1178_v17 }
  0x1a   : > { %v446_v35 = vcombine.low %v1174_v14, %v1199_v24  ;;  %v463_v40 = vcombine.low %v1209_v28, %v1192_v22  ;;  %v1245_v42 = vcombine.high %v1202_v25, %v1202_v25  ;;  %v1248_v43 = vrot.slane %v251_v26, %v1165_v6 }
  0x1b   : > { %v1252_v44 = vcombine.high %v1205_v27, %v1205_v27  ;;  %v1255_v45 = vrot.slane %v125_v20, %v1165_v6  ;;  %v299_v48 = vcombine.high %v127_v31, %v127_v31  ;;  %v1260_v49 = vrot.slane %v127_v31, %v1165_v6 }
  0x1c   : > { %v479_v50 = vcombine.low %v1230_v37, %v1241_v41  ;;  %v480_v51 = vcombine.low %v1181_v18, %v1213_v29  ;;  %v1270_v53 = vrot.slane %v275_v33, %v1165_v6  ;;  %v323_v54 = vcombine.high %v129_v36, %v129_v36 }
  0x1d   : > { %1603 = vst [vmem:[#allocation2_spill] sm:$0xff] %v1255_v45  ;;  %v453_v55 = vrot.slane %v445_v34, %v1165_v6  ;;  %v460_v56 = vrot.slane %v446_v35, %v1165_v6  ;;  %v470_v57 = vrot.slane %v462_v39, %v1165_v6  ;;  %v477_v58 = vrot.slane %v463_v40, %v1165_v6 }
  0x1e   : > { %v496_v59 = vcombine.low %v1195_v23, %v1234_v38  ;;  %v497_v60 = vcombine.low %v1267_v52, %v1184_v19  ;;  %v1282_v61 = vcombine.high %v1255_v45, %v1255_v45  ;;  %v1285_v62 = vrot.slane %v129_v36, %v1165_v6 }
  0x1f   : > { %v347_v63 = vcombine.high %v131_v46, %v131_v46  ;;  %v371_v0 = vcombine.high %v133_v47, %v133_v47  ;;  %v1292_v2 = vcombine.high %v1248_v43, %v1248_v43  ;;  %v1295_v3 = vrot.slane %v299_v48, %v1165_v6 }
  0x20   : > { %1604 = vst [vmem:[#allocation3_spill] sm:$0xff] %v1285_v62  ;;  %v487_v4 = vrot.slane %v479_v50, %v1165_v6  ;;  %v494_v5 = vrot.slane %v480_v51, %v1165_v6  ;;  %v1300_v7 = vrot.slane %v323_v54, %v1165_v6  ;;  %v1303_v8 = vrot.slane %v131_v46, %v1165_v6  ;;  %v1343_v50 = vld.sshfl [vmem:[%s1162_s11 + $0x48] sm:$0x3 pattern:$0x76325410] }
  0x21   : > { %1605 = vst [vmem:[#allocation4_spill] sm:$0xff] %v1295_v3  ;;  %v513_v9 = vcombine.low %v1221_v32, %v1202_v25  ;;  %v514_v10 = vcombine.low %v1245_v42, %v1288_v1  ;;  %v461_v12 = vcombine.low %v453_v55, %v460_v56  ;;  %v478_v13 = vcombine.low %v470_v57, %v477_v58  ;;  %v1354_v57 = vld.sshfl [vmem:[%s1162_s11 + $0x58] sm:$0x3 pattern:$0x76325410] }
  0x22   : > { %1606 = vst [vmem:[#allocation5_spill] sm:$0xff] %v1300_v7  ;;  %1607 = vst [vmem:[#allocation6_spill] sm:$0xff] %v1303_v8  ;;  %v504_v15 = vrot.slane %v496_v59, %v1165_v6  ;;  %v511_v16 = vrot.slane %v497_v60, %v1165_v6  ;;  %v1313_v20 = vcombine.high %v1260_v49, %v1260_v49 }
  0x23   : > { %v1316_v26 = vrot.slane %v347_v63, %v1165_v6  ;;  %v1319_v31 = vrot.slane %v133_v47, %v1165_v6  ;;  %v1322_v33 = vrot.slane %v371_v0, %v1165_v6  ;;  %v1326_v34 = vcombine.high %v1270_v53, %v1270_v53  ;;  %1610 = vst [vmem:[#allocation9_spill] sm:$0xff] %v1343_v50  ;;  %v1371_v0 = vld.sshfl [vmem:[%s1162_s11 + $0x68] sm:$0x3 pattern:$0x76325410] }
  0x24   : > { %v495_v35 = vcombine.low %v487_v4, %v494_v5  ;;  %v530_v36 = vcombine.low %v1205_v27, %v1252_v44  ;;  %v531_v39 = vcombine.low %v1248_v43, %v1292_v2  ;;  %v1334_v40 = vcombine.high %v1295_v3, %v1295_v3  ;;  %1613 = vst [vmem:[#allocation12_spill] sm:$0xff] %v1371_v0 }
  0x25   : > { %1608 = vst [vmem:[#allocation7_spill] sm:$0xff] %v1319_v31  ;;  %v1338_v46 = vcombine.high %v1285_v62, %v1285_v62  ;;  %v521_v47 = vrot.slane %v513_v9, %v1165_v6  ;;  %v528_v48 = vrot.slane %v514_v10, %v1165_v6  ;;  %v1347_v51 = vcombine.high %v1300_v7, %v1300_v7 }
  0x26   : > { %1609 = vst [vmem:[#allocation8_spill] sm:$0xff] %v1334_v40  ;;  %v1351_v54 = vcombine.high %v1303_v8, %v1303_v8  ;;  %v512_v55 = vcombine.low %v504_v15, %v511_v16  ;;  %v670_v56 = vadd.f32 %v478_v13, %v461_v12  ;;  %v1358_v58 = vcombine.high %v1316_v26, %v1316_v26  ;;  %v1378_v12 = vld.sshfl [vmem:[%s1162_s11 + $0x78] sm:$0x3 pattern:$0x76325410] }
  0x27   : > { %v1362_v59 = vcombine.high %v1319_v31, %v1319_v31  ;;  %v1366_v60 = vcombine.high %v1322_v33, %v1322_v33  ;;  %v547_v63 = vcombine.low %v1343_v50, %v1255_v45  ;;  %v538_v4 = vrot.slane %v530_v36, %v1165_v6  ;;  %1614 = vst [vmem:[#allocation13_spill] sm:$0xff] %v1378_v12  ;;  %v1387_v50 = vld.sshfl [vmem:[%s1162_s11 + $0x88] sm:$0x3 pattern:$0x76325410] }
  0x28   : > { %1611 = vst [vmem:[#allocation10_spill] sm:$0xff] %v1351_v54  ;;  %1612 = vst [vmem:[#allocation11_spill] sm:$0xff] %v1358_v58  ;;  %v545_v5 = vrot.slane %v531_v39, %v1165_v6  ;;  %v548_v9 = vcombine.low %v1282_v61, %v1270_v53  ;;  %v671_v10 = vadd.f32 %v670_v56, %v495_v35 }
  0x29   : > { %v529_v13 = vcombine.low %v521_v47, %v528_v48  ;;  %v564_v15 = vcombine.low %v1326_v34, %v1354_v57  ;;  %v565_v16 = vcombine.low %v1260_v49, %v1313_v20  ;;  %v581_v45 = vcombine.low %v1295_v3, %v1334_v40  ;;  %1615 = vst [vmem:[#allocation14_spill] sm:$0xff] %v1387_v50  ;;  %v1396_v48 = vld.sshfl [vmem:[%s1162_s11 + $0x98] sm:$0x3 pattern:$0x76325410] }
  0x2a   : > { %v582_v36 = vcombine.low %v1371_v0, %v1285_v62  ;;  %v598_v35 = vcombine.low %v1338_v46, %v1300_v7  ;;  %v599_v39 = vcombine.low %v1347_v51, %v1378_v12  ;;  %v672_v47 = vadd.f32 %v671_v10, %v512_v55 }
  0x2b   : > { %v615_v56 = vcombine.low %v1303_v8, %v1351_v54  ;;  %v616_v40 = vcombine.low %v1316_v26, %v1358_v58  ;;  %v632_v3 = vcombine.low %v1387_v50, %v1319_v31  ;;  %v633_v62 = vcombine.low %v1362_v59, %v1322_v33 }
  0x2c   : > { %v546_v0 = vcombine.low %v538_v4, %v545_v5  ;;  %v555_v7 = vrot.slane %v547_v63, %v1165_v6  ;;  %v649_v55 = vcombine.low %v1366_v60, %v1396_v48  ;;  %v562_v10 = vrot.slane %v548_v9, %v1165_v6 }
  0x2d   : > { %v572_v12 = vrot.slane %v564_v15, %v1165_v6  ;;  %v579_v54 = vrot.slane %v565_v16, %v1165_v6  ;;  %v673_v8 = vadd.f32 %v672_v47, %v529_v13  ;;  %v589_v58 = vrot.slane %v581_v45, %v1165_v6 }
  0x2e   : > { %v596_v31 = vrot.slane %v582_v36, %v1165_v6  ;;  %v1415_v50 = vrot.slane %v598_v35, %v1165_v6  ;;  %v1418_v4 = vrot.slane %v599_v39, %v1165_v6  ;;  %v1421_v63 = vrot.slane %v615_v56, %v1165_v6 }
  0x2f   : > { %v1424_v5 = vrot.slane %v616_v40, %v1165_v6  ;;  %v1427_v9 = vrot.slane %v632_v3, %v1165_v6  ;;  %v1430_v13 = vrot.slane %v633_v62, %v1165_v6  ;;  %v656_v45 = vrot.slane %v649_v55, %v1165_v6 }
  0x30   : > { %v563_v15 = vcombine.low %v555_v7, %v562_v10  ;;  %v580_v16 = vcombine.low %v572_v12, %v579_v54  ;;  %v674_v36 = vadd.f32 %v673_v8, %v546_v0  ;;  %v597_v35 = vcombine.low %v589_v58, %v596_v31 }
  0x31   : > { %v614_v39 = vcombine.low %v1415_v50, %v1418_v4  ;;  %v690_v40 = vmul.f32 %v1171_v11, %v1171_v11  ;;  %v691_v3 = vmul.f32 %v1189_v21, %v1189_v21  ;;  %v631_v62 = vcombine.low %v1421_v63, %v1424_v5  ;;  %v1626_v4 = vld [vmem:[#allocation11_spill] sm:$0xff] }
  0x32   : > { %v648_v47 = vcombine.low %v1427_v9, %v1430_v13  ;;  %v692_v7 = vmul.f32 %v1174_v14, %v1174_v14  ;;  %v693_v8 = vmul.f32 %v1199_v24, %v1199_v24  ;;  %v1448_v31 = vsel %vm681_vm0, %v656_v45, 0.0 }
  0x33   : > { %v694_v11 = vmul.f32 %v1216_v30, %v1216_v30  ;;  %v695_v21 = vmul.f32 %v1178_v17, %v1178_v17  ;;  %v696_v54 = vmul.f32 %v1209_v28, %v1209_v28  ;;  %v675_v58 = vadd.f32 %v674_v36, %v563_v15  ;;  %v1617_v15 = vld [vmem:[#allocation2_spill] sm:$0xff] }
  0x34   : > { %v697_v0 = vmul.f32 %v1192_v22, %v1192_v22  ;;  %v698_v14 = vmul.f32 %v1230_v37, %v1230_v37  ;;  %v699_v24 = vmul.f32 %v1241_v41, %v1241_v41  ;;  %v700_v12 = vmul.f32 %v1181_v18, %v1181_v18 }
  0x35   : > { %v701_v30 = vmul.f32 %v1213_v29, %v1213_v29  ;;  %v702_v17 = vmul.f32 %v1195_v23, %v1195_v23  ;;  %v703_v28 = vmul.f32 %v1234_v38, %v1234_v38  ;;  %v704_v22 = vmul.f32 %v1267_v52, %v1267_v52 }
  0x36   : > { %v705_v37 = vmul.f32 %v1184_v19, %v1184_v19  ;;  %v706_v41 = vmul.f32 %v1221_v32, %v1221_v32  ;;  %v707_v18 = vmul.f32 %v1202_v25, %v1202_v25  ;;  %v708_v29 = vmul.f32 %v1245_v42, %v1245_v42  ;;  %v1616_v25 = vld [vmem:[#allocation9_spill] sm:$0xff] }
  0x37   : > { %v709_v23 = vmul.f32 %v1288_v1, %v1288_v1  ;;  %v710_v38 = vmul.f32 %v1205_v27, %v1205_v27  ;;  %v711_v52 = vmul.f32 %v1252_v44, %v1252_v44  ;;  %v676_v56 = vadd.f32 %v675_v58, %v580_v16  ;;  %v1620_v58 = vld [vmem:[#allocation12_spill] sm:$0xff] }
  0x38   : > { %v712_v19 = vmul.f32 %v1248_v43, %v1248_v43  ;;  %v713_v32 = vmul.f32 %v1292_v2, %v1292_v2  ;;  %v714_v55 = vmul.f32 %v1616_v25, %v1616_v25  ;;  %v790_v42 = vcombine.low %v690_v40, %v691_v3  ;;  %v1618_v3 = vld [vmem:[#allocation4_spill] sm:$0xff] }
  0x39   : > { %v791_v10 = vcombine.low %v692_v7, %v693_v8  ;;  %v807_v45 = vcombine.low %v694_v11, %v695_v21  ;;  %v808_v1 = vcombine.low %v696_v54, %v697_v0  ;;  %v715_v27 = vmul.f32 %v1617_v15, %v1617_v15  ;;  %v1619_v8 = vld [vmem:[#allocation8_spill] sm:$0xff]  ;;  %v1621_v0 = vld [vmem:[#allocation3_spill] sm:$0xff] }
  0x3a   : > { %v716_v44 = vmul.f32 %v1282_v61, %v1282_v61  ;;  %v717_v16 = vmul.f32 %v1270_v53, %v1270_v53  ;;  %v718_v43 = vmul.f32 %v1326_v34, %v1326_v34  ;;  %v719_v2 = vmul.f32 %v1354_v57, %v1354_v57 }
  0x3b   : > { %v720_v36 = vmul.f32 %v1260_v49, %v1260_v49  ;;  %v721_v40 = vmul.f32 %v1313_v20, %v1313_v20  ;;  %v1508_v7 = vmul.f32 %v1618_v3, %v1618_v3  ;;  %v677_v61 = vadd.f32 %v676_v56, %v597_v35 }
  0x3c   : > { %v723_v53 = vmul.f32 %v1619_v8, %v1619_v8  ;;  %v824_v11 = vcombine.low %v698_v14, %v699_v24  ;;  %v825_v21 = vcombine.low %v700_v12, %v701_v30  ;;  %v798_v34 = vrot.slane %v790_v42, %v1165_v6  ;;  %v1622_v24 = vld [vmem:[#allocation5_spill] sm:$0xff] }
  0x3d   : > { %v805_v57 = vrot.slane %v791_v10, %v1165_v6  ;;  %v815_v54 = vrot.slane %v807_v45, %v1165_v6  ;;  %v822_v49 = vrot.slane %v808_v1, %v1165_v6  ;;  %v724_v20 = vmul.f32 %v1620_v58, %v1620_v58  ;;  %v1623_v42 = vld [vmem:[#allocation13_spill] sm:$0xff] }
  0x3e   : > { %v725_v25 = vmul.f32 %v1621_v0, %v1621_v0  ;;  %v841_v35 = vcombine.low %v702_v17, %v703_v28  ;;  %v842_v56 = vcombine.low %v704_v22, %v705_v37  ;;  %v726_v14 = vmul.f32 %v1338_v46, %v1338_v46  ;;  %v1624_v46 = vld [vmem:[#allocation6_spill] sm:$0xff] }
  0x3f   : > { %v727_v12 = vmul.f32 %v1622_v24, %v1622_v24  ;;  %v728_v30 = vmul.f32 %v1347_v51, %v1347_v51  ;;  %v729_v10 = vmul.f32 %v1623_v42, %v1623_v42  ;;  %v832_v45 = vrot.slane %v824_v11, %v1165_v6  ;;  %v1625_v11 = vld [vmem:[#allocation10_spill] sm:$0xff] }
  0x40   : > { %v839_v1 = vrot.slane %v825_v21, %v1165_v6  ;;  %v858_v15 = vcombine.low %v706_v41, %v707_v18  ;;  %v859_v3 = vcombine.low %v708_v29, %v709_v23  ;;  %v678_v17 = vadd.f32 %v677_v61, %v614_v39 }
  0x41   : > { %v730_v28 = vmul.f32 %v1624_v46, %v1624_v46  ;;  %v806_v22 = vcombine.low %v798_v34, %v805_v57  ;;  %v823_v37 = vcombine.low %v815_v54, %v822_v49  ;;  %v849_v51 = vrot.slane %v841_v35, %v1165_v6 }
  0x42   : > { %v856_v8 = vrot.slane %v842_v56, %v1165_v6  ;;  %v875_v58 = vcombine.low %v710_v38, %v711_v52  ;;  %v876_v0 = vcombine.low %v712_v19, %v713_v32  ;;  %v731_v21 = vmul.f32 %v1625_v11, %v1625_v11  ;;  %v1627_v52 = vld [vmem:[#allocation14_spill] sm:$0xff] }
  0x43   : > { %v732_v41 = vmul.f32 %v1316_v26, %v1316_v26  ;;  %v892_v18 = vcombine.low %v714_v55, %v715_v27  ;;  %v893_v50 = vcombine.low %v716_v44, %v717_v16  ;;  %v733_v39 = vmul.f32 %v1626_v4, %v1626_v4  ;;  %v1628_v16 = vld [vmem:[#allocation7_spill] sm:$0xff] }
  0x44   : > { %v840_v29 = vcombine.low %v832_v45, %v839_v1  ;;  %v866_v23 = vrot.slane %v858_v15, %v1165_v6  ;;  %v873_v61 = vrot.slane %v859_v3, %v1165_v6  ;;  %v679_v38 = vadd.f32 %v678_v17, %v631_v62 }
  0x45   : > { %v734_v19 = vmul.f32 %v1627_v52, %v1627_v52  ;;  %v909_v32 = vcombine.low %v718_v43, %v719_v2  ;;  %v910_v34 = vcombine.low %v720_v36, %v721_v40  ;;  %v857_v26 = vcombine.low %v849_v51, %v856_v8 }
  0x46   : > { %v883_v55 = vrot.slane %v875_v58, %v1165_v6  ;;  %v890_v27 = vrot.slane %v876_v0, %v1165_v6  ;;  %v1015_v44 = vadd.f32 %v823_v37, %v806_v22  ;;  %v735_v57 = vmul.f32 %v1628_v16, %v1628_v16 }
  0x47   : > { %v900_v54 = vrot.slane %v892_v18, %v1165_v6  ;;  %v907_v49 = vrot.slane %v893_v50, %v1165_v6  ;;  %v926_v63 = vcombine.low %v1508_v7, %v723_v53  ;;  %v736_v5 = vmul.f32 %v1362_v59, %v1362_v59 }
  0x48   : > { %v874_v62 = vcombine.low %v866_v23, %v873_v61  ;;  %v927_v43 = vcombine.low %v724_v20, %v725_v25  ;;  %v1016_v2 = vadd.f32 %v1015_v44, %v840_v29  ;;  %v680_v36 = vadd.f32 %v679_v38, %v648_v47 }
  0x49   : > { %v917_v40 = vrot.slane %v909_v32, %v1165_v6  ;;  %v924_v35 = vrot.slane %v910_v34, %v1165_v6  ;;  %v943_v56 = vcombine.low %v726_v14, %v727_v12  ;;  %v737_v24 = vmul.f32 %v1322_v33, %v1322_v33 }
  0x4a   : > { %v891_v42 = vcombine.low %v883_v55, %v890_v27  ;;  %v944_v7 = vcombine.low %v728_v30, %v729_v10  ;;  %v1017_v53 = vadd.f32 %v1016_v2, %v857_v26  ;;  %v738_v59 = vmul.f32 %v1366_v60, %v1366_v60 }
  0x4b   : > { %v908_v20 = vcombine.low %v900_v54, %v907_v49  ;;  %v934_v25 = vrot.slane %v926_v63, %v1165_v6  ;;  %v941_v9 = vrot.slane %v927_v43, %v1165_v6  ;;  %v960_v13 = vcombine.low %v730_v28, %v731_v21 }
  0x4c   : > { %v961_v47 = vcombine.low %v732_v41, %v733_v39  ;;  %v1018_v45 = vadd.f32 %v1017_v53, %v874_v62  ;;  %v683_v1 = vadd.f32 %v1448_v31, %v680_v36  ;;  %v739_v14 = vmul.f32 %v1396_v48, %v1396_v48 }
  0x4d   : > { %v925_v33 = vcombine.low %v917_v40, %v924_v35  ;;  %v951_v12 = vrot.slane %v943_v56, %v1165_v6  ;;  %v958_v30 = vrot.slane %v944_v7, %v1165_v6  ;;  %v977_v10 = vcombine.low %v734_v19, %v735_v57 }
  0x4e   : > { %v978_v60 = vcombine.low %v736_v5, %v737_v24  ;;  %v1019_v15 = vadd.f32 %v1018_v45, %v891_v42  ;;  %v942_v3 = vcombine.low %v934_v25, %v941_v9  ;;  %v968_v17 = vrot.slane %v960_v13, %v1165_v6 }
  0x4f   : > { %v975_v46 = vrot.slane %v961_v47, %v1165_v6  ;;  %v684_v22 = vrot.slane %v683_v1, 4  ;;  %v994_v37 = vcombine.low %v738_v59, %v739_v14  ;;  %v959_v31 = vcombine.low %v951_v12, %v958_v30 }
  0x50   : > { %v1020_v28 = vadd.f32 %v1019_v15, %v908_v20  ;;  %v985_v51 = vrot.slane %v977_v10, %v1165_v6  ;;  %v992_v48 = vrot.slane %v978_v60, %v1165_v6 }
  0x51   : > { %v976_v58 = vcombine.low %v968_v17, %v975_v46  ;;  %v1001_v11 = vrot.slane %v994_v37, %v1165_v6  ;;  %v685_v21 = vadd.f32 %v684_v22, %v683_v1 }
  0x52   : > { %v1021_v8 = vadd.f32 %v1020_v28, %v925_v33  ;;  %v993_v41 = vcombine.low %v985_v51, %v992_v48 }
  0x53   : > { %v1026_v4 = vsel %vm681_vm0, %v1001_v11, 0.0  ;;  %v686_v39 = vrot.slane %v685_v21, 2 }
  0x54   : > { %v1022_v0 = vadd.f32 %v1021_v8, %v942_v3 }
  0x55   : > { %v687_v61 = vadd.f32 %v686_v39, %v685_v21 }
  0x56   : > { %v1023_v18 = vadd.f32 %v1022_v0, %v959_v31 }
  0x57   : > { %v688_v19 = vrot.slane %v687_v61, 1 }
  0x58   : > { %v1024_v50 = vadd.f32 %v1023_v18, %v976_v58 }
  0x59   : > { %v689_v26 = vadd.f32 %v688_v19, %v687_v61 }
  0x5a   : > { %v1025_v29 = vadd.f32 %v1024_v50, %v993_v41 }
  0x5c   : > { %v1027_v23 = vadd.f32 %v1026_v4, %v1025_v29 }
  0x5e   : > { %v1028_v38 = vrot.slane %v1027_v23, 4 }
  0x60   : > { %v1029_v52 = vadd.f32 %v1028_v38, %v1027_v23 }
  0x62   : > { %v1030_v32 = vrot.slane %v1029_v52, 2 }
  0x64   : > { %v1031_v34 = vadd.f32 %v1030_v32, %v1029_v52 }
  0x66   : > { %v1032_v55 = vrot.slane %v1031_v34, 1 }
  0x68   : > { %v1033_v6 = vadd.f32 %v1032_v55, %v1031_v34 }
  0x6a   : > { %v1035_v27 = vsel %vm1034_vm1, %v689_v26, %v1033_v6 }
  0x6b   : > { %1036 = vst [vmem:[%s114_s15] sm:$0x3] %v1035_v27 }
  0x6c PF: > { %s11_s6 = sadd.s32 1, %s1135_s6  }
  0x6d   : > { %p8_p4 = scmp.ge.s32.totalorder %s11_s6, 6  }
  0x6f   :  { %10 = sbr.rel (!%p8_p4) target bundleno = 1 (0x1), region = 54 }

// kernel: dense_block_forward.4
= control target key start
LH: loop header
LB: loop body
LE: loop exit
PB: predicated region body
PF: predicated region fallthrough
CT: control target
= control target key end

     0   :  { %s3044_s21 = smov 0   ;;  %s3856_s0 = inlined_call_operand.vmem [shape: f32[4,10,10,128], index: 0, kind: input, shape index: {}, may-alias: {0,5}]   ;;  %s3857_s1 = inlined_call_operand.vmem [shape: f32[1,128], index: 1, kind: input, shape index: {}]   ;;  %s3858_s2 = inlined_call_operand.vmem [shape: f32[1,128], index: 2, kind: input, shape index: {}]   ;;  %s3859_s3 = inlined_call_operand.vmem [shape: bf16[9,128,128], index: 3, kind: input, shape index: {}]   ;;  %s3860_s4 = inlined_call_operand.vmem [shape: f32[1,128], index: 4, kind: input, shape index: {}]   ;;  %s3861_s5 = inlined_call_operand.vmem [shape: f32[4,10,10,128], index: 5, kind: output, shape index: {0}, may-alias: {0,5}]   ;;  %s3862_s6 = inlined_call_operand.vmem [shape: f32[4,2,128], index: 6, kind: output, shape index: {1}]  }
   0x1 LB: > { %s2175_s22 = sadd.s32 4294967295, %s3006_s21   ;;  %p2179_p0 = scmp.ge.s32.totalorder %s3006_s21, 1  ;;  %s3006_s21 = sphi %s3044_s21, %s17_s21  }
   0x2   : > { %p215_p1 = scmp.lt.s32.totalorder %s3006_s21, 5 }
   0x4   : > { %p216_p2 = pnand %p2179_p0, %p215_p1 }
   0x6   : > { %219 = sbr.rel (%p216_p2) target bundleno = 435 (0x1b3), region = 40 }
   0xd   : > { %v2928_v0 = vld [vmem:[%s3859_s3] sm:$0xff]   ;;  %p249_p3 = scmp.lt.s32.totalorder %s2175_s22, 3  ;;  %v2930_v2 = vld [vmem:[%s3859_s3 + $0x8] sm:$0xff]   ;;  %v2932_v4 = vld [vmem:[%s3859_s3 + $0x10] sm:$0xff]   ;;  %v3863_v8 = vlaneseq  ;;  %v3864_v10 = vmov 0.0|0.0   ;;  %vm864_vm6 = vcmask 1042432  }
   0xe   : > { %v2929_v1 = vld [vmem:[%s3859_s3 + $0x100] sm:$0xff]   ;;  %2614 = vmatprep.subr.bf16.mxu1 %v2928_v0  ;;  %v2931_v3 = vld [vmem:[%s3859_s3 + $0x108] sm:$0xff]   ;;  %v2933_v5 = vld [vmem:[%s3859_s3 + $0x110] sm:$0xff]   ;;  %v3084_v11 = vcombine.low %v3864_v10, %v3864_v10  ;;  %v3104_v15 = vcombine.high %v3864_v10, %v3864_v10  ;;  %vm595_vm2 = vsmask.f32 3328  ;;  %vm865_vm7 = vcmask 1046532  }
   0xf   : > { %2710 = vmatprep.subr.bf16.mxu0 %v2929_v1  ;;  %2615 = vmatpush3.bf16.msra.mxu1 %v2928_v0  ;;  %s3919_s22 = smov (!%p249_p3, %s2175_s22), 3  ;;  %v2934_v6 = vld [vmem:[%s3859_s3 + $0x18] sm:$0xff]   ;;  %v2936_v9 = vld [vmem:[%s3859_s3 + $0x20] sm:$0xff]   ;;  %v3097_v13 = vshrl.u32 %v3863_v8, 7  ;;  %v2938_v14 = vld [vmem:[%s3859_s3 + $0x28] sm:$0xff]   ;;  %vm1982_vm11 = vcmask 1046528  }
  0x10   : > { %2711 = vmatpush3.bf16.msra.mxu0 %v2929_v1  ;;  %2616 = vmatprep.subr.bf16.mxu1 %v2930_v2  ;;  %v2935_v7 = vld [vmem:[%s3859_s3 + $0x118] sm:$0xff]   ;;  %s2918_s15 = smul.u32 160, %s3919_s22  ;;  %v2937_v12 = vld [vmem:[%s3859_s3 + $0x120] sm:$0xff]   ;;  %v2939_v16 = vld [vmem:[%s3859_s3 + $0x128] sm:$0xff]   ;;  %v599_v21 = vshrl.u32 %v3084_v11, 16  ;;  %v602_v22 = vshll.u32 %v3084_v11, 16 }
  0x11   : > { %2712 = vmatprep.subr.bf16.mxu0 %v2931_v3  ;;  %v3110_v17 = vadd.s32 8, %v3097_v13  ;;  %v3126_v23 = vld [vmem:[%s3857_s1] ss:$0 sm:$0xff]  ;;  %v608_v29 = vshll.u32 %v3104_v15, 16  ;;  %vm361_vm0 = vcmp.ge.s32.totalorder %v3097_v13, 1  ;;  %v2940_v33 = vld [vmem:[%s3859_s3 + $0x30] sm:$0xff]   ;;  %vm3478_vm8 = vmor %vm864_vm6, %vm865_vm7 }
  0x12   : > { %s3094_s24 = scalar_lea.vmem %s3856_s0, %s2918_s15  ;;  %v3131_v24 = vld [vmem:[%s3858_s2] ss:$0 sm:$0xff]  ;;  %v601_v37 = vrot.slane %v599_v21, 4  ;;  %v2941_v38 = vld [vmem:[%s3859_s3 + $0x130] sm:$0xff]   ;;  %v604_v42 = vrot.slane %v602_v22, 5  ;;  %v2942_v53 = vld [vmem:[%s3859_s3 + $0x38] sm:$0xff]   ;;  %s3735_s11 = scalar_lea.vmem %s3861_s5, %s2918_s15 }
  0x13   : > { %2617 = vmatpush3.bf16.msra.mxu1 %v2930_v2  ;;  %v3113_v18 = vld [vmem:[%s3094_s24 + $0x10] sm:$0xff]  ;;  %v3116_v19 = vld [vmem:[%s3094_s24 + $0x18] sm:$0x3]  ;;  %v3119_v20 = vld [vmem:[%s3094_s24 + $0x20] sm:$0xff]  ;;  %vm368_vm1 = vcmp.le.s32.totalorder %v3110_v17, 8  ;;  %v3172_v47 = vrot.slane %v608_v29, 5 }
  0x14   : > { %2713 = vmatpush3.bf16.msra.mxu0 %v2931_v3  ;;  %2618 = vmatprep.subr.bf16.mxu1 %v2932_v4  ;;  %v293_v25 = vmul.f32 %v3126_v23, %v3113_v18  ;;  %v294_v26 = vmul.f32 %v3126_v23, %v3116_v19  ;;  %v295_v27 = vmul.f32 %v3126_v23, %v3119_v20  ;;  %v3140_v28 = vld [vmem:[%s3094_s24 + $0x28] sm:$0x3]  ;;  %v3146_v30 = vld [vmem:[%s3094_s24 + $0x30] sm:$0xff]  ;;  %v3149_v31 = vld [vmem:[%s3094_s24 + $0x38] sm:$0x3]  ;;  %s2182_s12 = sshll.u32 %s3919_s22, 1 }
  0x15   : > { %2714 = vmatprep.subr.bf16.mxu0 %v2933_v5  ;;  %v296_v32 = vmul.f32 %v3126_v23, %v3140_v28  ;;  %v297_v39 = vmul.f32 %v3126_v23, %v3146_v30  ;;  %v298_v40 = vmul.f32 %v3126_v23, %v3149_v31  ;;  %v3168_v43 = vld [vmem:[%s3094_s24 + $0x40] sm:$0xff]  ;;  %v3175_v48 = vld [vmem:[%s3094_s24 + $0x48] sm:$0x3]  ;;  %vm596_vm3 = vsmask.f32 7440  ;;  %v2943_v58 = vld [vmem:[%s3859_s3 + $0x138] sm:$0xff]   ;;  %s262_s16 = scalar_lea.vmem %s3862_s6, %s2182_s12 }
  0x16   : > { %v320_v34 = vadd.f32 %v3131_v24, %v293_v25  ;;  %v321_v35 = vadd.f32 %v3131_v24, %v294_v26  ;;  %v322_v36 = vadd.f32 %v3131_v24, %v295_v27  ;;  %3885 = vst [vmem:[#allocation2_spill] sm:$0xff] %v3168_v43  ;;  %3886 = vst [vmem:[#allocation3_spill] sm:$0xff] %v3175_v48  ;;  %v3232_v27 = vld [vmem:[%s3859_s3 + $0x140] sm:$0xff]   ;;  %v2958_v13 = vld [vmem:[%s3859_s3 + $0x78] sm:$0xff]   ;;  %vm2086_vm13 = vcmask 1040384  }
  0x17   : > { %2619 = vmatpush3.bf16.msra.mxu1 %v2932_v4  ;;  %v323_v41 = vadd.f32 %v3131_v24, %v296_v32  ;;  %v324_v49 = vadd.f32 %v3131_v24, %v297_v39  ;;  %v325_v50 = vadd.f32 %v3131_v24, %v298_v40  ;;  %v299_v52 = vmul.f32 %v3126_v23, %v3168_v43  ;;  %v2944_v4 = vld [vmem:[%s3859_s3 + $0x40] sm:$0xff]   ;;  %vm3242_vm4 = vmpackc.low %vm361_vm0, %vm361_vm0 }
  0x18   : > { %2715 = vmatpush3.bf16.msra.mxu0 %v2933_v5  ;;  %2620 = vmatprep.subr.bf16.mxu1 %v2934_v6  ;;  %v340_v44 = vmax.f32 %v320_v34, 0.0  ;;  %v341_v45 = vmax.f32 %v321_v35, 0.0  ;;  %v3170_v46 = vmax.f32 %v322_v36, 0.0  ;;  %v605_v2 = vor.u32 %v604_v42, %v601_v37  ;;  %vm3257_vm5 = vmor %vm595_vm2, %vm596_vm3 }
  0x19   : > { %2716 = vmatprep.subr.bf16.mxu0 %v2935_v7  ;;  %v343_v51 = vmax.f32 %v323_v41, 0.0  ;;  %v3201_v62 = vmax.f32 %v324_v49, 0.0  ;;  %v345_v63 = vmax.f32 %v325_v50, 0.0 }
  0x1a   : > { %v375_v54 = vsel %vm361_vm0, %v340_v44, 0.0  ;;  %v376_v55 = vsel %vm368_vm1, %v341_v45, 0.0  ;;  %v3189_v56 = vpack.c.bf16 %v3170_v46, %v340_v44  ;;  %v377_v57 = vsel %vm361_vm0, %v3170_v46, 0.0  ;;  %v2998_v44 = vld [vmem:[%s3859_s3 + $0x230] sm:$0xff]  }
  0x1b   : > { %2621 = vmatpush3.bf16.msra.mxu1 %v2934_v6  ;;  %v394_v59 = vpack.c.bf16 %v376_v55, %v375_v54  ;;  %v3197_v60 = vpack.c.bf16 %v375_v54, %v375_v54  ;;  %v3199_v61 = vpack.c.bf16 %v376_v55, %v376_v55  ;;  %v378_v0 = vsel %vm368_vm1, %v343_v51, 0.0 }
  0x1c   : > { %2717 = vmatpush3.bf16.msra.mxu0 %v2935_v7  ;;  %2622 = vmatprep.subr.bf16.mxu1 %v2936_v9  ;;  %v3205_v1 = vpack.c.bf16 %v377_v57, %v377_v57  ;;  %v379_v5 = vsel %vm361_vm0, %v3201_v62, 0.0  ;;  %v300_v6 = vmul.f32 %v3126_v23, %v3175_v48  ;;  %v326_v7 = vadd.f32 %v3131_v24, %v299_v52  ;;  %v2946_v52 = vld [vmem:[%s3859_s3 + $0x48] sm:$0xff]  }
  0x1d   : > { %2718 = vmatprep.subr.bf16.mxu0 %v2937_v12  ;;  %v2186_v3 = vcombine.low %v3864_v10, %v394_v59  ;;  %v616_v22 = vshll.u32 %v3197_v60, 16  ;;  %v622_v25 = vshll.u32 %v3199_v61, 16  ;;  %v606_v35 = vrot.slane %v605_v2, 4 }
  0x1e   : > { %v627_v26 = vshrl.u32 %v3205_v1, 16  ;;  %v630_v32 = vshll.u32 %v3205_v1, 16  ;;  %v3249_v50 = vpack.c.bf16 %v3201_v62, %v3170_v46  ;;  %v327_v51 = vadd.f32 %v3131_v24, %v300_v6 }
  0x1f   : > { %2623 = vmatpush3.bf16.msra.mxu1 %v2936_v9  ;;  %v380_v9 = vsel %vm368_vm1, %v345_v63, 0.0  ;;  %2630 = vmatprep.mubr.bf16.mxu1 %v2186_v3  ;;  %v618_v36 = vrot.slane %v616_v22, 5  ;;  %v624_v39 = vrot.slane %v622_v25, 5  ;;  %v3261_v57 = vmax.f32 %v326_v7, 0.0  ;;  %v3291_v22 = vld [vmem:[%s3094_s24 + $0x60] sm:$0xff] }
  0x20   : > { %2719 = vmatpush3.bf16.msra.mxu0 %v2937_v12  ;;  %2624 = vmatprep.subr.bf16.mxu1 %v2938_v14  ;;  %v3219_v12 = vpack.c.bf16 %v378_v0, %v378_v0  ;;  %v3224_v21 = vpack.c.bf16 %v380_v9, %v380_v9  ;;  %v629_v37 = vrot.slane %v627_v26, 4  ;;  %v632_v40 = vrot.slane %v630_v32, 5  ;;  %3892 = vst [vmem:[#allocation5_spill] sm:$0xff] %v3291_v22  ;;  %v3302_v32 = vld [vmem:[%s3094_s24 + $0x58] sm:$0x3] }
  0x21   : > { %2720 = vmatprep.subr.bf16.mxu0 %v2939_v16  ;;  %v3266_v46 = vsel %vm3257_vm5, %v606_v35, %v3172_v47  ;;  %v347_v63 = vmax.f32 %v327_v51, 0.0  ;;  %v381_v3 = vsel %vm361_vm0, %v3261_v57, 0.0  ;;  %3893 = vst [vmem:[#allocation6_spill] sm:$0xff] %v3302_v32  ;;  %v873_v17 = vrot.slane %v3199_v61, 5 }
  0x22   : > { %v650_v42 = vshll.u32 %v3224_v21, 16  ;;  %v633_v54 = vor.u32 %v632_v40, %v629_v37  ;;  %v877_v61 = vrot.slane %v3219_v12, 5 }
  0x23   : > { %2625 = vmatpush3.bf16.msra.mxu1 %v2938_v14  ;;  %v3221_v14 = vpack.c.bf16 %v379_v5, %v379_v5  ;;  %v3275_v5 = vld [vmem:[%s3094_s24 + $0x50] sm:$0xff]  ;;  %v382_v9 = vsel %vm368_vm1, %v347_v63, 0.0 }
  0x24   : > { %2721 = vmatpush3.bf16.msra.mxu0 %v2939_v16  ;;  %2626 = vmatprep.subr.bf16.mxu1 %v2940_v33  ;;  %v613_v16 = vshrl.u32 %v3197_v60, 16  ;;  %v634_v0 = vrot.slane %v633_v54, 4  ;;  %v652_v2 = vrot.slane %v650_v42, 5  ;;  %3891 = vst [vmem:[#allocation4_spill] sm:$0xff] %v3275_v5  ;;  %v3297_v26 = vpack.c.bf16 %v382_v9, %v382_v9 }
  0x25   : > { %2722 = vmatprep.subr.bf16.mxu0 %v2941_v38  ;;  %v641_v34 = vshrl.u32 %v3221_v14, 16 }
  0x26   : > { %v615_v29 = vrot.slane %v613_v16, 4  ;;  %v3285_v16 = vpack.c.bf16 %v381_v3, %v381_v3  ;;  %v664_v40 = vshll.u32 %v3297_v26, 16  ;;  %v3343_v3 = vld [vmem:[%s3094_s24 + $0x88] sm:$0x3] }
  0x27   : > { %2627 = vmatpush3.bf16.msra.mxu1 %v2940_v33  ;;  %v636_v33 = vshll.u32 %v3219_v12, 16  ;;  %v643_v41 = vrot.slane %v641_v34, 4  ;;  %3898 = vst [vmem:[#allocation11_spill] sm:$0xff] %v3343_v3  ;;  %v2955_v12 = vld [vmem:[%s3859_s3 + $0x168] sm:$0xff]  }
  0x28   : > { %2723 = vmatpush3.bf16.msra.mxu0 %v2941_v38  ;;  %2628 = vmatprep.subr.bf16.mxu1 %v2942_v53  ;;  %v644_v38 = vshll.u32 %v3221_v14, 16  ;;  %v619_v45 = vor.u32 %v618_v36, %v615_v29  ;;  %v301_v29 = vmul.f32 %v3126_v23, %v3275_v5  ;;  %v655_v36 = vshrl.u32 %v3285_v16, 16 }
  0x29   : > { %2724 = vmatprep.subr.bf16.mxu0 %v2943_v58  ;;  %v638_v55 = vrot.slane %v636_v33, 5  ;;  %v3305_v33 = vld [vmem:[%s3094_s24 + $0x68] sm:$0x3]  ;;  %v658_v37 = vshll.u32 %v3285_v16, 16 }
  0x2a   : > { %v646_v49 = vrot.slane %v644_v38, 5  ;;  %3894 = vst [vmem:[#allocation7_spill] sm:$0xff] %v3305_v33  ;;  %v3314_v38 = vld [vmem:[%s3094_s24 + $0x70] sm:$0xff]  ;;  %v328_v42 = vadd.f32 %v3131_v24, %v301_v29  ;;  %v657_v51 = vrot.slane %v655_v36, 4 }
  0x2b   : > { %2629 = vmatpush3.bf16.msra.mxu1 %v2942_v53  ;;  %v3295_v25 = vsel %vm3257_vm5, %v634_v0, %v638_v55  ;;  %3895 = vst [vmem:[#allocation8_spill] sm:$0xff] %v3314_v38  ;;  %v660_v54 = vrot.slane %v658_v37, 5  ;;  %v303_v55 = vmul.f32 %v3126_v23, %v3291_v22  ;;  %v881_v53 = vrot.slane %v3224_v21, 5 }
  0x2c   : > { %2725 = vmatpush3.bf16.msra.mxu0 %v2943_v58  ;;  %2638 = vmatprep.subr.bf16.mxu1 %v2944_v4  ;;  %v620_v58 = vrot.slane %v619_v45, 4  ;;  %v647_v59 = vor.u32 %v646_v49, %v643_v41  ;;  %v2950_v41 = vld [vmem:[%s3859_s3 + $0x58] sm:$0xff]   ;;  %v302_v45 = vmul.f32 %v3126_v23, %v3302_v32  ;;  %v3337_v63 = vmax.f32 %v328_v42, 0.0 }
  0x2d   : > { %2734 = vmatprep.subr.bf16.mxu0 %v3232_v27  ;;  %v3328_v49 = vld [vmem:[%s3094_s24 + $0x78] sm:$0x3]  ;;  %v330_v9 = vadd.f32 %v3131_v24, %v303_v55 }
  0x2e   : > { %2631 = vmatmul.mubr.msk.bf16.vlgmr.msra.gmra.mrb[0].mxu1 %vm3242_vm4, %v3249_v50  ;;  %v3281_v6 = vsel %vm3257_vm5, %v620_v58, %v624_v39  ;;  %v648_v7 = vrot.slane %v647_v59, 4  ;;  %3896 = vst [vmem:[#allocation9_spill] sm:$0xff] %v3328_v49  ;;  %v3335_v58 = vld [vmem:[%s3094_s24 + $0x80] sm:$0xff]  ;;  %v666_v59 = vrot.slane %v664_v40, 5  ;;  %v329_v0 = vadd.f32 %v3131_v24, %v302_v45 }
  0x2f   : > { %2639 = vmatpush3.bf16.msra.mxu1 %v2944_v4  ;;  %v2948_v4 = vld [vmem:[%s3859_s3 + $0x50] sm:$0xff]   ;;  %v2324_v35 = vcombine.low %v3281_v6, %v3295_v25  ;;  %3897 = vst [vmem:[#allocation10_spill] sm:$0xff] %v3335_v58  ;;  %v383_v36 = vsel %vm361_vm0, %v3337_v63, 0.0  ;;  %v3354_v37 = vpack.c.bf16 %v3337_v63, %v3261_v57 }
  0x30   : > { %2640 = vmatprep.subr.bf16.mxu1 %v2946_v52  ;;  %v3318_v39 = vsel %vm3257_vm5, %v648_v7, %v652_v2  ;;  %v305_v2 = vmul.f32 %v3126_v23, %v3314_v38  ;;  %v661_v7 = vor.u32 %v660_v54, %v657_v51  ;;  %v349_v40 = vmax.f32 %v329_v0, 0.0  ;;  %v2952_v51 = vld [vmem:[%s3859_s3 + $0x60] sm:$0xff]  }
  0x31   : > { %2726 = vmatprep.mubr.bf16.mxu0 %v2324_v35  ;;  %v306_v35 = vmul.f32 %v3126_v23, %v3328_v49  ;;  %v3360_v54 = vpack.c.bf16 %v383_v36, %v383_v36  ;;  %2634 = vmatprep.mubr.msk.bf16.mxu1 %vm3242_vm4, %v3354_v37  ;;  %v2949_v49 = vld [vmem:[%s3859_s3 + $0x150] sm:$0xff]  }
  0x32   : > { %v332_v42 = vadd.f32 %v3131_v24, %v305_v2  ;;  %v662_v45 = vrot.slane %v661_v7, 4  ;;  %v307_v2 = vmul.f32 %v3126_v23, %v3335_v58  ;;  %v308_v7 = vmul.f32 %v3126_v23, %v3343_v3  ;;  %v2956_v58 = vld [vmem:[%s3859_s3 + $0x70] sm:$0xff]  }
  0x33   : > { %2641 = vmatpush3.bf16.msra.mxu1 %v2946_v52  ;;  %v304_v52 = vmul.f32 %v3126_v23, %v3305_v33  ;;  %v2947_v23 = vld [vmem:[%s3859_s3 + $0x148] sm:$0xff]  }
  0x34   : > { %2642 = vmatprep.subr.bf16.mxu1 %v2948_v4  ;;  %v3369_v0 = vmax.f32 %v332_v42, 0.0  ;;  %v3426_v32 = vadd.f32 %v3131_v24, %v307_v2  ;;  %v335_v5 = vadd.f32 %v3131_v24, %v308_v7  ;;  %v2951_v7 = vld [vmem:[%s3859_s3 + $0x158] sm:$0xff]  }
  0x35   : > { %v331_v29 = vadd.f32 %v3131_v24, %v304_v52  ;;  %v384_v52 = vsel %vm368_vm1, %v349_v40, 0.0 }
  0x36   : > { %v3384_v40 = vpack.c.bf16 %v384_v52, %v384_v52  ;;  %v672_v52 = vshll.u32 %v3360_v54, 16  ;;  %v387_v10 = vsel %vm361_vm0, %v3369_v0, 0.0 }
  0x37   : > { %2643 = vmatpush3.bf16.msra.mxu1 %v2948_v4  ;;  %v3362_v4 = vmax.f32 %v330_v9, 0.0  ;;  %v351_v55 = vmax.f32 %v331_v29, 0.0  ;;  %v3377_v9 = vsel %vm3257_vm5, %v662_v45, %v666_v59  ;;  %v669_v45 = vshrl.u32 %v3360_v54, 16 }
  0x38   : > { %2644 = vmatprep.subr.bf16.mxu1 %v2950_v41  ;;  %v2325_v42 = vcombine.low %v3318_v39, %v3377_v9  ;;  %v678_v47 = vshll.u32 %v3384_v40, 16  ;;  %v674_v38 = vrot.slane %v672_v52, 5 }
  0x39   : > { %v385_v29 = vsel %vm361_vm0, %v3362_v4, 0.0  ;;  %v386_v36 = vsel %vm368_vm1, %v351_v55, 0.0  ;;  %v2954_v55 = vld [vmem:[%s3859_s3 + $0x68] sm:$0xff]  }
  0x3a   : > { %v3391_v8 = vpack.c.bf16 %v385_v29, %v385_v29  ;;  %v3393_v59 = vpack.c.bf16 %v386_v36, %v386_v36  ;;  %2727 = vmatmul.mubr.bf16.vlgmr.msra.gmra.mrb[0].mxu0 %v2325_v42  ;;  %v671_v29 = vrot.slane %v669_v45, 4  ;;  %v3419_v42 = vpack.c.bf16 %v387_v10, %v387_v10 }
  0x3b   : > { %2645 = vmatpush3.bf16.msra.mxu1 %v2950_v41  ;;  %v3406_v41 = vpack.c.bf16 %v3369_v0, %v3362_v4  ;;  %2735 = vmatpush3.bf16.msra.mxu0 %v3232_v27  ;;  %v333_v45 = vadd.f32 %v3131_v24, %v306_v35  ;;  %v680_v27 = vrot.slane %v678_v47, 5  ;;  %v3899_v35 = vcombine.low %v3266_v46, %v3281_v6 }
  0x3c   : > { %2646 = vmatprep.subr.bf16.mxu1 %v2952_v51  ;;  %v683_v36 = vshrl.u32 %v3391_v8, 16  ;;  %v686_v34 = vshll.u32 %v3391_v8, 16  ;;  %v692_v3 = vshll.u32 %v3393_v59, 16  ;;  %2736 = vmatprep.subr.bf16.mxu0 %v2947_v23  ;;  %v675_v52 = vor.u32 %v674_v38, %v671_v29 }
  0x3d   : > { %2635 = vmatmul.mubr.msk.bf16.gmra.mrb[4].mxu1 %vm3242_vm4, %v3406_v41  ;;  %v353_v10 = vmax.f32 %v333_v45, 0.0  ;;  %v697_v48 = vshrl.u32 %v3419_v42, 16  ;;  %v354_v47 = vmax.f32 %v3426_v32, 0.0 }
  0x3e   : > { %v685_v33 = vrot.slane %v683_v36, 4  ;;  %v688_v22 = vrot.slane %v686_v34, 5  ;;  %2654 = vmatprep.mubr.bf16.mxu1 %v3899_v35  ;;  %v694_v43 = vrot.slane %v692_v3, 5  ;;  %v700_v34 = vshll.u32 %v3419_v42, 16 }
  0x3f   : > { %2647 = vmatpush3.bf16.msra.mxu1 %v2952_v51  ;;  %2737 = vmatpush3.bf16.msra.mxu0 %v2947_v23  ;;  %v676_v2 = vrot.slane %v675_v52, 4  ;;  %v355_v36 = vmax.f32 %v335_v5, 0.0  ;;  %v388_v38 = vsel %vm368_vm1, %v353_v10, 0.0  ;;  %v699_v24 = vrot.slane %v697_v48, 4  ;;  %v2953_v52 = vld [vmem:[%s3859_s3 + $0x160] sm:$0xff]  }
  0x40   : > { %2648 = vmatprep.subr.bf16.mxu1 %v2954_v55  ;;  %v689_v51 = vor.u32 %v688_v22, %v685_v33  ;;  %2738 = vmatprep.subr.bf16.mxu0 %v2949_v49  ;;  %v3444_v22 = vsel %vm361_vm0, %v354_v47, 0.0  ;;  %v3446_v33 = vpack.c.bf16 %v388_v38, %v388_v38  ;;  %v702_v5 = vrot.slane %v700_v34, 5  ;;  %v2960_v34 = vld [vmem:[%s3859_s3 + $0x80] sm:$0xff]  }
  0x41   : > { %v681_v48 = vsel %vm3257_vm5, %v676_v2, %v680_v27  ;;  %v3452_v3 = vsel %vm368_vm1, %v355_v36, 0.0  ;;  %v2495_v23 = vpack.c.bf16 %v3444_v22, %v3444_v22  ;;  %v2244_v2 = vrot.slane %v3205_v1, 9 }
  0x42   : > { %v690_v6 = vrot.slane %v689_v51, 4  ;;  %v703_v29 = vor.u32 %v702_v5, %v699_v24  ;;  %v706_v45 = vshll.u32 %v3446_v33, 16  ;;  %v2496_v27 = vpack.c.bf16 %v3452_v3, %v3452_v3 }
  0x43   : > { %2649 = vmatpush3.bf16.msra.mxu1 %v2954_v55  ;;  %2739 = vmatpush3.bf16.msra.mxu0 %v2949_v49  ;;  %v1205_v35 = vshrl.u32 %v2495_v23, 16  ;;  %v1208_v51 = vshll.u32 %v2495_v23, 16 }
  0x44   : > { %2650 = vmatprep.subr.bf16.mxu1 %v2956_v58  ;;  %v3461_v55 = vsel %vm3257_vm5, %v690_v6, %v694_v43  ;;  %2740 = vmatprep.subr.bf16.mxu0 %v2951_v7  ;;  %v1214_v43 = vshll.u32 %v2496_v27, 16  ;;  %v704_v49 = vrot.slane %v703_v29, 4  ;;  %v708_v36 = vrot.slane %v706_v45, 5  ;;  %v2967_v6 = vld [vmem:[%s3859_s3 + $0x198] sm:$0xff]  }
  0x45   : > { %v2326_v10 = vcombine.low %v681_v48, %v3461_v55  ;;  %v1207_v38 = vrot.slane %v1205_v35, 4  ;;  %v1210_v24 = vrot.slane %v1208_v51, 5  ;;  %v3902_v29 = vrot.slane %v3197_v60, 9 }
  0x46   : > { %v1216_v5 = vrot.slane %v1214_v43, 5  ;;  %v3504_v60 = vcombine.low %v3377_v9, %v681_v48  ;;  %v2336_v35 = vrot.slane %v2495_v23, 9  ;;  %v1367_v43 = vrot.slane %v2496_v27, 5  ;;  %v2964_v23 = vld [vmem:[%s3859_s3 + $0x90] sm:$0xff]  }
  0x47   : > { %2651 = vmatpush3.bf16.msra.mxu1 %v2956_v58  ;;  %2730 = vmatprep.mubr.bf16.mxu0 %v2326_v10  ;;  %v3484_v58 = vcombine.low %v3295_v25, %v3318_v39  ;;  %v1211_v1 = vor.u32 %v1210_v24, %v1207_v38  ;;  %v874_v45 = vsel %vm3478_vm8, %v3902_v29, %v873_v17  ;;  %v2242_v25 = vrot.slane %v3084_v11, 9  ;;  %v2957_v17 = vld [vmem:[%s3859_s3 + $0x170] sm:$0xff]  }
  0x48   : > { %2652 = vmatprep.subr.bf16.mxu1 %v2958_v13  ;;  %2741 = vmatpush3.bf16.msra.mxu0 %v2951_v7  ;;  %v3495_v10 = vsel %vm3478_vm8, %v2244_v2, %v877_v61  ;;  %v709_v39 = vsel %vm3257_vm5, %v704_v49, %v708_v36  ;;  %v869_v2 = vrot.slane %v3104_v15, 5  ;;  %v2245_v48 = vrot.slane %v3221_v14, 9 }
  0x49   : > { %2742 = vmatprep.subr.bf16.mxu0 %v2953_v52  ;;  %v1212_v7 = vrot.slane %v1211_v1, 4  ;;  %v2353_v51 = vcombine.low %v874_v45, %v3495_v10  ;;  %v3526_v15 = vsel %vm3478_vm8, %v2336_v35, %v1367_v43  ;;  %v885_v14 = vrot.slane %v3297_v26, 5  ;;  %v2968_v1 = vld [vmem:[%s3859_s3 + $0xa0] sm:$0xff]  }
  0x4a   : > { %v3530_v27 = vsel %vm3478_vm8, %v2242_v25, %v869_v2  ;;  %v889_v61 = vrot.slane %v3384_v40, 5  ;;  %v3541_v49 = vcombine.low %v3461_v55, %v709_v39  ;;  %v2490_v36 = vpack.c.bf16 %v3362_v4, %v3337_v63  ;;  %v2966_v55 = vld [vmem:[%s3859_s3 + $0x98] sm:$0xff]   ;;  %v2963_v25 = vld [vmem:[%s3859_s3 + $0x188] sm:$0xff]   ;;  %v2969_v35 = vld [vmem:[%s3859_s3 + $0x1a0] sm:$0xff]  }
  0x4b   : > { %2653 = vmatpush3.bf16.msra.mxu1 %v2958_v13  ;;  %v2962_v13 = vld [vmem:[%s3859_s3 + $0x88] sm:$0xff]   ;;  %v3511_v11 = vsel %vm3257_vm5, %v1212_v7, %v1216_v5  ;;  %v2434_v21 = vcombine.low %v3526_v15, %v3530_v27  ;;  %v3548_v26 = vpack.c.bf16 %v354_v47, %v3369_v0  ;;  %v893_v38 = vrot.slane %v3393_v59, 5  ;;  %v2996_v63 = vld [vmem:[%s3859_s3 + $0x220] sm:$0xff]  }
  0x4c   : > { %2662 = vmatprep.subr.bf16.mxu1 %v2960_v34  ;;  %2743 = vmatpush3.bf16.msra.mxu0 %v2953_v52  ;;  %v2327_v9 = vcombine.low %v709_v39, %v3511_v11  ;;  %v2246_v52 = vrot.slane %v3285_v16, 9  ;;  %v2959_v16 = vld [vmem:[%s3859_s3 + $0x178] sm:$0xff]   ;;  %v2408_v40 = vcombine.low %v3511_v11, %v3266_v46  ;;  %v2266_v24 = vcombine.low %v3530_v27, %v874_v45  ;;  %v2970_v39 = vld [vmem:[%s3859_s3 + $0xa8] sm:$0xff]   ;;  %v264_v46 = vld [vmem:[%s3094_s24] sm:$0xff] }
  0x4d   : > { %2744 = vmatprep.subr.bf16.mxu0 %v2955_v12  ;;  %v882_v32 = vsel %vm3478_vm8, %v2245_v48, %v881_v53  ;;  %v2249_v29 = vrot.slane %v3419_v42, 9  ;;  %v897_v45 = vrot.slane %v3446_v33, 5  ;;  %v2965_v42 = vld [vmem:[%s3859_s3 + $0x190] sm:$0xff]   ;;  %v2978_v2 = vld [vmem:[%s3859_s3 + $0xc8] sm:$0xff]   ;;  %v2975_v53 = vld [vmem:[%s3859_s3 + $0x1b8] sm:$0xff]  }
  0x4e   : > { %2655 = vmatmul.mubr.bf16.vlgmr.msra.gmra.mrb[0].mxu1 %v3484_v58  ;;  %2731 = vmatmul.mubr.bf16.gmra.mrb[4].mxu0 %v2327_v9  ;;  %v886_v0 = vsel %vm3478_vm8, %v2246_v52, %v885_v14  ;;  %v2972_v33 = vld [vmem:[%s3859_s3 + $0xb0] sm:$0xff]   ;;  %v3606_v43 = vcombine.low %v3495_v10, %v882_v32  ;;  %v2982_v52 = vld [vmem:[%s3859_s3 + $0xd8] sm:$0xff]   ;;  %v2977_v14 = vld [vmem:[%s3859_s3 + $0x1c0] sm:$0xff]  }
  0x4f   : > { %2663 = vmatpush3.bf16.msra.mxu1 %v2960_v34  ;;  %2658 = vmatprep.mubr.bf16.mxu1 %v3504_v60  ;;  %v2247_v34 = vrot.slane %v3360_v54, 9  ;;  %v2248_v54 = vrot.slane %v3391_v8, 9  ;;  %v2961_v8 = vld [vmem:[%s3859_s3 + $0x180] sm:$0xff]   ;;  %v2354_v5 = vcombine.low %v882_v32, %v886_v0  ;;  %v898_v7 = vsel %vm3478_vm8, %v2249_v29, %v897_v45  ;;  %v2973_v10 = vld [vmem:[%s3859_s3 + $0x1b0] sm:$0xff]   ;;  %v2987_v32 = vld [vmem:[%s3859_s3 + $0x1e8] sm:$0xff]  }
  0x50   : > { %2664 = vmatprep.subr.bf16.mxu1 %v2962_v13  ;;  %2745 = vmatpush3.bf16.msra.mxu0 %v2955_v12  ;;  %v2980_v48 = vld [vmem:[%s3859_s3 + $0xd0] sm:$0xff]   ;;  %v2997_v4 = vld [vmem:[%s3859_s3 + $0x228] sm:$0xff]   ;;  %v3905_v27 = vld [vmem:[#allocation2_spill] sm:$0xff] }
  0x51   : > { %2750 = vmatprep.mubr.bf16.mxu0 %v2353_v51  ;;  %2746 = vmatprep.subr.bf16.mxu0 %v2957_v17  ;;  %v890_v59 = vsel %vm3478_vm8, %v2247_v34, %v889_v61  ;;  %v894_v47 = vsel %vm3478_vm8, %v2248_v54, %v893_v38  ;;  %v2976_v51 = vld [vmem:[%s3859_s3 + $0xc0] sm:$0xff]   ;;  %v2986_v61 = vld [vmem:[%s3859_s3 + $0xe8] sm:$0xff]   ;;  %v401_v54 = vpack.c.bf16 %v3452_v3, %v3444_v22  ;;  %v2988_v38 = vld [vmem:[%s3859_s3 + $0xf0] sm:$0xff]  }
  0x52   : > { %v2355_v12 = vcombine.low %v890_v59, %v894_v47  ;;  %v3614_v9 = vcombine.low %v886_v0, %v890_v59  ;;  %v2984_v34 = vld [vmem:[%s3859_s3 + $0xe0] sm:$0xff]   ;;  %v2983_v22 = vld [vmem:[%s3859_s3 + $0x1d8] sm:$0xff]   ;;  %v3904_v0 = vpack.c.bf16 %v3261_v57, %v3201_v62  ;;  %v2994_v62 = vld [vmem:[%s3859_s3 + $0x210] sm:$0xff]  }
  0x53   : > { %2665 = vmatpush3.bf16.msra.mxu1 %v2962_v13  ;;  %v2356_v13 = vcombine.low %v898_v7, %v3526_v15  ;;  %v2985_v3 = vld [vmem:[%s3859_s3 + $0x1e0] sm:$0xff]   ;;  %v2991_v57 = vld [vmem:[%s3859_s3 + $0x1f8] sm:$0xff]   ;;  %v282_v11 = vld [vmem:[%s3094_s24 + $0x90] sm:$0xff] }
  0x54   : > { %2666 = vmatprep.subr.bf16.mxu1 %v2964_v23  ;;  %2747 = vmatpush3.bf16.msra.mxu0 %v2957_v17  ;;  %v2974_v17 = vld [vmem:[%s3859_s3 + $0xb8] sm:$0xff]   ;;  %v3914_v29 = vld [vmem:[#allocation11_spill] sm:$0xff] }
  0x55   : > { %2748 = vmatprep.subr.bf16.mxu0 %v2959_v16  ;;  %v2995_v59 = vld [vmem:[%s3859_s3 + $0x218] sm:$0xff]  }
  0x56   : > { %2659 = vmatmul.mubr.bf16.gmra.mrb[4].mxu1 %v3541_v49  ;;  %v283_v15 = vld [vmem:[%s3094_s24 + $0x98] sm:$0x3] }
  0x57   : > { %2667 = vmatpush3.bf16.msra.mxu1 %v2964_v23  ;;  %2678 = vmatprep.mubr.bf16.mxu1 %v2266_v24  ;;  %v3624_v23 = vcombine.low %v894_v47, %v898_v7  ;;  %v2992_v24 = vld [vmem:[%s3859_s3 + $0x200] sm:$0xff]   ;;  %v3910_v47 = vld [vmem:[#allocation7_spill] sm:$0xff] }
  0x58   : > { %2668 = vmatprep.subr.bf16.mxu1 %v2966_v55  ;;  %2749 = vmatpush3.bf16.msra.mxu0 %v2959_v16  ;;  %v2979_v16 = vld [vmem:[%s3859_s3 + $0x1c8] sm:$0xff]  }
  0x59   : > { %2758 = vmatprep.subr.bf16.mxu0 %v2961_v8 }
  0x5b   : > { %2669 = vmatpush3.bf16.msra.mxu1 %v2966_v55  ;;  %2751 = vmatmul.mubr.bf16.vlgmr.msra.gmra.mrb[0].mxu0 %v2354_v5  ;;  %v3912_v5 = vld [vmem:[#allocation9_spill] sm:$0xff] }
  0x5c   : > { %2670 = vmatprep.subr.bf16.mxu1 %v2968_v1  ;;  %2759 = vmatpush3.bf16.msra.mxu0 %v2961_v8  ;;  %v2989_v8 = vld [vmem:[%s3859_s3 + $0x1f0] sm:$0xff]  }
  0x5d   : > { %2754 = vmatprep.mubr.bf16.mxu0 %v2355_v12  ;;  %2760 = vmatprep.subr.bf16.mxu0 %v2963_v25  ;;  %v3913_v12 = vld [vmem:[#allocation10_spill] sm:$0xff] }
  0x5f   : > { %2671 = vmatpush3.bf16.msra.mxu1 %v2968_v1  ;;  %v3911_v1 = vld [vmem:[#allocation8_spill] sm:$0xff] }
  0x60   : > { %2672 = vmatprep.subr.bf16.mxu1 %v2970_v39  ;;  %2761 = vmatpush3.bf16.msra.mxu0 %v2963_v25 }
  0x61   : > { %2762 = vmatprep.subr.bf16.mxu0 %v2965_v42 }
  0x63   : > { %2673 = vmatpush3.bf16.msra.mxu1 %v2970_v39  ;;  %2755 = vmatmul.mubr.bf16.gmra.mrb[4].mxu0 %v2356_v13 }
  0x64   : > { %2674 = vmatprep.subr.bf16.mxu1 %v2972_v33  ;;  %2763 = vmatpush3.bf16.msra.mxu0 %v2965_v42 }
  0x65   : > { %2774 = vmatprep.mubr.msk.bf16.mxu0 %vm3242_vm4, %v3249_v50  ;;  %2764 = vmatprep.subr.bf16.mxu0 %v2967_v6  ;;  %v2971_v50 = vld [vmem:[%s3859_s3 + $0x1a8] sm:$0xff]  }
  0x67   : > { %2675 = vmatpush3.bf16.msra.mxu1 %v2972_v33 }
  0x68   : > { %2676 = vmatprep.subr.bf16.mxu1 %v2974_v17  ;;  %2765 = vmatpush3.bf16.msra.mxu0 %v2967_v6 }
  0x69   : > { %2766 = vmatprep.subr.bf16.mxu0 %v2969_v35 }
  0x6b   : > { %2677 = vmatpush3.bf16.msra.mxu1 %v2974_v17  ;;  %v3784_v17 = vld [vmem:[%s3860_s4] ss:$0 sm:$0xff] }
  0x6c   : > { %2686 = vmatprep.subr.bf16.mxu1 %v2976_v51  ;;  %2767 = vmatpush3.bf16.msra.mxu0 %v2969_v35 }
  0x6d   : > { %2768 = vmatprep.subr.bf16.mxu0 %v2971_v50 }
  0x6e   : > { %2679 = vmatmul.mubr.bf16.vlgmr.msra.gmra.mrb[0].mxu1 %v3606_v43 }
  0x6f   : > { %2687 = vmatpush3.bf16.msra.mxu1 %v2976_v51  ;;  %2682 = vmatprep.mubr.bf16.mxu1 %v3614_v9 }
  0x70   : > { %2688 = vmatprep.subr.bf16.mxu1 %v2978_v2  ;;  %2769 = vmatpush3.bf16.msra.mxu0 %v2971_v50 }
  0x71   : > { %2770 = vmatprep.subr.bf16.mxu0 %v2973_v10 }
  0x73   : > { %2689 = vmatpush3.bf16.msra.mxu1 %v2978_v2 }
  0x74   : > { %2690 = vmatprep.subr.bf16.mxu1 %v2980_v48  ;;  %2771 = vmatpush3.bf16.msra.mxu0 %v2973_v10 }
  0x75   : > { %2772 = vmatprep.subr.bf16.mxu0 %v2975_v53 }
  0x76   : > { %2683 = vmatmul.mubr.bf16.gmra.mrb[4].mxu1 %v3624_v23 }
  0x77   : > { %2691 = vmatpush3.bf16.msra.mxu1 %v2980_v48  ;;  %2702 = vmatprep.mubr.msk.bf16.mxu1 %vm3242_vm4, %v3189_v56  ;;  %v2981_v56 = vld [vmem:[%s3859_s3 + $0x1d0] sm:$0xff]   ;;  %v3915_v48 = vlaneseq }
  0x78   : > { %2692 = vmatprep.subr.bf16.mxu1 %v2982_v52  ;;  %2773 = vmatpush3.bf16.msra.mxu0 %v2975_v53 }
  0x79   : > { %2782 = vmatprep.subr.bf16.mxu0 %v2977_v14 }
  0x7b   : > { %2693 = vmatpush3.bf16.msra.mxu1 %v2982_v52  ;;  %2775 = vmatmul.mubr.msk.bf16.vlgmr.msra.gmra.mrb[0].mxu0 %vm3242_vm4, %v3354_v37  ;;  %v3903_v37 = vmov 0.0|0.0  }
  0x7c   : > { %2694 = vmatprep.subr.bf16.mxu1 %v2984_v34  ;;  %2783 = vmatpush3.bf16.msra.mxu0 %v2977_v14  ;;  %v2381_v55 = vcombine.low %v401_v54, %v3903_v37  ;;  %v2002_v54 = vrot.slane %v3912_v5, 1  ;;  %v2004_v37 = vrot.slane %v3913_v12, 1 }
  0x7d   : > { %2778 = vmatprep.mubr.msk.bf16.mxu0 %vm3242_vm4, %v3406_v41  ;;  %2784 = vmatprep.subr.bf16.mxu0 %v2979_v16  ;;  %v2990_v41 = vld [vmem:[%s3859_s3 + $0xf8] sm:$0xff]  }
  0x7f   : > { %2695 = vmatpush3.bf16.msra.mxu1 %v2984_v34 }
  0x80   : > { %2696 = vmatprep.subr.bf16.mxu1 %v2986_v61  ;;  %2785 = vmatpush3.bf16.msra.mxu0 %v2979_v16 }
  0x81   : > { %2786 = vmatprep.subr.bf16.mxu0 %v2981_v56 }
  0x83   : > { %2697 = vmatpush3.bf16.msra.mxu1 %v2986_v61  ;;  %2779 = vmatmul.mubr.bf16.gmra.mrb[4].mxu0 %v2381_v55  ;;  %v2001_v61 = vrot.slane %v3911_v1, 1  ;;  %v2005_v55 = vrot.slane %v3914_v29, 1 }
  0x84   : > { %2698 = vmatprep.subr.bf16.mxu1 %v2988_v38  ;;  %2787 = vmatpush3.bf16.msra.mxu0 %v2981_v56 }
  0x85   : > { %2798 = vmatprep.mubr.bf16.mxu0 %v3484_v58  ;;  %2788 = vmatprep.subr.bf16.mxu0 %v2983_v22  ;;  %v2993_v58 = vld [vmem:[%s3859_s3 + $0x208] sm:$0xff]  }
  0x87   : > { %2699 = vmatpush3.bf16.msra.mxu1 %v2988_v38 }
  0x88   : > { %2700 = vmatprep.subr.bf16.mxu1 %v2990_v41  ;;  %2789 = vmatpush3.bf16.msra.mxu0 %v2983_v22 }
  0x89   : > { %2790 = vmatprep.subr.bf16.mxu0 %v2985_v3 }
  0x8b   : > { %2701 = vmatpush3.bf16.msra.mxu1 %v2990_v41  ;;  %v1999_v41 = vrot.slane %v3910_v47, 1 }
  0x8c   : > { %2830 = vmatprep.subr.bf16.mxu1 %v2992_v24  ;;  %2791 = vmatpush3.bf16.msra.mxu0 %v2985_v3 }
  0x8d   : > { %2792 = vmatprep.subr.bf16.mxu0 %v2987_v32 }
  0x8e   : > { %2703 = vmatmul.mubr.msk.bf16.vlgmr.msra.gmra.mrb[0].mxu1 %vm3242_vm4, %v3904_v0 }
  0x8f   : > { %2838 = vmatpush3.bf16.msra.mxu1 %v2992_v24  ;;  %2706 = vmatprep.mubr.msk.bf16.mxu1 %vm3242_vm4, %v2490_v36  ;;  %v2999_v36 = vld [vmem:[%s3859_s3 + $0x238] sm:$0xff]  }
  0x90   : > { %2831 = vmatprep.subr.bf16.mxu1 %v2993_v58  ;;  %2793 = vmatpush3.bf16.msra.mxu0 %v2987_v32  ;;  %v2003_v32 = vsel %vm1982_vm11, %v2001_v61, %v2002_v54 }
  0x91   : > { %2794 = vmatprep.subr.bf16.mxu0 %v2989_v8 }
  0x93   : > { %2839 = vmatpush3.bf16.msra.mxu1 %v2993_v58 }
  0x94   : > { %2832 = vmatprep.subr.bf16.mxu1 %v2994_v62  ;;  %2795 = vmatpush3.bf16.msra.mxu0 %v2989_v8 }
  0x95   : > { %2796 = vmatprep.subr.bf16.mxu0 %v2991_v57 }
  0x96   : > { %2707 = vmatmul.mubr.msk.bf16.gmra.mrb[4].mxu1 %vm3242_vm4, %v3548_v26  ;;  %v3908_v26 = vld [vmem:[#allocation6_spill] sm:$0xff] }
  0x97   : > { %2840 = vmatpush3.bf16.msra.mxu1 %v2994_v62  ;;  %2826 = vmatprep.mubr.bf16.mxu1 %v3624_v23  ;;  %v1962_v23 = vand.u32 127, %v3915_v48  ;;  %v1996_v38 = vrot.slane %v3908_v26, 1 }
  0x98   : > { %2833 = vmatprep.subr.bf16.mxu1 %v2995_v59  ;;  %2797 = vmatpush3.bf16.msra.mxu0 %v2991_v57 }
  0x99   : > { %2806 = vmatprep.subr.bf16.mxu0 %v2992_v24  ;;  %vm1963_vm9 = vcmp.ge.s32.totalorder %v1962_v23, 3  ;;  %vm1964_vm10 = vcmp.lt.s32.totalorder %v1962_v23, 13 }
  0x9a   : > { %vm3799_vm12 = vmand %vm1963_vm9, %vm1964_vm10 }
  0x9b   : > { %2841 = vmatpush3.bf16.msra.mxu1 %v2995_v59  ;;  %2799 = vmatmul.mubr.bf16.vlgmr.msra.gmra.mrb[0].mxu0 %v3504_v60  ;;  %v265_v60 = vld [vmem:[%s3094_s24 + $0x8] sm:$0x3] }
  0x9c   : > { %2834 = vmatprep.subr.bf16.mxu1 %v2996_v63  ;;  %2807 = vmatpush3.bf16.msra.mxu0 %v2992_v24  ;;  %2023 = vst [vmem:[%s3735_s11] sm:$0xff] %v264_v46  ;;  %2024 = vst [vmem:[%s3735_s11 + $0x8] sm:$0x3] %v265_v60 }
  0x9d   : > { %2802 = vmatprep.mubr.bf16.mxu0 %v3541_v49  ;;  %2808 = vmatprep.subr.bf16.mxu0 %v2993_v58  ;;  %2029 = vst [vmem:[%s3735_s11 + $0x30] sm:$0xff] %v3146_v30  ;;  %2030 = vst [vmem:[%s3735_s11 + $0x38] sm:$0x3] %v3149_v31  ;;  %v3907_v49 = vld [vmem:[#allocation4_spill] sm:$0xff] }
  0x9e   : > { %2041 = vst [vmem:[%s3735_s11 + $0x90] sm:$0xff] %v282_v11  ;;  %2042 = vst [vmem:[%s3735_s11 + $0x98] sm:$0x3] %v283_v15  ;;  %v1995_v56 = vrot.slane %v3907_v49, 1 }
  0x9f   : > { %2842 = vmatpush3.bf16.msra.mxu1 %v2996_v63  ;;  %2025 = vst [vmem:[%s3735_s11 + $0x10] sm:$0xff] %v3113_v18  ;;  %2026 = vst [vmem:[%s3735_s11 + $0x18] sm:$0x3] %v3116_v19 }
  0xa0   : > { %2835 = vmatprep.subr.bf16.mxu1 %v2997_v4  ;;  %2809 = vmatpush3.bf16.msra.mxu0 %v2993_v58  ;;  %2027 = vst [vmem:[%s3735_s11 + $0x20] sm:$0xff] %v3119_v20  ;;  %2028 = vst [vmem:[%s3735_s11 + $0x28] sm:$0x3] %v3140_v28  ;;  %v1997_v8 = vsel %vm1982_vm11, %v1995_v56, %v1996_v38 }
  0xa1   : > { %2810 = vmatprep.subr.bf16.mxu0 %v2994_v62  ;;  %2031 = vst [vmem:[%s3735_s11 + $0x40] sm:$0xff] %v3905_v27  ;;  %2033 = vst [vmem:[%s3735_s11 + $0x50] sm:$0xff] %v3907_v49  ;;  %v1989_v49 = vrot.slane %v3146_v30, 1 }
  0xa2   : > { %2034 = vst [vmem:[%s3735_s11 + $0x58] sm:$0x3] %v3908_v26  ;;  %2036 = vst [vmem:[%s3735_s11 + $0x68] sm:$0x3] %v3910_v47  ;;  %v1990_v26 = vrot.slane %v3149_v31, 1  ;;  %v1984_v47 = vrot.slane %v3116_v19, 1 }
  0xa3   : > { %2843 = vmatpush3.bf16.msra.mxu1 %v2997_v4  ;;  %2803 = vmatmul.mubr.bf16.gmra.mrb[4].mxu0 %v2408_v40  ;;  %v3909_v40 = vld [vmem:[#allocation5_spill] sm:$0xff]  ;;  %2037 = vst [vmem:[%s3735_s11 + $0x70] sm:$0xff] %v3911_v1  ;;  %2038 = vst [vmem:[%s3735_s11 + $0x78] sm:$0x3] %v3912_v5  ;;  %v1992_v1 = vrot.slane %v3905_v27, 1 }
  0xa4   : > { %2836 = vmatprep.subr.bf16.mxu1 %v2998_v44  ;;  %2811 = vmatpush3.bf16.msra.mxu0 %v2994_v62  ;;  %2035 = vst [vmem:[%s3735_s11 + $0x60] sm:$0xff] %v3909_v40  ;;  %2039 = vst [vmem:[%s3735_s11 + $0x80] sm:$0xff] %v3913_v12  ;;  %v1998_v22 = vrot.slane %v3909_v40, 1  ;;  %v1983_v40 = vrot.slane %v3113_v18, 1  ;;  %v1991_v31 = vsel %vm1982_vm11, %v1989_v49, %v1990_v26 }
  0xa5   : > { %2822 = vmatprep.mubr.bf16.mxu0 %v3606_v43  ;;  %2812 = vmatprep.subr.bf16.mxu0 %v2995_v59  ;;  %2040 = vst [vmem:[%s3735_s11 + $0x88] sm:$0x3] %v3914_v29  ;;  %v1986_v29 = vrot.slane %v3119_v20, 1 }
  0xa7   : > { %2844 = vmatpush3.bf16.msra.mxu1 %v2998_v44 }
  0xa8   : > { %2837 = vmatprep.subr.bf16.mxu1 %v2999_v36  ;;  %2813 = vmatpush3.bf16.msra.mxu0 %v2995_v59  ;;  %v2006_v59 = vsel %vm1982_vm11, %v2004_v37, %v2005_v55 }
  0xa9   : > { %2814 = vmatprep.subr.bf16.mxu0 %v2996_v63 }
  0xab   : > { %2845 = vmatpush3.bf16.msra.mxu1 %v2999_v36 }
  0xac   : > { %2815 = vmatpush3.bf16.msra.mxu0 %v2996_v63 }
  0xad   : > { %2816 = vmatprep.subr.bf16.mxu0 %v2997_v4 }
  0xae   : > { %2827 = vmatmul.mubr.bf16.vlgmr.msra.gmra.mrb[8].mxu1 %v2434_v21  ;;  %v3906_v21 = vld [vmem:[#allocation3_spill] sm:$0xff] }
  0xaf   : > { %2032 = vst [vmem:[%s3735_s11 + $0x48] sm:$0x3] %v3906_v21  ;;  %v1993_v5 = vrot.slane %v3906_v21, 1  ;;  %v1985_v21 = vsel %vm1982_vm11, %v1983_v40, %v1984_v47 }
  0xb0   : > { %2817 = vmatpush3.bf16.msra.mxu0 %v2997_v4 }
  0xb1   : > { %2818 = vmatprep.subr.bf16.mxu0 %v2998_v44 }
  0xb4   : > { %2819 = vmatpush3.bf16.msra.mxu0 %v2998_v44 }
  0xb5   : > { %2820 = vmatprep.subr.bf16.mxu0 %v2999_v36 }
  0xb8   : > { %2821 = vmatpush3.bf16.msra.mxu0 %v2999_v36  ;;  %v2000_v36 = vsel %vm1982_vm11, %v1998_v22, %v1999_v41 }
  0xbb   : > { %2823 = vmatmul.mubr.bf16.vlgmr.msra.gmra.mrb[0].mxu0 %v3614_v9 }
 0x161   : > { %v2704_v45 = vpop.f32.mrb[0].mxu1 }
 0x162   : > { %v1162_v25 = vpop.f32.mrb[1].mxu1  ;;  %v2846_v12 = vadd.f32 %v2704_v45, %v3784_v17 }
 0x163   : > { %v3777_v39 = vpop.f32.mrb[2].mxu1 }
 0x164   : > { %v3779_v7 = vpop.f32.mrb[3].mxu1  ;;  %v2850_v18 = vadd.f32 %v3777_v39, %v3784_v17 }
 0x165   : > { %v2852_v20 = vadd.f32 %v3784_v17, %v3779_v7 }
 0x169   : > { %v2708_v42 = vpop.f32.mrb[4].mxu1 }
 0x16a   : > { %v1178_v33 = vpop.f32.mrb[5].mxu1  ;;  %v2854_v35 = vadd.f32 %v2708_v42, %v3784_v17  ;;  %v1987_v42 = vrot.slane %v3140_v28, 1 }
 0x16b   : > { %v2709_v13 = vpop.f32.mrb[6].mxu1  ;;  %v2857_v51 = vadd.f32 %v3784_v17, %v1178_v33  ;;  %v2848_v33 = vadd.f32 %v3784_v17, %v1162_v25  ;;  %v1994_v25 = vsel %vm1982_vm11, %v1992_v1, %v1993_v5 }
 0x16c   : > { %v1181_v6 = vpop.f32.mrb[7].mxu1  ;;  %v2860_v43 = vadd.f32 %v2709_v13, %v3784_v17  ;;  %v1988_v39 = vsel %vm1982_vm11, %v1986_v29, %v1987_v42 }
 0x16d   : > { %v2863_v2 = vadd.f32 %v3784_v17, %v1181_v6 }
 0x176   : > { %v2804_v50 = vpop.f32.mrb[4].mxu0 }
 0x177   : > { %v2855_v9 = vadd.f32 %v2854_v35, %v2804_v50  ;;  %v1793_v10 = vpop.f32.mrb[5].mxu0 }
 0x178   : > { %v2858_v53 = vadd.f32 %v2857_v51, %v1793_v10  ;;  %v2805_v52 = vpop.f32.mrb[6].mxu0 }
 0x179   : > { %v2861_v14 = vadd.f32 %v2860_v43, %v2805_v52  ;;  %v1796_v34 = vpop.f32.mrb[7].mxu0 }
 0x17a   : > { %v2864_v16 = vadd.f32 %v2863_v2, %v1796_v34 }
 0x181   : > { %v2828_v24 = vpop.f32.mrb[8].mxu1 }
 0x182   : > { %v2856_v58 = vadd.f32 %v2855_v9, %v2828_v24  ;;  %v1938_v0 = vpop.f32.mrb[9].mxu1 }
 0x183   : > { %v2859_v62 = vadd.f32 %v2858_v53, %v1938_v0  ;;  %v2829_v57 = vpop.f32.mrb[10].mxu1 }
 0x184   : > { %v2021_v63 = vsel %vm3799_vm12, %v2856_v58, %v2003_v32  ;;  %v2862_v4 = vadd.f32 %v2861_v14, %v2829_v57  ;;  %v1941_v44 = vpop.f32.mrb[11].mxu1 }
 0x185   : > { %2449 = vst [vmem:[%s3735_s11 + $0x71] sm:$0xff] %v2021_v63  ;;  %v2019_v46 = vsel %vm3799_vm12, %v2859_v62, %v1997_v8  ;;  %v2865_v60 = vadd.f32 %v2864_v16, %v1941_v44  ;;  %v2071_v37 = vmul.f32 %v2021_v63, %v2021_v63 }
 0x186   : > { %2447 = vst [vmem:[%s3735_s11 + $0x51] sm:$0xff] %v2019_v46  ;;  %v2022_v11 = vsel %vm3799_vm12, %v2862_v4, %v2006_v59  ;;  %v2069_v34 = vmul.f32 %v2019_v46, %v2019_v46 }
 0x187   : > { %2450 = vst [vmem:[%s3735_s11 + $0x81] sm:$0xff] %v2022_v11  ;;  %v2020_v15 = vsel %vm3799_vm12, %v2865_v60, %v2000_v36  ;;  %v2072_v41 = vmul.f32 %v2022_v11, %v2022_v11 }
 0x188   : > { %2448 = vst [vmem:[%s3735_s11 + $0x61] sm:$0xff] %v2020_v15  ;;  %v2070_v56 = vmul.f32 %v2020_v15, %v2020_v15 }
 0x18e   : > { %v2824_v30 = vpop.f32.mrb[0].mxu0 }
 0x18f   : > { %v2847_v19 = vadd.f32 %v2846_v12, %v2824_v30  ;;  %v1922_v27 = vpop.f32.mrb[1].mxu0 }
 0x190   : > { %v2849_v28 = vadd.f32 %v2848_v33, %v1922_v27  ;;  %v2825_v45 = vpop.f32.mrb[2].mxu0 }
 0x191   : > { %v2017_v13 = vsel %vm3799_vm12, %v2847_v19, %v1991_v31  ;;  %v2851_v6 = vadd.f32 %v2850_v18, %v2825_v45  ;;  %v1925_v35 = vpop.f32.mrb[3].mxu0 }
 0x192   : > { %2445 = vst [vmem:[%s3735_s11 + $0x31] sm:$0xff] %v2017_v13  ;;  %v2015_v51 = vsel %vm3799_vm12, %v2849_v28, %v1985_v21  ;;  %v2853_v43 = vadd.f32 %v2852_v20, %v1925_v35  ;;  %v2067_v10 = vmul.f32 %v2017_v13, %v2017_v13 }
 0x193   : > { %2443 = vst [vmem:[%s3735_s11 + $0x11] sm:$0xff] %v2015_v51  ;;  %v2018_v7 = vsel %vm3799_vm12, %v2851_v6, %v1994_v25  ;;  %v2065_v50 = vmul.f32 %v2015_v51, %v2015_v51 }
 0x194   : > { %2446 = vst [vmem:[%s3735_s11 + $0x41] sm:$0xff] %v2018_v7  ;;  %v2016_v17 = vsel %vm3799_vm12, %v2853_v43, %v1988_v39  ;;  %v2068_v53 = vmul.f32 %v2018_v7, %v2018_v7 }
 0x195   : > { %2444 = vst [vmem:[%s3735_s11 + $0x21] sm:$0xff] %v2016_v17  ;;  %v2052_v2 = vadd.f32 %v2016_v17, %v2015_v51  ;;  %v2066_v9 = vmul.f32 %v2016_v17, %v2016_v17 }
 0x197   : > { %v2053_v48 = vadd.f32 %v2052_v2, %v2017_v13  ;;  %v2073_v23 = vadd.f32 %v2066_v9, %v2065_v50 }
 0x199   : > { %v2074_v52 = vadd.f32 %v2073_v23, %v2067_v10  ;;  %v2054_v14 = vadd.f32 %v2053_v48, %v2018_v7 }
 0x19b   : > { %v2055_v16 = vadd.f32 %v2054_v14, %v2019_v46  ;;  %v2075_v61 = vadd.f32 %v2074_v52, %v2068_v53 }
 0x19d   : > { %v2056_v54 = vadd.f32 %v2055_v16, %v2020_v15  ;;  %v2076_v38 = vadd.f32 %v2075_v61, %v2069_v34 }
 0x19f   : > { %v2057_v55 = vadd.f32 %v2056_v54, %v2021_v63  ;;  %v2077_v22 = vadd.f32 %v2076_v38, %v2070_v56 }
 0x1a1   : > { %v2058_v3 = vadd.f32 %v2057_v55, %v2022_v11  ;;  %v2078_v24 = vadd.f32 %v2077_v22, %v2071_v37 }
 0x1a3   : > { %v2059_v32 = vrot.slane %v2058_v3, 4  ;;  %v2079_v58 = vadd.f32 %v2078_v24, %v2072_v41 }
 0x1a5   : > { %v2060_v0 = vadd.f32 %v2059_v32, %v2058_v3  ;;  %v2080_v8 = vrot.slane %v2079_v58, 4 }
 0x1a7   : > { %v2061_v62 = vrot.slane %v2060_v0, 2  ;;  %v2081_v57 = vadd.f32 %v2080_v8, %v2079_v58 }
 0x1a9   : > { %v2062_v59 = vadd.f32 %v2061_v62, %v2060_v0  ;;  %v2082_v4 = vrot.slane %v2081_v57, 2 }
 0x1ab   : > { %v2063_v44 = vrot.slane %v2062_v59, 1  ;;  %v2083_v36 = vadd.f32 %v2082_v4, %v2081_v57 }
 0x1ad   : > { %v2084_v46 = vrot.slane %v2083_v36, 1  ;;  %v2064_v63 = vadd.f32 %v2063_v44, %v2062_v59 }
 0x1af   : > { %v2085_v60 = vadd.f32 %v2084_v46, %v2083_v36 }
 0x1b1   : > { %v2087_v11 = vsel %vm2086_vm13, %v2064_v63, %v2085_v60 }
 0x1b2   : > { %2088 = vst [vmem:[%s262_s16] sm:$0x3] %v2087_v11 }
 0x1b3 PF: > { %s17_s21 = sadd.s32 1, %s3006_s21  }
 0x1b4   : > { %p14_p4 = scmp.ge.s32.totalorder %s17_s21, 6  }
 0x1b6   :  { %16 = sbr.rel (!%p14_p4) target bundleno = 1 (0x1), region = 91 }

// kernel: dense_block_forward.5
= control target key start
LH: loop header
LB: loop body
LE: loop exit
PB: predicated region body
PF: predicated region fallthrough
CT: control target
= control target key end

     0   :  { %12 = vsyncpa [#allocation3], 0  ;;  %s4047_s0 = inlined_call_operand.vmem [shape: f32[4,10,10,128], index: 0, kind: input, shape index: {}, may-alias: {0,5}]   ;;  %s4048_s1 = inlined_call_operand.vmem [shape: f32[1,128], index: 1, kind: input, shape index: {}]   ;;  %s4049_s2 = inlined_call_operand.vmem [shape: f32[1,128], index: 2, kind: input, shape index: {}]   ;;  %s4050_s3 = inlined_call_operand.vmem [shape: bf16[9,128,128], index: 3, kind: input, shape index: {}]   ;;  %s4051_s4 = inlined_call_operand.vmem [shape: f32[1,128], index: 4, kind: input, shape index: {}]   ;;  %s4052_s5 = inlined_call_operand.vmem [shape: f32[4,10,10,128], index: 5, kind: output, shape index: {0}, may-alias: {0,5}]   ;;  %s4053_s6 = inlined_call_operand.hbm [shape: f32[4,2,128], index: 6, kind: output, shape index: {1}]  }
   0x1   :  { %14 = vsyncpa [#allocation3 + $0x1], 0  ;;  %s3153_s21 = smov 0   ;;  %s3155_s22 = smov 0  }
   0x2   :  { %s3157_s23 = smov 0   ;;  %s3159_s24 = smov 0  }
   0x3 LB: > { %s3174_s25 = sadd.s32 4294967295, %s3114_s24   ;;  %s2195_s26 = sadd.s32 4294967294, %s3114_s24   ;;  %s3114_s24 = sphi %s3159_s24, %s4114_s24   ;;  %s3110_s23 = sphi %s3157_s23, %s4113_s23   ;;  %s3106_s22 = sphi %s3155_s22, %s4112_s22   ;;  %s3102_s21 = sphi %s3153_s21, %s4111_s21  }
   0x4   : > { %s3178_s27 = sadd.s32 1, %s3114_s24   ;;  %s163_s28 = sadd.s32 1, %s3110_s23 }
   0x5   : > { %s160_s29 = ssub.s32 %s3114_s24, %s3178_s27  ;;  %p173_p0 = scmp.ne.s32.totalorder %s3110_s23, %s3106_s22 }
   0x6   : > { %p161_p1 = scmp.eq.s32.totalorder %s160_s29, 0  ;;  %p174_p2 = scmp.eq.s32.totalorder %s3174_s25, 3 }
   0x7   : > { %p179_p3 = scmp.ne.s32.totalorder %s3106_s22, %s3102_s21  ;;  %p180_p4 = scmp.eq.s32.totalorder %s2195_s26, 3 }
   0x8   : > { %s3189_s30 = scalar_select %p161_p1, %s3110_s23, %s163_s28  }
   0x9   : > { %p3191_p5 = por %p174_p2, %p173_p0  ;;  %p3195_p6 = por %p180_p4, %p179_p3 }
   0xa   : > { %p2198_p7 = scmp.ge.s32.totalorder %s3114_s24, 1  ;;  %p218_p8 = scmp.lt.s32.totalorder %s3114_s24, 5 }
   0xc   : > { %p219_p9 = pnand %p2198_p7, %p218_p8 }
   0xe   : > { %222 = sbr.rel (%p219_p9) target bundleno = 456 (0x1c8), region = 40 }
  0x15   : > { %v2980_v0 = vld [vmem:[%s4050_s3] sm:$0xff]   ;;  %p253_p10 = scmp.lt.s32.totalorder %s3174_s25, 3  ;;  %v2982_v2 = vld [vmem:[%s4050_s3 + $0x8] sm:$0xff]   ;;  %v2984_v4 = vld [vmem:[%s4050_s3 + $0x10] sm:$0xff]   ;;  %v4054_v8 = vlaneseq  ;;  %v4055_v10 = vmov 0.0|0.0   ;;  %vm864_vm6 = vcmask 1042432  }
  0x16   : > { %v2981_v1 = vld [vmem:[%s4050_s3 + $0x100] sm:$0xff]   ;;  %2635 = vmatprep.subr.bf16.mxu1 %v2980_v0  ;;  %v2983_v3 = vld [vmem:[%s4050_s3 + $0x108] sm:$0xff]   ;;  %v2985_v5 = vld [vmem:[%s4050_s3 + $0x110] sm:$0xff]   ;;  %v3235_v11 = vcombine.low %v4055_v10, %v4055_v10  ;;  %v3255_v15 = vcombine.high %v4055_v10, %v4055_v10  ;;  %vm595_vm2 = vsmask.f32 3328  ;;  %vm865_vm7 = vcmask 1046532  }
  0x17   : > { %2731 = vmatprep.subr.bf16.mxu0 %v2981_v1  ;;  %2636 = vmatpush3.bf16.msra.mxu1 %v2980_v0  ;;  %s3221_s26 = scalar_select %p253_p10, %s3174_s25, 3  ;;  %v2986_v6 = vld [vmem:[%s4050_s3 + $0x18] sm:$0xff]   ;;  %v2988_v9 = vld [vmem:[%s4050_s3 + $0x20] sm:$0xff]   ;;  %v3248_v13 = vshrl.u32 %v4054_v8, 7  ;;  %v2990_v14 = vld [vmem:[%s4050_s3 + $0x28] sm:$0xff]   ;;  %vm1982_vm11 = vcmask 1046528  }
  0x18   : > { %2732 = vmatpush3.bf16.msra.mxu0 %v2981_v1  ;;  %2637 = vmatprep.subr.bf16.mxu1 %v2982_v2  ;;  %v2987_v7 = vld [vmem:[%s4050_s3 + $0x118] sm:$0xff]   ;;  %v2989_v12 = vld [vmem:[%s4050_s3 + $0x120] sm:$0xff]   ;;  %v2991_v16 = vld [vmem:[%s4050_s3 + $0x128] sm:$0xff]   ;;  %v599_v21 = vshrl.u32 %v3235_v11, 16  ;;  %v602_v22 = vshll.u32 %v3235_v11, 16  ;;  %v608_v29 = vshll.u32 %v3255_v15, 16 }
  0x19   : > { %2733 = vmatprep.subr.bf16.mxu0 %v2983_v3  ;;  %s2939_s11 = smul.u32 160, %s3221_s26  ;;  %v3261_v17 = vadd.s32 8, %v3248_v13  ;;  %v3277_v23 = vld [vmem:[%s4048_s1] ss:$0 sm:$0xff]  ;;  %vm361_vm0 = vcmp.ge.s32.totalorder %v3248_v13, 1  ;;  %v2992_v33 = vld [vmem:[%s4050_s3 + $0x30] sm:$0xff]   ;;  %vm3629_vm8 = vmor %vm864_vm6, %vm865_vm7 }
  0x1a   : > { %v3282_v24 = vld [vmem:[%s4049_s2] ss:$0 sm:$0xff]  ;;  %v601_v37 = vrot.slane %v599_v21, 4  ;;  %v2993_v38 = vld [vmem:[%s4050_s3 + $0x130] sm:$0xff]   ;;  %v604_v42 = vrot.slane %v602_v22, 5  ;;  %v3323_v47 = vrot.slane %v608_v29, 5  ;;  %vm3393_vm4 = vmpackc.low %vm361_vm0, %vm361_vm0 }
  0x1b   : > { %2638 = vmatpush3.bf16.msra.mxu1 %v2982_v2  ;;  %s3245_s18 = scalar_lea.vmem %s4047_s0, %s2939_s11  ;;  %vm368_vm1 = vcmp.le.s32.totalorder %v3261_v17, 8  ;;  %vm596_vm3 = vsmask.f32 7440  ;;  %v2994_v53 = vld [vmem:[%s4050_s3 + $0x38] sm:$0xff]   ;;  %s3886_s16 = scalar_lea.vmem %s4052_s5, %s2939_s11  ;;  %vm2086_vm13 = vcmask 1040384  }
  0x1c   : > { %2734 = vmatpush3.bf16.msra.mxu0 %v2983_v3  ;;  %2639 = vmatprep.subr.bf16.mxu1 %v2984_v4  ;;  %v3264_v18 = vld [vmem:[%s3245_s18 + $0x10] sm:$0xff]  ;;  %v3267_v19 = vld [vmem:[%s3245_s18 + $0x18] sm:$0x3]  ;;  %v3270_v20 = vld [vmem:[%s3245_s18 + $0x20] sm:$0xff]  ;;  %v605_v2 = vor.u32 %v604_v42, %v601_v37  ;;  %s2471_s19 = sshll.u32 %s3174_s25, 5  ;;  %s3117_s25 = smov [#allocation2]  }
  0x1d   : > { %2735 = vmatprep.subr.bf16.mxu0 %v2985_v5  ;;  %v293_v25 = vmul.f32 %v3277_v23, %v3264_v18  ;;  %v294_v26 = vmul.f32 %v3277_v23, %v3267_v19  ;;  %v295_v27 = vmul.f32 %v3277_v23, %v3270_v20  ;;  %v3291_v28 = vld [vmem:[%s3245_s18 + $0x28] sm:$0x3]  ;;  %v3297_v30 = vld [vmem:[%s3245_s18 + $0x30] sm:$0xff]  ;;  %v3300_v31 = vld [vmem:[%s3245_s18 + $0x38] sm:$0x3]  ;;  %s4005_s10 = scalar_lea.hbm %s4053_s6, %s2471_s19  ;;  %s3056_s14 = sshll.u32 %s3117_s25, 4  ;;  %s3057_s14 = int_to_ptr.vmem [resolvable:$false] %s3056_s14 }
  0x1e   : > { %v296_v32 = vmul.f32 %v3277_v23, %v3291_v28  ;;  %v297_v39 = vmul.f32 %v3277_v23, %v3297_v30  ;;  %v298_v40 = vmul.f32 %v3277_v23, %v3300_v31  ;;  %v3319_v43 = vld [vmem:[%s3245_s18 + $0x40] sm:$0xff]  ;;  %v3326_v48 = vld [vmem:[%s3245_s18 + $0x48] sm:$0x3]  ;;  %v2995_v58 = vld [vmem:[%s4050_s3 + $0x138] sm:$0xff]   ;;  %s3058_s15 = scalar_lea.vmem %s3057_s14, 64 }
  0x1f   : > { %2640 = vmatpush3.bf16.msra.mxu1 %v2984_v4  ;;  %v320_v34 = vadd.f32 %v3282_v24, %v293_v25  ;;  %v321_v35 = vadd.f32 %v3282_v24, %v294_v26  ;;  %v322_v36 = vadd.f32 %v3282_v24, %v295_v27  ;;  %4078 = vst [vmem:[#allocation5_spill] sm:$0xff] %v3319_v43  ;;  %4079 = vst [vmem:[#allocation6_spill] sm:$0xff] %v3326_v48  ;;  %v2996_v4 = vld [vmem:[%s4050_s3 + $0x40] sm:$0xff]   ;;  %v3010_v13 = vld [vmem:[%s4050_s3 + $0x78] sm:$0xff]  }
  0x20   : > { %2736 = vmatpush3.bf16.msra.mxu0 %v2985_v5  ;;  %2641 = vmatprep.subr.bf16.mxu1 %v2986_v6  ;;  %v323_v41 = vadd.f32 %v3282_v24, %v296_v32  ;;  %v324_v49 = vadd.f32 %v3282_v24, %v297_v39  ;;  %v325_v50 = vadd.f32 %v3282_v24, %v298_v40  ;;  %v3383_v27 = vld [vmem:[%s4050_s3 + $0x140] sm:$0xff]   ;;  %vm3408_vm5 = vmor %vm595_vm2, %vm596_vm3 }
  0x21   : > { %2737 = vmatprep.subr.bf16.mxu0 %v2987_v7  ;;  %v340_v44 = vmax.f32 %v320_v34, 0.0  ;;  %v341_v45 = vmax.f32 %v321_v35, 0.0  ;;  %v3321_v46 = vmax.f32 %v322_v36, 0.0  ;;  %v299_v52 = vmul.f32 %v3277_v23, %v3319_v43 }
  0x22   : > { %v343_v51 = vmax.f32 %v323_v41, 0.0  ;;  %v3352_v62 = vmax.f32 %v324_v49, 0.0  ;;  %v345_v63 = vmax.f32 %v325_v50, 0.0  ;;  %v606_v35 = vrot.slane %v605_v2, 4 }
  0x23   : > { %2642 = vmatpush3.bf16.msra.mxu1 %v2986_v6  ;;  %v375_v54 = vsel %vm361_vm0, %v340_v44, 0.0  ;;  %v376_v55 = vsel %vm368_vm1, %v341_v45, 0.0  ;;  %v3340_v56 = vpack.c.bf16 %v3321_v46, %v340_v44  ;;  %v377_v57 = vsel %vm361_vm0, %v3321_v46, 0.0  ;;  %v3050_v44 = vld [vmem:[%s4050_s3 + $0x230] sm:$0xff]  }
  0x24   : > { %2738 = vmatpush3.bf16.msra.mxu0 %v2987_v7  ;;  %2643 = vmatprep.subr.bf16.mxu1 %v2988_v9  ;;  %v394_v59 = vpack.c.bf16 %v376_v55, %v375_v54  ;;  %v3348_v60 = vpack.c.bf16 %v375_v54, %v375_v54  ;;  %v3350_v61 = vpack.c.bf16 %v376_v55, %v376_v55  ;;  %v378_v0 = vsel %vm368_vm1, %v343_v51, 0.0 }
  0x25   : > { %2739 = vmatprep.subr.bf16.mxu0 %v2989_v12  ;;  %v3356_v1 = vpack.c.bf16 %v377_v57, %v377_v57  ;;  %v379_v5 = vsel %vm361_vm0, %v3352_v62, 0.0  ;;  %v300_v6 = vmul.f32 %v3277_v23, %v3326_v48  ;;  %v326_v7 = vadd.f32 %v3282_v24, %v299_v52  ;;  %v2998_v52 = vld [vmem:[%s4050_s3 + $0x48] sm:$0xff]  }
  0x26   : > { %v2205_v3 = vcombine.low %v4055_v10, %v394_v59  ;;  %v616_v22 = vshll.u32 %v3348_v60, 16  ;;  %v622_v25 = vshll.u32 %v3350_v61, 16  ;;  %v3400_v50 = vpack.c.bf16 %v3352_v62, %v3321_v46 }
  0x27   : > { %2644 = vmatpush3.bf16.msra.mxu1 %v2988_v9  ;;  %v380_v9 = vsel %vm368_vm1, %v345_v63, 0.0  ;;  %v627_v26 = vshrl.u32 %v3356_v1, 16  ;;  %v630_v32 = vshll.u32 %v3356_v1, 16  ;;  %v327_v51 = vadd.f32 %v3282_v24, %v300_v6 }
  0x28   : > { %2740 = vmatpush3.bf16.msra.mxu0 %v2989_v12  ;;  %2645 = vmatprep.subr.bf16.mxu1 %v2990_v14  ;;  %v3370_v12 = vpack.c.bf16 %v378_v0, %v378_v0  ;;  %v3375_v21 = vpack.c.bf16 %v380_v9, %v380_v9  ;;  %v618_v36 = vrot.slane %v616_v22, 5  ;;  %v624_v39 = vrot.slane %v622_v25, 5  ;;  %v3442_v22 = vld [vmem:[%s3245_s18 + $0x60] sm:$0xff] }
  0x29   : > { %2741 = vmatprep.subr.bf16.mxu0 %v2991_v16  ;;  %2651 = vmatprep.mubr.bf16.mxu1 %v2205_v3  ;;  %v629_v37 = vrot.slane %v627_v26, 4  ;;  %v632_v40 = vrot.slane %v630_v32, 5  ;;  %v3412_v57 = vmax.f32 %v326_v7, 0.0  ;;  %v3417_v46 = vsel %vm3408_vm5, %v606_v35, %v3323_v47  ;;  %4085 = vst [vmem:[#allocation8_spill] sm:$0xff] %v3442_v22  ;;  %v3453_v32 = vld [vmem:[%s3245_s18 + $0x58] sm:$0x3] }
  0x2a   : > { %v650_v42 = vshll.u32 %v3375_v21, 16  ;;  %v347_v63 = vmax.f32 %v327_v51, 0.0  ;;  %4086 = vst [vmem:[#allocation9_spill] sm:$0xff] %v3453_v32  ;;  %v873_v17 = vrot.slane %v3350_v61, 5  ;;  %v877_v61 = vrot.slane %v3370_v12, 5 }
  0x2b   : > { %2646 = vmatpush3.bf16.msra.mxu1 %v2990_v14  ;;  %v3372_v14 = vpack.c.bf16 %v379_v5, %v379_v5  ;;  %v633_v54 = vor.u32 %v632_v40, %v629_v37  ;;  %v381_v3 = vsel %vm361_vm0, %v3412_v57, 0.0  ;;  %v3426_v5 = vld [vmem:[%s3245_s18 + $0x50] sm:$0xff] }
  0x2c   : > { %2742 = vmatpush3.bf16.msra.mxu0 %v2991_v16  ;;  %2647 = vmatprep.subr.bf16.mxu1 %v2992_v33  ;;  %v613_v16 = vshrl.u32 %v3348_v60, 16  ;;  %v652_v2 = vrot.slane %v650_v42, 5  ;;  %4084 = vst [vmem:[#allocation7_spill] sm:$0xff] %v3426_v5  ;;  %v382_v9 = vsel %vm368_vm1, %v347_v63, 0.0 }
  0x2d   : > { %2743 = vmatprep.subr.bf16.mxu0 %v2993_v38  ;;  %v641_v34 = vshrl.u32 %v3372_v14, 16  ;;  %v634_v0 = vrot.slane %v633_v54, 4  ;;  %v3448_v26 = vpack.c.bf16 %v382_v9, %v382_v9 }
  0x2e   : > { %v615_v29 = vrot.slane %v613_v16, 4  ;;  %v3436_v16 = vpack.c.bf16 %v381_v3, %v381_v3  ;;  %v3494_v3 = vld [vmem:[%s3245_s18 + $0x88] sm:$0x3] }
  0x2f   : > { %2648 = vmatpush3.bf16.msra.mxu1 %v2992_v33  ;;  %v636_v33 = vshll.u32 %v3370_v12, 16  ;;  %v643_v41 = vrot.slane %v641_v34, 4  ;;  %v664_v40 = vshll.u32 %v3448_v26, 16  ;;  %4091 = vst [vmem:[#allocation14_spill] sm:$0xff] %v3494_v3  ;;  %v3007_v12 = vld [vmem:[%s4050_s3 + $0x168] sm:$0xff]  }
  0x30   : > { %2744 = vmatpush3.bf16.msra.mxu0 %v2993_v38  ;;  %2649 = vmatprep.subr.bf16.mxu1 %v2994_v53  ;;  %v644_v38 = vshll.u32 %v3372_v14, 16  ;;  %v619_v45 = vor.u32 %v618_v36, %v615_v29  ;;  %v301_v29 = vmul.f32 %v3277_v23, %v3426_v5  ;;  %v655_v36 = vshrl.u32 %v3436_v16, 16 }
  0x31   : > { %2745 = vmatprep.subr.bf16.mxu0 %v2995_v58  ;;  %v638_v55 = vrot.slane %v636_v33, 5  ;;  %v3456_v33 = vld [vmem:[%s3245_s18 + $0x68] sm:$0x3]  ;;  %v658_v37 = vshll.u32 %v3436_v16, 16 }
  0x32   : > { %v646_v49 = vrot.slane %v644_v38, 5  ;;  %4087 = vst [vmem:[#allocation10_spill] sm:$0xff] %v3456_v33  ;;  %v3465_v38 = vld [vmem:[%s3245_s18 + $0x70] sm:$0xff]  ;;  %v328_v42 = vadd.f32 %v3282_v24, %v301_v29  ;;  %v657_v51 = vrot.slane %v655_v36, 4 }
  0x33   : > { %2650 = vmatpush3.bf16.msra.mxu1 %v2994_v53  ;;  %v3446_v25 = vsel %vm3408_vm5, %v634_v0, %v638_v55  ;;  %4088 = vst [vmem:[#allocation11_spill] sm:$0xff] %v3465_v38  ;;  %v660_v54 = vrot.slane %v658_v37, 5  ;;  %v303_v55 = vmul.f32 %v3277_v23, %v3442_v22  ;;  %v881_v53 = vrot.slane %v3375_v21, 5 }
  0x34   : > { %2746 = vmatpush3.bf16.msra.mxu0 %v2995_v58  ;;  %2659 = vmatprep.subr.bf16.mxu1 %v2996_v4  ;;  %v620_v58 = vrot.slane %v619_v45, 4  ;;  %v647_v59 = vor.u32 %v646_v49, %v643_v41  ;;  %v3002_v41 = vld [vmem:[%s4050_s3 + $0x58] sm:$0xff]   ;;  %v302_v45 = vmul.f32 %v3277_v23, %v3453_v32  ;;  %v3488_v63 = vmax.f32 %v328_v42, 0.0 }
  0x35   : > { %2755 = vmatprep.subr.bf16.mxu0 %v3383_v27  ;;  %v3479_v49 = vld [vmem:[%s3245_s18 + $0x78] sm:$0x3]  ;;  %v330_v9 = vadd.f32 %v3282_v24, %v303_v55 }
  0x36   : > { %2652 = vmatmul.mubr.msk.bf16.vlgmr.msra.gmra.mrb[0].mxu1 %vm3393_vm4, %v3400_v50  ;;  %v3432_v6 = vsel %vm3408_vm5, %v620_v58, %v624_v39  ;;  %v648_v7 = vrot.slane %v647_v59, 4  ;;  %4089 = vst [vmem:[#allocation12_spill] sm:$0xff] %v3479_v49  ;;  %v3486_v58 = vld [vmem:[%s3245_s18 + $0x80] sm:$0xff]  ;;  %v666_v59 = vrot.slane %v664_v40, 5  ;;  %v329_v0 = vadd.f32 %v3282_v24, %v302_v45 }
  0x37   : > { %2660 = vmatpush3.bf16.msra.mxu1 %v2996_v4  ;;  %v3000_v4 = vld [vmem:[%s4050_s3 + $0x50] sm:$0xff]   ;;  %v2343_v35 = vcombine.low %v3432_v6, %v3446_v25  ;;  %4090 = vst [vmem:[#allocation13_spill] sm:$0xff] %v3486_v58  ;;  %v383_v36 = vsel %vm361_vm0, %v3488_v63, 0.0  ;;  %v3505_v37 = vpack.c.bf16 %v3488_v63, %v3412_v57 }
  0x38   : > { %2661 = vmatprep.subr.bf16.mxu1 %v2998_v52  ;;  %v3469_v39 = vsel %vm3408_vm5, %v648_v7, %v652_v2  ;;  %v305_v2 = vmul.f32 %v3277_v23, %v3465_v38  ;;  %v661_v7 = vor.u32 %v660_v54, %v657_v51  ;;  %v349_v40 = vmax.f32 %v329_v0, 0.0  ;;  %v3004_v51 = vld [vmem:[%s4050_s3 + $0x60] sm:$0xff]  }
  0x39   : > { %2747 = vmatprep.mubr.bf16.mxu0 %v2343_v35  ;;  %v306_v35 = vmul.f32 %v3277_v23, %v3479_v49  ;;  %v3511_v54 = vpack.c.bf16 %v383_v36, %v383_v36  ;;  %2655 = vmatprep.mubr.msk.bf16.mxu1 %vm3393_vm4, %v3505_v37  ;;  %v3001_v49 = vld [vmem:[%s4050_s3 + $0x150] sm:$0xff]  }
  0x3a   : > { %v332_v42 = vadd.f32 %v3282_v24, %v305_v2  ;;  %v662_v45 = vrot.slane %v661_v7, 4  ;;  %v307_v2 = vmul.f32 %v3277_v23, %v3486_v58  ;;  %v308_v7 = vmul.f32 %v3277_v23, %v3494_v3  ;;  %v3008_v58 = vld [vmem:[%s4050_s3 + $0x70] sm:$0xff]  }
  0x3b   : > { %2662 = vmatpush3.bf16.msra.mxu1 %v2998_v52  ;;  %v304_v52 = vmul.f32 %v3277_v23, %v3456_v33  ;;  %v2999_v23 = vld [vmem:[%s4050_s3 + $0x148] sm:$0xff]  }
  0x3c   : > { %2663 = vmatprep.subr.bf16.mxu1 %v3000_v4  ;;  %v3520_v0 = vmax.f32 %v332_v42, 0.0  ;;  %v3577_v32 = vadd.f32 %v3282_v24, %v307_v2  ;;  %v335_v5 = vadd.f32 %v3282_v24, %v308_v7  ;;  %v3003_v7 = vld [vmem:[%s4050_s3 + $0x158] sm:$0xff]  }
  0x3d   : > { %v331_v29 = vadd.f32 %v3282_v24, %v304_v52  ;;  %v384_v52 = vsel %vm368_vm1, %v349_v40, 0.0 }
  0x3e   : > { %v3535_v40 = vpack.c.bf16 %v384_v52, %v384_v52  ;;  %v672_v52 = vshll.u32 %v3511_v54, 16  ;;  %v387_v10 = vsel %vm361_vm0, %v3520_v0, 0.0 }
  0x3f   : > { %2664 = vmatpush3.bf16.msra.mxu1 %v3000_v4  ;;  %v3513_v4 = vmax.f32 %v330_v9, 0.0  ;;  %v351_v55 = vmax.f32 %v331_v29, 0.0  ;;  %v3528_v9 = vsel %vm3408_vm5, %v662_v45, %v666_v59  ;;  %v669_v45 = vshrl.u32 %v3511_v54, 16 }
  0x40   : > { %2665 = vmatprep.subr.bf16.mxu1 %v3002_v41  ;;  %v2344_v42 = vcombine.low %v3469_v39, %v3528_v9  ;;  %v678_v47 = vshll.u32 %v3535_v40, 16  ;;  %v674_v38 = vrot.slane %v672_v52, 5 }
  0x41   : > { %v385_v29 = vsel %vm361_vm0, %v3513_v4, 0.0  ;;  %v386_v36 = vsel %vm368_vm1, %v351_v55, 0.0  ;;  %v3006_v55 = vld [vmem:[%s4050_s3 + $0x68] sm:$0xff]  }
  0x42   : > { %v3542_v8 = vpack.c.bf16 %v385_v29, %v385_v29  ;;  %v3544_v59 = vpack.c.bf16 %v386_v36, %v386_v36  ;;  %2748 = vmatmul.mubr.bf16.vlgmr.msra.gmra.mrb[0].mxu0 %v2344_v42  ;;  %v671_v29 = vrot.slane %v669_v45, 4  ;;  %v3570_v42 = vpack.c.bf16 %v387_v10, %v387_v10 }
  0x43   : > { %2666 = vmatpush3.bf16.msra.mxu1 %v3002_v41  ;;  %v3557_v41 = vpack.c.bf16 %v3520_v0, %v3513_v4  ;;  %2756 = vmatpush3.bf16.msra.mxu0 %v3383_v27  ;;  %v333_v45 = vadd.f32 %v3282_v24, %v306_v35  ;;  %v680_v27 = vrot.slane %v678_v47, 5  ;;  %v4092_v35 = vcombine.low %v3417_v46, %v3432_v6 }
  0x44   : > { %2667 = vmatprep.subr.bf16.mxu1 %v3004_v51  ;;  %v683_v36 = vshrl.u32 %v3542_v8, 16  ;;  %v686_v34 = vshll.u32 %v3542_v8, 16  ;;  %v692_v3 = vshll.u32 %v3544_v59, 16  ;;  %2757 = vmatprep.subr.bf16.mxu0 %v2999_v23  ;;  %v675_v52 = vor.u32 %v674_v38, %v671_v29 }
  0x45   : > { %2656 = vmatmul.mubr.msk.bf16.gmra.mrb[4].mxu1 %vm3393_vm4, %v3557_v41  ;;  %v353_v10 = vmax.f32 %v333_v45, 0.0  ;;  %v697_v48 = vshrl.u32 %v3570_v42, 16  ;;  %v354_v47 = vmax.f32 %v3577_v32, 0.0 }
  0x46   : > { %v685_v33 = vrot.slane %v683_v36, 4  ;;  %v688_v22 = vrot.slane %v686_v34, 5  ;;  %2675 = vmatprep.mubr.bf16.mxu1 %v4092_v35  ;;  %v694_v43 = vrot.slane %v692_v3, 5  ;;  %v700_v34 = vshll.u32 %v3570_v42, 16 }
  0x47   : > { %2668 = vmatpush3.bf16.msra.mxu1 %v3004_v51  ;;  %2758 = vmatpush3.bf16.msra.mxu0 %v2999_v23  ;;  %v676_v2 = vrot.slane %v675_v52, 4  ;;  %v355_v36 = vmax.f32 %v335_v5, 0.0  ;;  %v388_v38 = vsel %vm368_vm1, %v353_v10, 0.0  ;;  %v699_v24 = vrot.slane %v697_v48, 4  ;;  %v3005_v52 = vld [vmem:[%s4050_s3 + $0x160] sm:$0xff]  }
  0x48   : > { %2669 = vmatprep.subr.bf16.mxu1 %v3006_v55  ;;  %v689_v51 = vor.u32 %v688_v22, %v685_v33  ;;  %2759 = vmatprep.subr.bf16.mxu0 %v3001_v49  ;;  %v3595_v22 = vsel %vm361_vm0, %v354_v47, 0.0  ;;  %v3597_v33 = vpack.c.bf16 %v388_v38, %v388_v38  ;;  %v702_v5 = vrot.slane %v700_v34, 5  ;;  %v3012_v34 = vld [vmem:[%s4050_s3 + $0x80] sm:$0xff]  }
  0x49   : > { %v681_v48 = vsel %vm3408_vm5, %v676_v2, %v680_v27  ;;  %v3603_v3 = vsel %vm368_vm1, %v355_v36, 0.0  ;;  %v2516_v23 = vpack.c.bf16 %v3595_v22, %v3595_v22  ;;  %v2263_v2 = vrot.slane %v3356_v1, 9 }
  0x4a   : > { %v690_v6 = vrot.slane %v689_v51, 4  ;;  %v703_v29 = vor.u32 %v702_v5, %v699_v24  ;;  %v706_v45 = vshll.u32 %v3597_v33, 16  ;;  %v2517_v27 = vpack.c.bf16 %v3603_v3, %v3603_v3 }
  0x4b   : > { %2670 = vmatpush3.bf16.msra.mxu1 %v3006_v55  ;;  %2760 = vmatpush3.bf16.msra.mxu0 %v3001_v49  ;;  %v1205_v35 = vshrl.u32 %v2516_v23, 16  ;;  %v1208_v51 = vshll.u32 %v2516_v23, 16 }
  0x4c   : > { %2671 = vmatprep.subr.bf16.mxu1 %v3008_v58  ;;  %v3612_v55 = vsel %vm3408_vm5, %v690_v6, %v694_v43  ;;  %2761 = vmatprep.subr.bf16.mxu0 %v3003_v7  ;;  %v1214_v43 = vshll.u32 %v2517_v27, 16  ;;  %v704_v49 = vrot.slane %v703_v29, 4  ;;  %v708_v36 = vrot.slane %v706_v45, 5  ;;  %v3019_v6 = vld [vmem:[%s4050_s3 + $0x198] sm:$0xff]  }
  0x4d   : > { %v2345_v10 = vcombine.low %v681_v48, %v3612_v55  ;;  %v1207_v38 = vrot.slane %v1205_v35, 4  ;;  %v1210_v24 = vrot.slane %v1208_v51, 5  ;;  %v4095_v29 = vrot.slane %v3348_v60, 9 }
  0x4e   : > { %v1216_v5 = vrot.slane %v1214_v43, 5  ;;  %v3655_v60 = vcombine.low %v3528_v9, %v681_v48  ;;  %v2355_v35 = vrot.slane %v2516_v23, 9  ;;  %v1367_v43 = vrot.slane %v2517_v27, 5  ;;  %v3016_v23 = vld [vmem:[%s4050_s3 + $0x90] sm:$0xff]  }
  0x4f   : > { %2672 = vmatpush3.bf16.msra.mxu1 %v3008_v58  ;;  %2751 = vmatprep.mubr.bf16.mxu0 %v2345_v10  ;;  %v3635_v58 = vcombine.low %v3446_v25, %v3469_v39  ;;  %v1211_v1 = vor.u32 %v1210_v24, %v1207_v38  ;;  %v874_v45 = vsel %vm3629_vm8, %v4095_v29, %v873_v17  ;;  %v2261_v25 = vrot.slane %v3235_v11, 9  ;;  %v3009_v17 = vld [vmem:[%s4050_s3 + $0x170] sm:$0xff]  }
  0x50   : > { %2673 = vmatprep.subr.bf16.mxu1 %v3010_v13  ;;  %2762 = vmatpush3.bf16.msra.mxu0 %v3003_v7  ;;  %v3646_v10 = vsel %vm3629_vm8, %v2263_v2, %v877_v61  ;;  %v709_v39 = vsel %vm3408_vm5, %v704_v49, %v708_v36  ;;  %v869_v2 = vrot.slane %v3255_v15, 5  ;;  %v2264_v48 = vrot.slane %v3372_v14, 9 }
  0x51   : > { %2763 = vmatprep.subr.bf16.mxu0 %v3005_v52  ;;  %v1212_v7 = vrot.slane %v1211_v1, 4  ;;  %v2372_v51 = vcombine.low %v874_v45, %v3646_v10  ;;  %v3677_v15 = vsel %vm3629_vm8, %v2355_v35, %v1367_v43  ;;  %v885_v14 = vrot.slane %v3448_v26, 5  ;;  %v3020_v1 = vld [vmem:[%s4050_s3 + $0xa0] sm:$0xff]  }
  0x52   : > { %v3681_v27 = vsel %vm3629_vm8, %v2261_v25, %v869_v2  ;;  %v889_v61 = vrot.slane %v3535_v40, 5  ;;  %v3692_v49 = vcombine.low %v3612_v55, %v709_v39  ;;  %v2511_v36 = vpack.c.bf16 %v3513_v4, %v3488_v63  ;;  %v3018_v55 = vld [vmem:[%s4050_s3 + $0x98] sm:$0xff]   ;;  %v3015_v25 = vld [vmem:[%s4050_s3 + $0x188] sm:$0xff]   ;;  %v3021_v35 = vld [vmem:[%s4050_s3 + $0x1a0] sm:$0xff]  }
  0x53   : > { %2674 = vmatpush3.bf16.msra.mxu1 %v3010_v13  ;;  %v3014_v13 = vld [vmem:[%s4050_s3 + $0x88] sm:$0xff]   ;;  %v3662_v11 = vsel %vm3408_vm5, %v1212_v7, %v1216_v5  ;;  %v2453_v21 = vcombine.low %v3677_v15, %v3681_v27  ;;  %v3699_v26 = vpack.c.bf16 %v354_v47, %v3520_v0  ;;  %v893_v38 = vrot.slane %v3544_v59, 5  ;;  %v3048_v63 = vld [vmem:[%s4050_s3 + $0x220] sm:$0xff]  }
  0x54   : > { %2683 = vmatprep.subr.bf16.mxu1 %v3012_v34  ;;  %2764 = vmatpush3.bf16.msra.mxu0 %v3005_v52  ;;  %v2346_v9 = vcombine.low %v709_v39, %v3662_v11  ;;  %v2265_v52 = vrot.slane %v3436_v16, 9  ;;  %v3011_v16 = vld [vmem:[%s4050_s3 + $0x178] sm:$0xff]   ;;  %v2427_v40 = vcombine.low %v3662_v11, %v3417_v46  ;;  %v2285_v24 = vcombine.low %v3681_v27, %v874_v45  ;;  %v3022_v39 = vld [vmem:[%s4050_s3 + $0xa8] sm:$0xff]   ;;  %v264_v46 = vld [vmem:[%s3245_s18] sm:$0xff] }
  0x55   : > { %2765 = vmatprep.subr.bf16.mxu0 %v3007_v12  ;;  %v882_v32 = vsel %vm3629_vm8, %v2264_v48, %v881_v53  ;;  %v2268_v29 = vrot.slane %v3570_v42, 9  ;;  %v897_v45 = vrot.slane %v3597_v33, 5  ;;  %v3017_v42 = vld [vmem:[%s4050_s3 + $0x190] sm:$0xff]   ;;  %v3030_v2 = vld [vmem:[%s4050_s3 + $0xc8] sm:$0xff]   ;;  %v3027_v53 = vld [vmem:[%s4050_s3 + $0x1b8] sm:$0xff]  }
  0x56   : > { %2676 = vmatmul.mubr.bf16.vlgmr.msra.gmra.mrb[0].mxu1 %v3635_v58  ;;  %2752 = vmatmul.mubr.bf16.gmra.mrb[4].mxu0 %v2346_v9  ;;  %v886_v0 = vsel %vm3629_vm8, %v2265_v52, %v885_v14  ;;  %v3024_v33 = vld [vmem:[%s4050_s3 + $0xb0] sm:$0xff]   ;;  %v3757_v43 = vcombine.low %v3646_v10, %v882_v32  ;;  %v3034_v52 = vld [vmem:[%s4050_s3 + $0xd8] sm:$0xff]   ;;  %v3029_v14 = vld [vmem:[%s4050_s3 + $0x1c0] sm:$0xff]  }
  0x57   : > { %2684 = vmatpush3.bf16.msra.mxu1 %v3012_v34  ;;  %2679 = vmatprep.mubr.bf16.mxu1 %v3655_v60  ;;  %v2266_v34 = vrot.slane %v3511_v54, 9  ;;  %v2267_v54 = vrot.slane %v3542_v8, 9  ;;  %v3013_v8 = vld [vmem:[%s4050_s3 + $0x180] sm:$0xff]   ;;  %v2373_v5 = vcombine.low %v882_v32, %v886_v0  ;;  %v898_v7 = vsel %vm3629_vm8, %v2268_v29, %v897_v45  ;;  %v3025_v10 = vld [vmem:[%s4050_s3 + $0x1b0] sm:$0xff]   ;;  %v3039_v32 = vld [vmem:[%s4050_s3 + $0x1e8] sm:$0xff]  }
  0x58   : > { %2685 = vmatprep.subr.bf16.mxu1 %v3014_v13  ;;  %2766 = vmatpush3.bf16.msra.mxu0 %v3007_v12  ;;  %v3032_v48 = vld [vmem:[%s4050_s3 + $0xd0] sm:$0xff]   ;;  %v3049_v4 = vld [vmem:[%s4050_s3 + $0x228] sm:$0xff]  }
  0x59   : > { %2771 = vmatprep.mubr.bf16.mxu0 %v2372_v51  ;;  %2767 = vmatprep.subr.bf16.mxu0 %v3009_v17  ;;  %v890_v59 = vsel %vm3629_vm8, %v2266_v34, %v889_v61  ;;  %v894_v47 = vsel %vm3629_vm8, %v2267_v54, %v893_v38  ;;  %v3028_v51 = vld [vmem:[%s4050_s3 + $0xc0] sm:$0xff]   ;;  %v3038_v61 = vld [vmem:[%s4050_s3 + $0xe8] sm:$0xff]   ;;  %v401_v54 = vpack.c.bf16 %v3603_v3, %v3595_v22  ;;  %v3040_v38 = vld [vmem:[%s4050_s3 + $0xf0] sm:$0xff]  }
  0x5a   : > { %v2374_v12 = vcombine.low %v890_v59, %v894_v47  ;;  %v3765_v9 = vcombine.low %v886_v0, %v890_v59  ;;  %v3036_v34 = vld [vmem:[%s4050_s3 + $0xe0] sm:$0xff]   ;;  %v3035_v22 = vld [vmem:[%s4050_s3 + $0x1d8] sm:$0xff]   ;;  %v4097_v0 = vpack.c.bf16 %v3412_v57, %v3352_v62  ;;  %v3046_v62 = vld [vmem:[%s4050_s3 + $0x210] sm:$0xff]  }
  0x5b   : > { %2686 = vmatpush3.bf16.msra.mxu1 %v3014_v13  ;;  %v2375_v13 = vcombine.low %v898_v7, %v3677_v15  ;;  %v3037_v3 = vld [vmem:[%s4050_s3 + $0x1e0] sm:$0xff]   ;;  %v3043_v57 = vld [vmem:[%s4050_s3 + $0x1f8] sm:$0xff]   ;;  %v282_v11 = vld [vmem:[%s3245_s18 + $0x90] sm:$0xff] }
  0x5c   : > { %2687 = vmatprep.subr.bf16.mxu1 %v3016_v23  ;;  %2768 = vmatpush3.bf16.msra.mxu0 %v3009_v17  ;;  %v3026_v17 = vld [vmem:[%s4050_s3 + $0xb8] sm:$0xff]   ;;  %v4098_v27 = vld [vmem:[#allocation5_spill] sm:$0xff]  ;;  %v4107_v29 = vld [vmem:[#allocation14_spill] sm:$0xff] }
  0x5d   : > { %2769 = vmatprep.subr.bf16.mxu0 %v3011_v16  ;;  %v3047_v59 = vld [vmem:[%s4050_s3 + $0x218] sm:$0xff]  }
  0x5e   : > { %2680 = vmatmul.mubr.bf16.gmra.mrb[4].mxu1 %v3692_v49  ;;  %v283_v15 = vld [vmem:[%s3245_s18 + $0x98] sm:$0x3] }
  0x5f   : > { %2688 = vmatpush3.bf16.msra.mxu1 %v3016_v23  ;;  %2699 = vmatprep.mubr.bf16.mxu1 %v2285_v24  ;;  %v3775_v23 = vcombine.low %v894_v47, %v898_v7  ;;  %v3044_v24 = vld [vmem:[%s4050_s3 + $0x200] sm:$0xff]   ;;  %v4103_v47 = vld [vmem:[#allocation10_spill] sm:$0xff] }
  0x60   : > { %2689 = vmatprep.subr.bf16.mxu1 %v3018_v55  ;;  %2770 = vmatpush3.bf16.msra.mxu0 %v3011_v16  ;;  %v3031_v16 = vld [vmem:[%s4050_s3 + $0x1c8] sm:$0xff]  }
  0x61   : > { %2779 = vmatprep.subr.bf16.mxu0 %v3013_v8 }
  0x63   : > { %2690 = vmatpush3.bf16.msra.mxu1 %v3018_v55  ;;  %2772 = vmatmul.mubr.bf16.vlgmr.msra.gmra.mrb[0].mxu0 %v2373_v5  ;;  %v4105_v5 = vld [vmem:[#allocation12_spill] sm:$0xff] }
  0x64   : > { %2691 = vmatprep.subr.bf16.mxu1 %v3020_v1  ;;  %2780 = vmatpush3.bf16.msra.mxu0 %v3013_v8  ;;  %v3041_v8 = vld [vmem:[%s4050_s3 + $0x1f0] sm:$0xff]  }
  0x65   : > { %2775 = vmatprep.mubr.bf16.mxu0 %v2374_v12  ;;  %2781 = vmatprep.subr.bf16.mxu0 %v3015_v25  ;;  %v4106_v12 = vld [vmem:[#allocation13_spill] sm:$0xff] }
  0x67   : > { %2692 = vmatpush3.bf16.msra.mxu1 %v3020_v1  ;;  %v4104_v1 = vld [vmem:[#allocation11_spill] sm:$0xff] }
  0x68   : > { %2693 = vmatprep.subr.bf16.mxu1 %v3022_v39  ;;  %2782 = vmatpush3.bf16.msra.mxu0 %v3015_v25 }
  0x69   : > { %2783 = vmatprep.subr.bf16.mxu0 %v3017_v42 }
  0x6b   : > { %2694 = vmatpush3.bf16.msra.mxu1 %v3022_v39  ;;  %2776 = vmatmul.mubr.bf16.gmra.mrb[4].mxu0 %v2375_v13 }
  0x6c   : > { %2695 = vmatprep.subr.bf16.mxu1 %v3024_v33  ;;  %2784 = vmatpush3.bf16.msra.mxu0 %v3017_v42 }
  0x6d   : > { %2795 = vmatprep.mubr.msk.bf16.mxu0 %vm3393_vm4, %v3400_v50  ;;  %2785 = vmatprep.subr.bf16.mxu0 %v3019_v6  ;;  %v3023_v50 = vld [vmem:[%s4050_s3 + $0x1a8] sm:$0xff]  }
  0x6f   : > { %2696 = vmatpush3.bf16.msra.mxu1 %v3024_v33 }
  0x70   : > { %2697 = vmatprep.subr.bf16.mxu1 %v3026_v17  ;;  %2786 = vmatpush3.bf16.msra.mxu0 %v3019_v6 }
  0x71   : > { %2787 = vmatprep.subr.bf16.mxu0 %v3021_v35 }
  0x73   : > { %2698 = vmatpush3.bf16.msra.mxu1 %v3026_v17  ;;  %v3935_v17 = vld [vmem:[%s4051_s4] ss:$0 sm:$0xff] }
  0x74   : > { %2707 = vmatprep.subr.bf16.mxu1 %v3028_v51  ;;  %2788 = vmatpush3.bf16.msra.mxu0 %v3021_v35 }
  0x75   : > { %2789 = vmatprep.subr.bf16.mxu0 %v3023_v50 }
  0x76   : > { %2700 = vmatmul.mubr.bf16.vlgmr.msra.gmra.mrb[0].mxu1 %v3757_v43 }
  0x77   : > { %2708 = vmatpush3.bf16.msra.mxu1 %v3028_v51  ;;  %2703 = vmatprep.mubr.bf16.mxu1 %v3765_v9 }
  0x78   : > { %2709 = vmatprep.subr.bf16.mxu1 %v3030_v2  ;;  %2790 = vmatpush3.bf16.msra.mxu0 %v3023_v50 }
  0x79   : > { %2791 = vmatprep.subr.bf16.mxu0 %v3025_v10 }
  0x7b   : > { %2710 = vmatpush3.bf16.msra.mxu1 %v3030_v2 }
  0x7c   : > { %2711 = vmatprep.subr.bf16.mxu1 %v3032_v48  ;;  %2792 = vmatpush3.bf16.msra.mxu0 %v3025_v10 }
  0x7d   : > { %2793 = vmatprep.subr.bf16.mxu0 %v3027_v53 }
  0x7e   : > { %2704 = vmatmul.mubr.bf16.gmra.mrb[4].mxu1 %v3775_v23 }
  0x7f   : > { %2712 = vmatpush3.bf16.msra.mxu1 %v3032_v48  ;;  %2723 = vmatprep.mubr.msk.bf16.mxu1 %vm3393_vm4, %v3340_v56  ;;  %v3033_v56 = vld [vmem:[%s4050_s3 + $0x1d0] sm:$0xff]   ;;  %v4108_v48 = vlaneseq }
  0x80   : > { %2713 = vmatprep.subr.bf16.mxu1 %v3034_v52  ;;  %2794 = vmatpush3.bf16.msra.mxu0 %v3027_v53 }
  0x81   : > { %2803 = vmatprep.subr.bf16.mxu0 %v3029_v14 }
  0x83   : > { %2714 = vmatpush3.bf16.msra.mxu1 %v3034_v52  ;;  %2796 = vmatmul.mubr.msk.bf16.vlgmr.msra.gmra.mrb[0].mxu0 %vm3393_vm4, %v3505_v37  ;;  %v4096_v37 = vmov 0.0|0.0  }
  0x84   : > { %2715 = vmatprep.subr.bf16.mxu1 %v3036_v34  ;;  %2804 = vmatpush3.bf16.msra.mxu0 %v3029_v14  ;;  %v2400_v55 = vcombine.low %v401_v54, %v4096_v37  ;;  %v2002_v54 = vrot.slane %v4105_v5, 1  ;;  %v2004_v37 = vrot.slane %v4106_v12, 1 }
  0x85   : > { %2799 = vmatprep.mubr.msk.bf16.mxu0 %vm3393_vm4, %v3557_v41  ;;  %2805 = vmatprep.subr.bf16.mxu0 %v3031_v16  ;;  %v3042_v41 = vld [vmem:[%s4050_s3 + $0xf8] sm:$0xff]  }
  0x87   : > { %2716 = vmatpush3.bf16.msra.mxu1 %v3036_v34 }
  0x88   : > { %2717 = vmatprep.subr.bf16.mxu1 %v3038_v61  ;;  %2806 = vmatpush3.bf16.msra.mxu0 %v3031_v16 }
  0x89   : > { %2807 = vmatprep.subr.bf16.mxu0 %v3033_v56 }
  0x8b   : > { %2718 = vmatpush3.bf16.msra.mxu1 %v3038_v61  ;;  %2800 = vmatmul.mubr.bf16.gmra.mrb[4].mxu0 %v2400_v55  ;;  %v2001_v61 = vrot.slane %v4104_v1, 1  ;;  %v2005_v55 = vrot.slane %v4107_v29, 1 }
  0x8c   : > { %2719 = vmatprep.subr.bf16.mxu1 %v3040_v38  ;;  %2808 = vmatpush3.bf16.msra.mxu0 %v3033_v56 }
  0x8d   : > { %2819 = vmatprep.mubr.bf16.mxu0 %v3635_v58  ;;  %2809 = vmatprep.subr.bf16.mxu0 %v3035_v22  ;;  %v3045_v58 = vld [vmem:[%s4050_s3 + $0x208] sm:$0xff]  }
  0x8f   : > { %2720 = vmatpush3.bf16.msra.mxu1 %v3040_v38 }
  0x90   : > { %2721 = vmatprep.subr.bf16.mxu1 %v3042_v41  ;;  %2810 = vmatpush3.bf16.msra.mxu0 %v3035_v22 }
  0x91   : > { %2811 = vmatprep.subr.bf16.mxu0 %v3037_v3 }
  0x93   : > { %2722 = vmatpush3.bf16.msra.mxu1 %v3042_v41  ;;  %v1999_v41 = vrot.slane %v4103_v47, 1 }
  0x94   : > { %2851 = vmatprep.subr.bf16.mxu1 %v3044_v24  ;;  %2812 = vmatpush3.bf16.msra.mxu0 %v3037_v3 }
  0x95   : > { %2813 = vmatprep.subr.bf16.mxu0 %v3039_v32 }
  0x96   : > { %2724 = vmatmul.mubr.msk.bf16.vlgmr.msra.gmra.mrb[0].mxu1 %vm3393_vm4, %v4097_v0 }
  0x97   : > { %2859 = vmatpush3.bf16.msra.mxu1 %v3044_v24  ;;  %2727 = vmatprep.mubr.msk.bf16.mxu1 %vm3393_vm4, %v2511_v36  ;;  %v3051_v36 = vld [vmem:[%s4050_s3 + $0x238] sm:$0xff]  }
  0x98   : > { %2852 = vmatprep.subr.bf16.mxu1 %v3045_v58  ;;  %2814 = vmatpush3.bf16.msra.mxu0 %v3039_v32  ;;  %v2003_v32 = vsel %vm1982_vm11, %v2001_v61, %v2002_v54 }
  0x99   : > { %2815 = vmatprep.subr.bf16.mxu0 %v3041_v8 }
  0x9b   : > { %2860 = vmatpush3.bf16.msra.mxu1 %v3045_v58 }
  0x9c   : > { %2853 = vmatprep.subr.bf16.mxu1 %v3046_v62  ;;  %2816 = vmatpush3.bf16.msra.mxu0 %v3041_v8 }
  0x9d   : > { %2817 = vmatprep.subr.bf16.mxu0 %v3043_v57 }
  0x9e   : > { %2728 = vmatmul.mubr.msk.bf16.gmra.mrb[4].mxu1 %vm3393_vm4, %v3699_v26  ;;  %v4101_v26 = vld [vmem:[#allocation9_spill] sm:$0xff] }
  0x9f   : > { %2861 = vmatpush3.bf16.msra.mxu1 %v3046_v62  ;;  %2847 = vmatprep.mubr.bf16.mxu1 %v3775_v23  ;;  %v1962_v23 = vand.u32 127, %v4108_v48  ;;  %v1996_v38 = vrot.slane %v4101_v26, 1 }
  0xa0   : > { %2854 = vmatprep.subr.bf16.mxu1 %v3047_v59  ;;  %2818 = vmatpush3.bf16.msra.mxu0 %v3043_v57 }
  0xa1   : > { %2827 = vmatprep.subr.bf16.mxu0 %v3044_v24  ;;  %vm1963_vm9 = vcmp.ge.s32.totalorder %v1962_v23, 13  ;;  %vm1964_vm10 = vcmp.lt.s32.totalorder %v1962_v23, 23 }
  0xa2   : > { %vm3950_vm12 = vmand %vm1963_vm9, %vm1964_vm10 }
  0xa3   : > { %2862 = vmatpush3.bf16.msra.mxu1 %v3047_v59  ;;  %2820 = vmatmul.mubr.bf16.vlgmr.msra.gmra.mrb[0].mxu0 %v3655_v60  ;;  %v265_v60 = vld [vmem:[%s3245_s18 + $0x8] sm:$0x3]  ;;  %s250_s18 = sand.u32 1, %s3106_s22  }
  0xa4   : > { %2855 = vmatprep.subr.bf16.mxu1 %v3048_v63  ;;  %2828 = vmatpush3.bf16.msra.mxu0 %v3044_v24  ;;  %2023 = vst [vmem:[%s3886_s16] sm:$0xff] %v264_v46  ;;  %2024 = vst [vmem:[%s3886_s16 + $0x8] sm:$0x3] %v265_v60  ;;  %s2199_s17 = sshll.u32 %s250_s18, 1  ;;  %s2095_s12 = scalar_lea.sflag [#allocation3], %s250_s18 }
  0xa5   : > { %2823 = vmatprep.mubr.bf16.mxu0 %v3692_v49  ;;  %2829 = vmatprep.subr.bf16.mxu0 %v3045_v58  ;;  %2029 = vst [vmem:[%s3886_s16 + $0x30] sm:$0xff] %v3297_v30  ;;  %2030 = vst [vmem:[%s3886_s16 + $0x38] sm:$0x3] %v3300_v31  ;;  %v4100_v49 = vld [vmem:[#allocation7_spill] sm:$0xff]  ;;  %s252_s20 = scalar_lea.vmem [#allocation2], %s2199_s17 }
  0xa6   : > { %2041 = vst [vmem:[%s3886_s16 + $0x90] sm:$0xff] %v282_v11  ;;  %2042 = vst [vmem:[%s3886_s16 + $0x98] sm:$0x3] %v283_v15  ;;  %v1995_v56 = vrot.slane %v4100_v49, 1  ;;  %s2111_s28 = sshll.u32 %s252_s20, 4  ;;  %s4007_s28 = int_to_ptr.vmem [resolvable:$true] %s2111_s28 }
  0xa7   : > { %2863 = vmatpush3.bf16.msra.mxu1 %v3048_v63  ;;  %2025 = vst [vmem:[%s3886_s16 + $0x10] sm:$0xff] %v3264_v18  ;;  %2026 = vst [vmem:[%s3886_s16 + $0x18] sm:$0x3] %v3267_v19  ;;  %s3052_s13 = scalar_lea.vmem %s4007_s28, 32  ;;  %p3059_p0 = scmp.lt.s32.totalorder %s4007_s28, %s3057_s14 }
  0xa8   : > { %2856 = vmatprep.subr.bf16.mxu1 %v3049_v4  ;;  %2830 = vmatpush3.bf16.msra.mxu0 %v3045_v58  ;;  %2027 = vst [vmem:[%s3886_s16 + $0x20] sm:$0xff] %v3270_v20  ;;  %2028 = vst [vmem:[%s3886_s16 + $0x28] sm:$0x3] %v3291_v28  ;;  %v1997_v8 = vsel %vm1982_vm11, %v1995_v56, %v1996_v38  ;;  %p3053_p11 = scmp.ne.s32.totalorder %s4007_s28, %s3052_s13  ;;  %p3060_p1 = scmp.lt.s32.totalorder %s3058_s15, %s3052_s13 }
  0xa9   : > { %2831 = vmatprep.subr.bf16.mxu0 %v3046_v62  ;;  %2031 = vst [vmem:[%s3886_s16 + $0x40] sm:$0xff] %v4098_v27  ;;  %2033 = vst [vmem:[%s3886_s16 + $0x50] sm:$0xff] %v4100_v49  ;;  %v1989_v49 = vrot.slane %v3297_v30, 1 }
  0xaa   : > { %2034 = vst [vmem:[%s3886_s16 + $0x58] sm:$0x3] %v4101_v26  ;;  %2036 = vst [vmem:[%s3886_s16 + $0x68] sm:$0x3] %v4103_v47  ;;  %v1990_v26 = vrot.slane %v3300_v31, 1  ;;  %v1984_v47 = vrot.slane %v3267_v19, 1  ;;  %p3054_p12 = pnand %p3053_p11, %p3191_p5  ;;  %p3061_p2 = por %p3060_p1, %p3059_p0 }
  0xab   : > { %2864 = vmatpush3.bf16.msra.mxu1 %v3049_v4  ;;  %2824 = vmatmul.mubr.bf16.gmra.mrb[4].mxu0 %v2427_v40  ;;  %v4102_v40 = vld [vmem:[#allocation8_spill] sm:$0xff]  ;;  %2037 = vst [vmem:[%s3886_s16 + $0x70] sm:$0xff] %v4104_v1  ;;  %2038 = vst [vmem:[%s3886_s16 + $0x78] sm:$0x3] %v4105_v5  ;;  %v1992_v1 = vrot.slane %v4098_v27, 1 }
  0xac   : > { %2857 = vmatprep.subr.bf16.mxu1 %v3050_v44  ;;  %2832 = vmatpush3.bf16.msra.mxu0 %v3046_v62  ;;  %2035 = vst [vmem:[%s3886_s16 + $0x60] sm:$0xff] %v4102_v40  ;;  %2039 = vst [vmem:[%s3886_s16 + $0x80] sm:$0xff] %v4106_v12  ;;  %v1998_v22 = vrot.slane %v4102_v40, 1  ;;  %v1983_v40 = vrot.slane %v3264_v18, 1  ;;  %v1991_v31 = vsel %vm1982_vm11, %v1989_v49, %v1990_v26  ;;  %p3055_p13 = pneg %p3054_p12 }
  0xad   : > { %2843 = vmatprep.mubr.bf16.mxu0 %v3757_v43  ;;  %2833 = vmatprep.subr.bf16.mxu0 %v3047_v59  ;;  %2040 = vst [vmem:[%s3886_s16 + $0x88] sm:$0x3] %v4107_v29  ;;  %v1986_v29 = vrot.slane %v3270_v20, 1 }
  0xae   : > { %p3062_p3 = pnand %p3061_p2, %p3055_p13 }
  0xaf   : > { %2865 = vmatpush3.bf16.msra.mxu1 %v3050_v44 }
  0xb0   : > { %2858 = vmatprep.subr.bf16.mxu1 %v3051_v36  ;;  %2834 = vmatpush3.bf16.msra.mxu0 %v3047_v59  ;;  %v2006_v59 = vsel %vm1982_vm11, %v2004_v37, %v2005_v55 }
  0xb1   : > { %2835 = vmatprep.subr.bf16.mxu0 %v3048_v63 }
  0xb3   : > { %2866 = vmatpush3.bf16.msra.mxu1 %v3051_v36 }
  0xb4   : > { %2836 = vmatpush3.bf16.msra.mxu0 %v3048_v63 }
  0xb5   : > { %2837 = vmatprep.subr.bf16.mxu0 %v3049_v4 }
  0xb6   : > { %2848 = vmatmul.mubr.bf16.vlgmr.msra.gmra.mrb[8].mxu1 %v2453_v21  ;;  %v4099_v21 = vld [vmem:[#allocation6_spill] sm:$0xff] }
  0xb7   : > { %2032 = vst [vmem:[%s3886_s16 + $0x48] sm:$0x3] %v4099_v21  ;;  %v1993_v5 = vrot.slane %v4099_v21, 1  ;;  %v1985_v21 = vsel %vm1982_vm11, %v1983_v40, %v1984_v47 }
  0xb8   : > { %2838 = vmatpush3.bf16.msra.mxu0 %v3049_v4 }
  0xb9   : > { %2839 = vmatprep.subr.bf16.mxu0 %v3050_v44 }
  0xbc   : > { %2840 = vmatpush3.bf16.msra.mxu0 %v3050_v44 }
  0xbd   : > { %2841 = vmatprep.subr.bf16.mxu0 %v3051_v36 }
  0xc0   : > { %2842 = vmatpush3.bf16.msra.mxu0 %v3051_v36  ;;  %v2000_v36 = vsel %vm1982_vm11, %v1998_v22, %v1999_v41 }
  0xc3   : > { %2844 = vmatmul.mubr.bf16.vlgmr.msra.gmra.mrb[0].mxu0 %v3765_v9 }
 0x169   : > { %v2725_v45 = vpop.f32.mrb[0].mxu1 }
 0x16a   : > { %v1162_v25 = vpop.f32.mrb[1].mxu1  ;;  %v2867_v12 = vadd.f32 %v2725_v45, %v3935_v17 }
 0x16b   : > { %v3928_v39 = vpop.f32.mrb[2].mxu1 }
 0x16c   : > { %v3930_v7 = vpop.f32.mrb[3].mxu1  ;;  %v2871_v18 = vadd.f32 %v3928_v39, %v3935_v17 }
 0x16d   : > { %v2873_v20 = vadd.f32 %v3935_v17, %v3930_v7 }
 0x171   : > { %v2729_v42 = vpop.f32.mrb[4].mxu1 }
 0x172   : > { %v1178_v33 = vpop.f32.mrb[5].mxu1  ;;  %v2875_v35 = vadd.f32 %v2729_v42, %v3935_v17  ;;  %v1987_v42 = vrot.slane %v3291_v28, 1 }
 0x173   : > { %v2730_v13 = vpop.f32.mrb[6].mxu1  ;;  %v2878_v51 = vadd.f32 %v3935_v17, %v1178_v33  ;;  %v2869_v33 = vadd.f32 %v3935_v17, %v1162_v25  ;;  %v1994_v25 = vsel %vm1982_vm11, %v1992_v1, %v1993_v5 }
 0x174   : > { %v1181_v6 = vpop.f32.mrb[7].mxu1  ;;  %v2881_v43 = vadd.f32 %v2730_v13, %v3935_v17  ;;  %v1988_v39 = vsel %vm1982_vm11, %v1986_v29, %v1987_v42 }
 0x175   : > { %v2884_v2 = vadd.f32 %v3935_v17, %v1181_v6 }
 0x17e   : > { %v2825_v50 = vpop.f32.mrb[4].mxu0 }
 0x17f   : > { %v2876_v9 = vadd.f32 %v2875_v35, %v2825_v50  ;;  %v1793_v10 = vpop.f32.mrb[5].mxu0 }
 0x180   : > { %v2879_v53 = vadd.f32 %v2878_v51, %v1793_v10  ;;  %v2826_v52 = vpop.f32.mrb[6].mxu0 }
 0x181   : > { %v2882_v14 = vadd.f32 %v2881_v43, %v2826_v52  ;;  %v1796_v34 = vpop.f32.mrb[7].mxu0 }
 0x182   : > { %v2885_v16 = vadd.f32 %v2884_v2, %v1796_v34 }
 0x189   : > { %v2849_v24 = vpop.f32.mrb[8].mxu1 }
 0x18a   : > { %v2877_v58 = vadd.f32 %v2876_v9, %v2849_v24  ;;  %v1938_v0 = vpop.f32.mrb[9].mxu1 }
 0x18b   : > { %v2880_v62 = vadd.f32 %v2879_v53, %v1938_v0  ;;  %v2850_v57 = vpop.f32.mrb[10].mxu1 }
 0x18c   : > { %v2021_v63 = vsel %vm3950_vm12, %v2877_v58, %v2003_v32  ;;  %v2883_v4 = vadd.f32 %v2882_v14, %v2850_v57  ;;  %v1941_v44 = vpop.f32.mrb[11].mxu1 }
 0x18d   : > { %2468 = vst [vmem:[%s3886_s16 + $0x71] sm:$0xff] %v2021_v63  ;;  %v2019_v46 = vsel %vm3950_vm12, %v2880_v62, %v1997_v8  ;;  %v2886_v60 = vadd.f32 %v2885_v16, %v1941_v44  ;;  %v2071_v37 = vmul.f32 %v2021_v63, %v2021_v63 }
 0x18e   : > { %2466 = vst [vmem:[%s3886_s16 + $0x51] sm:$0xff] %v2019_v46  ;;  %v2022_v11 = vsel %vm3950_vm12, %v2883_v4, %v2006_v59  ;;  %v2069_v34 = vmul.f32 %v2019_v46, %v2019_v46 }
 0x18f   : > { %2469 = vst [vmem:[%s3886_s16 + $0x81] sm:$0xff] %v2022_v11  ;;  %v2020_v15 = vsel %vm3950_vm12, %v2886_v60, %v2000_v36  ;;  %v2072_v41 = vmul.f32 %v2022_v11, %v2022_v11 }
 0x190   : > { %2467 = vst [vmem:[%s3886_s16 + $0x61] sm:$0xff] %v2020_v15  ;;  %v2070_v56 = vmul.f32 %v2020_v15, %v2020_v15 }
 0x196   : > { %v2845_v30 = vpop.f32.mrb[0].mxu0 }
 0x197   : > { %v2868_v19 = vadd.f32 %v2867_v12, %v2845_v30  ;;  %v1922_v27 = vpop.f32.mrb[1].mxu0 }
 0x198   : > { %v2870_v28 = vadd.f32 %v2869_v33, %v1922_v27  ;;  %v2846_v45 = vpop.f32.mrb[2].mxu0 }
 0x199   : > { %v2017_v13 = vsel %vm3950_vm12, %v2868_v19, %v1991_v31  ;;  %v2872_v6 = vadd.f32 %v2871_v18, %v2846_v45  ;;  %v1925_v35 = vpop.f32.mrb[3].mxu0 }
 0x19a   : > { %2464 = vst [vmem:[%s3886_s16 + $0x31] sm:$0xff] %v2017_v13  ;;  %v2015_v51 = vsel %vm3950_vm12, %v2870_v28, %v1985_v21  ;;  %v2874_v43 = vadd.f32 %v2873_v20, %v1925_v35  ;;  %v2067_v10 = vmul.f32 %v2017_v13, %v2017_v13 }
 0x19b   : > { %2462 = vst [vmem:[%s3886_s16 + $0x11] sm:$0xff] %v2015_v51  ;;  %v2018_v7 = vsel %vm3950_vm12, %v2872_v6, %v1994_v25  ;;  %v2065_v50 = vmul.f32 %v2015_v51, %v2015_v51 }
 0x19c   : > { %2465 = vst [vmem:[%s3886_s16 + $0x41] sm:$0xff] %v2018_v7  ;;  %v2016_v17 = vsel %vm3950_vm12, %v2874_v43, %v1988_v39  ;;  %v2068_v53 = vmul.f32 %v2018_v7, %v2018_v7 }
 0x19d   : > { %2463 = vst [vmem:[%s3886_s16 + $0x21] sm:$0xff] %v2016_v17  ;;  %v2052_v2 = vadd.f32 %v2016_v17, %v2015_v51  ;;  %v2066_v9 = vmul.f32 %v2016_v17, %v2016_v17 }
 0x19f   : > { %v2053_v48 = vadd.f32 %v2052_v2, %v2017_v13  ;;  %v2073_v23 = vadd.f32 %v2066_v9, %v2065_v50 }
 0x1a1   : > { %v2074_v52 = vadd.f32 %v2073_v23, %v2067_v10  ;;  %v2054_v14 = vadd.f32 %v2053_v48, %v2018_v7 }
 0x1a3   : > { %v2055_v16 = vadd.f32 %v2054_v14, %v2019_v46  ;;  %v2075_v61 = vadd.f32 %v2074_v52, %v2068_v53 }
 0x1a5   : > { %v2056_v54 = vadd.f32 %v2055_v16, %v2020_v15  ;;  %v2076_v38 = vadd.f32 %v2075_v61, %v2069_v34 }
 0x1a7   : > { %v2057_v55 = vadd.f32 %v2056_v54, %v2021_v63  ;;  %v2077_v22 = vadd.f32 %v2076_v38, %v2070_v56 }
 0x1a9   : > { %v2058_v3 = vadd.f32 %v2057_v55, %v2022_v11  ;;  %v2078_v24 = vadd.f32 %v2077_v22, %v2071_v37 }
 0x1ab   : > { %v2059_v32 = vrot.slane %v2058_v3, 4  ;;  %v2079_v58 = vadd.f32 %v2078_v24, %v2072_v41 }
 0x1ad   : > { %v2060_v0 = vadd.f32 %v2059_v32, %v2058_v3  ;;  %v2080_v8 = vrot.slane %v2079_v58, 4 }
 0x1af   : > { %v2061_v62 = vrot.slane %v2060_v0, 2  ;;  %v2081_v57 = vadd.f32 %v2080_v8, %v2079_v58 }
 0x1b1   : > { %v2062_v59 = vadd.f32 %v2061_v62, %v2060_v0  ;;  %v2082_v4 = vrot.slane %v2081_v57, 2 }
 0x1b3   : > { %v2063_v44 = vrot.slane %v2062_v59, 1  ;;  %v2083_v36 = vadd.f32 %v2082_v4, %v2081_v57 }
 0x1b5   : > { %v2084_v46 = vrot.slane %v2083_v36, 1  ;;  %v2064_v63 = vadd.f32 %v2063_v44, %v2062_v59 }
 0x1b7   : > { %v2085_v60 = vadd.f32 %v2084_v46, %v2083_v36 }
 0x1b9   : > { %v2087_v11 = vsel %vm2086_vm13, %v2064_v63, %v2085_v60 }
 0x1ba   : > { %2088 = vst [vmem:[%s252_s20] sm:$0x3] %v2087_v11 }
 0x1bb   : > { %3065 = shalt.err (!%p3062_p3)
}
 0x1bc   : > { %s3066_s16 = scalar_lea.hbm %s4005_s10, 32  ;;  %s3070_s18 = scalar_lea.hbm %s4053_s6, 128 }
 0x1bd   : > { %p3067_p4 = scmp.ne.s32.totalorder %s4005_s10, %s3066_s16  ;;  %p3071_p9 = scmp.lt.u32.totalorder %s4005_s10, %s4053_s6 }
 0x1be   : > { %p3072_p10 = scmp.lt.u32.totalorder %s3070_s18, %s3066_s16  ;;  %p3074_p12 = scmp.lt.u32.totalorder %s3066_s16, %s4005_s10 }
 0x1bf   : > { %p3068_p7 = pnand %p3067_p4, %p3191_p5 }
 0x1c0   : > { %p3073_p11 = por %p3072_p10, %p3071_p9 }
 0x1c1   : > { %p3069_p8 = pneg %p3068_p7 }
 0x1c2   : > { %p3075_p13 = por %p3074_p12, %p3073_p11 }
 0x1c4   : > { %p3076_p0 = pnand %p3075_p13, %p3069_p8 }
 0x1c6   : > { %3079 = shalt.err (!%p3076_p0)
}
 0x1c7   : > { %2940 = dma.vmem_to_hbm [thread:$0]  (%p3191_p5), %s4007_s28, 32, %s4005_s10, %s2095_s12  }
 0x1c8 PF: > { %p2946_p1 = scmp.ge.s32.totalorder %s3114_s24, 2  ;;  %s2131_s20 = sand.u32 1, %s3102_s21  }
 0x1c9   : > { %s2132_s29 = scalar_lea.sflag [#allocation3], %s2131_s20 }
 0x1ca   : > { %p2943_p2 = pnand %p2946_p1, %p3195_p6 }
 0x1cc   : > { %3097 = dma.done.wait (!%p2943_p2), %s2132_s29, 32  }
 0x1cd   : > { %3099 = vsyncadd (!%p2943_p2), %s2132_s29, 4294967264  ;;  %p17_p3 = scmp.ge.s32.totalorder %s3178_s27, 6   ;;  %s4111_s21 = smov %s3106_s22 }
 0x1ce   : > { %s4112_s22 = smov %s3110_s23  ;;  %s4113_s23 = smov %s3189_s30 }
 0x1cf   : > { %s4114_s24 = smov %s3178_s27  ;;  %19 = sbr.rel (!%p17_p3) target bundleno = 3 (0x3), region = 96 }
 0x1d6   :  { %2137 = vsyncpa [#allocation3], 1 }
 0x1d7   :  { %2139 = vsyncpa [#allocation3 + $0x1], 1 }

</bundles_post_ra>
